<compile_context>
chip_gen: v5e
topology: v5e:2x2
jax: 0.10.0
libtpu: 0.0.40
codegen_flags: <defaults>
</compile_context>

<pallas_src>
from functools import partial

import jax
import jax.numpy as jnp
from jax import lax
from jax.experimental import pallas as pl
from jax.experimental.pallas import tpu as pltpu

HIDDEN = 32          # small test size (module spec uses 256)
NUM_LAYERS = 2
NUM_CLASSES = 10
INPUT_SIZE = 28
BATCH = 2
SEQ = 8

BTILE = 8            # batch tile = 8 sublanes
OUT_PAD = 128        # lane-dense FC output width (sliced back to NUM_CLASSES)

# PyTorch gate-row order is (i, f, g, o); we pack gate columns in order
# (i, f, o, g) so all sigmoid gates are contiguous, with each gate holding
# fwd then bwd direction: column layout [i_f,i_b, f_f,f_b, o_f,o_b, g_f,g_b].
_GATE_ORDER = (0, 1, 3, 2)


# ----------------------------- Pallas kernel --------------------------------

def _brnn_kernel(x_ref, wih1_ref, whh1_ref, b1_ref,
                 wih2_ref, whh2_ref, b2_ref,
                 fcwf_ref, fcwb_ref, fcb_ref,
                 out_ref, x2_ref, *, seq, btile, hidden):
    T, B, H = seq, btile, hidden
    S = 2 * H                        # fused state width [h_fwd | h_bwd]

    def run_layer(gx, whh_bf16, slab_ref):
        """gx: (T*B, 8H) f32, step-indexed & direction-merged gate inputs."""
        h = jnp.zeros((B, S), jnp.float32)
        c = jnp.zeros((B, S), jnp.float32)
        h_step0 = None
        # TODO(synk): for spec-size T (e.g. 28) switch this full unroll to a
        # lax.fori_loop(..., unroll=2..4) carrying (h, c) to bound vreg
        # pressure; the full unroll is the right choice for the small T=8 here.
        for s in range(T):
            gates = gx[s * B:(s + 1) * B, :] + jnp.dot(
                h.astype(jnp.bfloat16), whh_bf16,
                preferred_element_type=jnp.float32)
            sig = jax.nn.sigmoid(gates[:, :6 * H])   # i, f, o (contiguous)
            g = jnp.tanh(gates[:, 6 * H:])           # g
            c = sig[:, 2 * H:4 * H] * c + sig[:, :2 * H] * g
            h = sig[:, 4 * H:6 * H] * jnp.tanh(c)
            if slab_ref is not None:
                # Step-indexed doubled layer-2 input slab. Row block r holds
                # [h1_f(r), h1_b(T-1-r), h1_f(T-1-r), h1_b(r)]: the full state
                # h = [h1_f(real s) | h1_b(real T-1-s)] is stored whole, twice
                # -> two sublane-aligned full-width stores, no selects.
                slab_ref[s * B:(s + 1) * B, 0:S] = h
                slab_ref[(T - 1 - s) * B:(T - s) * B, S:2 * S] = h
            if s == 0:
                h_step0 = h
        return h, h_step0

    # Layer 1: hoisted input projection for all steps & both directions,
    # already merged/time-aligned via the doubled input + block-diag W_ih.
    gx1 = jnp.dot(x_ref[...], wih1_ref[...],
                  preferred_element_type=jnp.float32) + b1_ref[...]
    run_layer(gx1, whh1_ref[...], x2_ref)

    # Layer 2: hoisted input projection straight from the VMEM slab.
    gx2 = jnp.dot(x2_ref[...].astype(jnp.bfloat16), wih2_ref[...],
                  preferred_element_type=jnp.float32) + b2_ref[...]
    h_last, h_first = run_layer(gx2, whh2_ref[...], None)

    # FC head on out[:, -1, :] = [h2_fwd(T-1) | h2_bwd(T-1)]:
    # fwd half comes from the last step, bwd half from step 0.
    out_ref[...] = (jnp.dot(h_last[:, :H], fcwf_ref[...],
                            preferred_element_type=jnp.float32)
                    + jnp.dot(h_first[:, H:], fcwb_ref[...],
                              preferred_element_type=jnp.float32)
                    + fcb_ref[...])


# ------------------------------ wrapper --------------------------------------

@jax.jit
def brnn_forward(x, packed):
    """x: (B, T, INPUT_SIZE) float32 -> logits (B, NUM_CLASSES)."""
    B, T, Din = x.shape
    nb = (B + BTILE - 1) // BTILE
    Bp = nb * BTILE

    xp = jnp.zeros((Bp, T, Din), jnp.float32).at[:B].set(x)
    x_tm = jnp.transpose(xp, (1, 0, 2))                         # (T, Bp, Din)
    # Doubled input [x_t | x_{T-1-t}] (time reversal done once, outside the
    # kernel), regrouped batch-tile-major so each grid step reads one
    # contiguous, sublane-aligned (T*BTILE, 2*Din) row slab.
    xcat = jnp.concatenate([x_tm, x_tm[::-1]], axis=-1)         # (T, Bp, 2Din)
    xcat = (xcat.reshape(T, nb, BTILE, 2 * Din)
                .transpose(1, 0, 2, 3)
                .reshape(nb * T * BTILE, 2 * Din)
                .astype(jnp.bfloat16))

    args = (xcat, packed["wih1"], packed["whh1"], packed["b1"],
            packed["wih2"], packed["whh2"], packed["b2"],
            packed["fc_wf"], packed["fc_wb"], packed["fc_b"])
    kernel = partial(_brnn_kernel, seq=T, btile=BTILE, hidden=HIDDEN)

    out = pl.pallas_call(
        kernel,
        out_shape=jax.ShapeDtypeStruct((Bp, OUT_PAD), jnp.float32),
        grid=(nb,),
        in_specs=[pl.BlockSpec((T * BTILE, 2 * Din), lambda b: (b, 0))] +
                 [pl.BlockSpec(a.shape, lambda b: (0, 0)) for a in args[1:]],
        out_specs=pl.BlockSpec((BTILE, OUT_PAD), lambda b: (b, 0)),
        scratch_shapes=[pltpu.VMEM((T * BTILE, 4 * HIDDEN), jnp.float32)],
        compiler_params=pltpu.CompilerParams(
            dimension_semantics=("parallel",),
            vmem_limit_bytes=32 * 1024 * 1024),
    )(*args)
    return out[:B, :NUM_CLASSES]


# -------------------------- params / packing ---------------------------------

def init_base_params(key):
    """PyTorch-layout parameters (w_ih: (4H, Din), w_hh: (4H, H), b: (4H,))."""
    k = 1.0 / float(HIDDEN) ** 0.5
    params = {"lstm": []}
    in_size = INPUT_SIZE
    for _ in range(NUM_LAYERS):
        layer = {}
        for d in ("fwd", "bwd"):
            key, k1, k2, k3, k4 = jax.random.split(key, 5)
            layer[d] = {
                "w_ih": jax.random.uniform(k1, (4 * HIDDEN, in_size),
                                           jnp.float32, -k, k),
                "w_hh": jax.random.uniform(k2, (4 * HIDDEN, HIDDEN),
                                           jnp.float32, -k, k),
                "b_ih": jax.random.uniform(k3, (4 * HIDDEN,), jnp.float32, -k, k),
                "b_hh": jax.random.uniform(k4, (4 * HIDDEN,), jnp.float32, -k, k),
            }
        params["lstm"].append(layer)
        in_size = 2 * HIDDEN
    kf = 1.0 / float(2 * HIDDEN) ** 0.5
    key, k1, k2 = jax.random.split(key, 3)
    params["fc"] = {
        "w": jax.random.uniform(k1, (NUM_CLASSES, 2 * HIDDEN), jnp.float32, -kf, kf),
        "b": jax.random.uniform(k2, (NUM_CLASSES,), jnp.float32, -kf, kf),
    }
    return params


def pack_params(base):
    """Repack PyTorch-layout weights into the fused kernel layout (bf16 MXU)."""
    H = HIDDEN
    C = NUM_CLASSES
    Din = INPUT_SIZE
    packed = {}

    # Input-row routing per layer: (src rows of w_ih^T) -> (rows of packed W).
    #  layer 1: doubled input [x_t | x_{T-1-t}]  (width 2*Din)
    #  layer 2: slab row = [h1_f(s), h1_b(T-1-s), h1_f(T-1-s), h1_b(s)] (4H)
    row_maps = [
        {"fwd": [(slice(0, Din), slice(0, Din))],
         "bwd": [(slice(0, Din), slice(Din, 2 * Din))]},
        {"fwd": [(slice(0, H), slice(0, H)),
                 (slice(H, 2 * H), slice(3 * H, 4 * H))],
         "bwd": [(slice(0, H), slice(2 * H, 3 * H)),
                 (slice(H, 2 * H), slice(H, 2 * H))]},
    ]
    packed_rows = [2 * Din, 4 * H]

    for li, layer in enumerate(base["lstm"]):
        wih = jnp.zeros((packed_rows[li], 8 * H), jnp.float32)
        whh = jnp.zeros((2 * H, 8 * H), jnp.float32)   # block-diag over direction
        b = jnp.zeros((8 * H,), jnp.float32)
        for gi, g in enumerate(_GATE_ORDER):
            grows = slice(g * H, (g + 1) * H)
            for di, d in enumerate(("fwd", "bwd")):
                p = layer[d]
                cols = slice((2 * gi + di) * H, (2 * gi + di + 1) * H)
                w_ih_t = jnp.transpose(p["w_ih"][grows])          # (in, H)
                for src, dst in row_maps[li][d]:
                    wih = wih.at[dst, cols].set(w_ih_t[src])
                whh = whh.at[di * H:(di + 1) * H, cols].set(
                    jnp.transpose(p["w_hh"][grows]))
                b = b.at[cols].set(p["b_ih"][grows] + p["b_hh"][grows])
        packed[f"wih{li + 1}"] = wih.astype(jnp.bfloat16)
        packed[f"whh{li + 1}"] = whh.astype(jnp.bfloat16)
        packed[f"b{li + 1}"] = b[None, :]                         # f32 (1, 8H)

    # FC head split over the two state halves, padded to a 128-lane slab.
    fcw = jnp.transpose(base["fc"]["w"])                          # (2H, C)
    packed["fc_wf"] = jnp.zeros((H, OUT_PAD), jnp.float32).at[:, :C].set(fcw[:H])
    packed["fc_wb"] = jnp.zeros((H, OUT_PAD), jnp.float32).at[:, :C].set(fcw[H:])
    packed["fc_b"] = jnp.zeros((1, OUT_PAD), jnp.float32).at[0, :C].set(
        base["fc"]["b"])
    return packed


# ----------------------------- pure-JAX reference ----------------------------

def _lstm_dir_ref(x_tbd, p, H):
    def step(carry, x_t):
        h, c = carry
        gates = x_t @ p["w_ih"].T + h @ p["w_hh"].T + p["b_ih"] + p["b_hh"]
        i = jax.nn.sigmoid(gates[:, :H])
        f = jax.nn.sigmoid(gates[:, H:2 * H])
        g = jnp.tanh(gates[:, 2 * H:3 * H])
        o = jax.nn.sigmoid(gates[:, 3 * H:])
        c = f * c + i * g
        h = o * jnp.tanh(c)
        return (h, c), h

    B = x_tbd.shape[1]
    init = (jnp.zeros((B, H), jnp.float32), jnp.zeros((B, H), jnp.float32))
    _, hs = lax.scan(step, init, x_tbd)
    return hs


def brnn_forward_ref(x, base):
    h = jnp.transpose(x, (1, 0, 2)).astype(jnp.float32)
    for layer in base["lstm"]:
        out_f = _lstm_dir_ref(h, layer["fwd"], HIDDEN)
        out_b = _lstm_dir_ref(h[::-1], layer["bwd"], HIDDEN)[::-1]
        h = jnp.concatenate([out_f, out_b], axis=-1)
    return h[-1] @ base["fc"]["w"].T + base["fc"]["b"]


# --------------------------------- main ---------------------------------------

if __name__ == "__main__":
    key = jax.random.PRNGKey(0)
    key, kx, kp = jax.random.split(key, 3)
    x = jax.random.normal(kx, (BATCH, SEQ, INPUT_SIZE), jnp.float32)
    base = init_base_params(kp)
    packed = pack_params(base)

    logits = jax.block_until_ready(brnn_forward(x, packed))
    assert logits.shape == (BATCH, NUM_CLASSES)
    assert bool(jnp.all(jnp.isfinite(logits)))

    ref = jax.block_until_ready(brnn_forward_ref(x, base))
    # bf16 MXU operands (f32 accumulation/state) -> slightly relaxed tolerance
    assert bool(jnp.allclose(logits, ref, atol=2e-2, rtol=2e-2)), (
        f"max abs diff {float(jnp.max(jnp.abs(logits - ref)))}")

    print("KERNEL_OK")
</pallas_src>

<mosaic_0001>
module attributes {stable_mosaic.version = 11 : i64} {
  func.func @_brnn_kernel(%arg0: i32, %arg1: memref<64x56xbf16, #tpu.memory_space<vmem>>, %arg2: memref<56x256xbf16, #tpu.memory_space<vmem>>, %arg3: memref<64x256xbf16, #tpu.memory_space<vmem>>, %arg4: memref<1x256xf32, #tpu.memory_space<vmem>>, %arg5: memref<128x256xbf16, #tpu.memory_space<vmem>>, %arg6: memref<64x256xbf16, #tpu.memory_space<vmem>>, %arg7: memref<1x256xf32, #tpu.memory_space<vmem>>, %arg8: memref<32x128xf32, #tpu.memory_space<vmem>>, %arg9: memref<32x128xf32, #tpu.memory_space<vmem>>, %arg10: memref<1x128xf32, #tpu.memory_space<vmem>>, %arg11: memref<8x128xf32, #tpu.memory_space<vmem>>, %arg12: memref<64x128xf32, #tpu.memory_space<vmem>>) attributes {dimension_semantics = [#tpu.dimension_semantics<parallel>], iteration_bounds = array<i64: 1>, scalar_prefetch = 0 : i64, scratch_operands = 1 : i64, tpu.core_type = #tpu.core_type<tc>, window_params = [{transform_indices = @transform_0, window_bounds = array<i64: 64, 56>}, {pipeline_mode = #tpu.pipeline_mode<synchronous>, transform_indices = @transform_1, window_bounds = array<i64: 56, 256>}, {pipeline_mode = #tpu.pipeline_mode<synchronous>, transform_indices = @transform_2, window_bounds = array<i64: 64, 256>}, {pipeline_mode = #tpu.pipeline_mode<synchronous>, transform_indices = @transform_3, window_bounds = array<i64: 1, 256>}, {pipeline_mode = #tpu.pipeline_mode<synchronous>, transform_indices = @transform_4, window_bounds = array<i64: 128, 256>}, {pipeline_mode = #tpu.pipeline_mode<synchronous>, transform_indices = @transform_5, window_bounds = array<i64: 64, 256>}, {pipeline_mode = #tpu.pipeline_mode<synchronous>, transform_indices = @transform_6, window_bounds = array<i64: 1, 256>}, {pipeline_mode = #tpu.pipeline_mode<synchronous>, transform_indices = @transform_7, window_bounds = array<i64: 32, 128>}, {pipeline_mode = #tpu.pipeline_mode<synchronous>, transform_indices = @transform_8, window_bounds = array<i64: 32, 128>}, {pipeline_mode = #tpu.pipeline_mode<synchronous>, transform_indices = @transform_9, window_bounds = array<i64: 1, 128>}, {transform_indices = @transform_10, window_bounds = array<i64: 8, 128>}]} {
    %c0 = arith.constant 0 : index
    %c0_0 = arith.constant 0 : index
    %0 = vector.load %arg1[%c0, %c0_0] : memref<64x56xbf16, #tpu.memory_space<vmem>>, vector<64x56xbf16>
    %c0_1 = arith.constant 0 : index
    %c0_2 = arith.constant 0 : index
    %1 = vector.load %arg2[%c0_1, %c0_2] : memref<56x256xbf16, #tpu.memory_space<vmem>>, vector<56x256xbf16>
    %cst = arith.constant dense<0.000000e+00> : vector<64x256xf32>
    %2 = tpu.matmul %0, %1, %cst {dimension_numbers = #tpu.dot_dimension_numbers<[1], [0], [0], [1], [0, 0, 1, 1], [], []>} : vector<64x56xbf16>, vector<56x256xbf16>, vector<64x256xf32> -> vector<64x256xf32>
    %c0_3 = arith.constant 0 : index
    %c0_4 = arith.constant 0 : index
    %3 = vector.load %arg4[%c0_3, %c0_4] : memref<1x256xf32, #tpu.memory_space<vmem>>, vector<1x256xf32>
    %4 = vector.broadcast %3 : vector<1x256xf32> to vector<64x256xf32>
    %5 = arith.addf %2, %4 : vector<64x256xf32>
    %c0_5 = arith.constant 0 : index
    %c0_6 = arith.constant 0 : index
    %6 = vector.load %arg3[%c0_5, %c0_6] : memref<64x256xbf16, #tpu.memory_space<vmem>>, vector<64x256xbf16>
    %cst_7 = arith.constant 0.000000e+00 : f32
    %7 = vector.broadcast %cst_7 : f32 to vector<8x64xf32>
    %cst_8 = arith.constant 0.000000e+00 : f32
    %8 = vector.broadcast %cst_8 : f32 to vector<8x64xf32>
    %9 = vector.extract_strided_slice %5 {offsets = [0, 0], sizes = [8, 256], strides = [1, 1]} : vector<64x256xf32> to vector<8x256xf32>
    %10 = arith.truncf %7 : vector<8x64xf32> to vector<8x64xbf16>
    %cst_9 = arith.constant dense<0.000000e+00> : vector<8x256xf32>
    %11 = tpu.matmul %10, %6, %cst_9 {dimension_numbers = #tpu.dot_dimension_numbers<[1], [0], [0], [1], [0, 0, 1, 1], [], []>} : vector<8x64xbf16>, vector<64x256xbf16>, vector<8x256xf32> -> vector<8x256xf32>
    %12 = arith.addf %9, %11 : vector<8x256xf32>
    %13 = vector.extract_strided_slice %12 {offsets = [0, 0], sizes = [8, 192], strides = [1, 1]} : vector<8x256xf32> to vector<8x192xf32>
    %14 = arith.negf %13 : vector<8x192xf32>
    %15 = math.exp %14 : vector<8x192xf32>
    %cst_10 = arith.constant 1.000000e+00 : f32
    %16 = vector.broadcast %cst_10 : f32 to vector<8x192xf32>
    %17 = arith.addf %16, %15 : vector<8x192xf32>
    %18 = arith.divf %16, %17 : vector<8x192xf32>
    %19 = vector.extract_strided_slice %12 {offsets = [0, 192], sizes = [8, 64], strides = [1, 1]} : vector<8x256xf32> to vector<8x64xf32>
    %20 = math.tanh %19 : vector<8x64xf32>
    %21 = vector.extract_strided_slice %18 {offsets = [0, 64], sizes = [8, 64], strides = [1, 1]} : vector<8x192xf32> to vector<8x64xf32>
    %22 = arith.mulf %21, %8 : vector<8x64xf32>
    %23 = vector.extract_strided_slice %18 {offsets = [0, 0], sizes = [8, 64], strides = [1, 1]} : vector<8x192xf32> to vector<8x64xf32>
    %24 = arith.mulf %23, %20 : vector<8x64xf32>
    %25 = arith.addf %22, %24 : vector<8x64xf32>
    %26 = vector.extract_strided_slice %18 {offsets = [0, 128], sizes = [8, 64], strides = [1, 1]} : vector<8x192xf32> to vector<8x64xf32>
    %27 = math.tanh %25 : vector<8x64xf32>
    %28 = arith.mulf %26, %27 : vector<8x64xf32>
    %c0_11 = arith.constant 0 : index
    %c0_12 = arith.constant 0 : index
    %29 = vector.load %arg12[%c0_11, %c0_12] : memref<64x128xf32, #tpu.memory_space<vmem>>, vector<8x64xf32>
    tpu.vector_store %arg12[%c0_11, %c0_12], %28 {strides = array<i32>} : memref<64x128xf32, #tpu.memory_space<vmem>>, vector<8x64xf32>,
    %c56 = arith.constant 56 : index
    %c64 = arith.constant 64 : index
    %30 = vector.load %arg12[%c56, %c64] : memref<64x128xf32, #tpu.memory_space<vmem>>, vector<8x64xf32>
    tpu.vector_store %arg12[%c56, %c64], %28 {strides = array<i32>} : memref<64x128xf32, #tpu.memory_space<vmem>>, vector<8x64xf32>,
    %31 = vector.extract_strided_slice %5 {offsets = [8, 0], sizes = [8, 256], strides = [1, 1]} : vector<64x256xf32> to vector<8x256xf32>
    %32 = arith.truncf %28 : vector<8x64xf32> to vector<8x64xbf16>
    %cst_13 = arith.constant dense<0.000000e+00> : vector<8x256xf32>
    %33 = tpu.matmul %32, %6, %cst_13 {dimension_numbers = #tpu.dot_dimension_numbers<[1], [0], [0], [1], [0, 0, 1, 1], [], []>} : vector<8x64xbf16>, vector<64x256xbf16>, vector<8x256xf32> -> vector<8x256xf32>
    %34 = arith.addf %31, %33 : vector<8x256xf32>
    %35 = vector.extract_strided_slice %34 {offsets = [0, 0], sizes = [8, 192], strides = [1, 1]} : vector<8x256xf32> to vector<8x192xf32>
    %36 = arith.negf %35 : vector<8x192xf32>
    %37 = math.exp %36 : vector<8x192xf32>
    %cst_14 = arith.constant 1.000000e+00 : f32
    %38 = vector.broadcast %cst_14 : f32 to vector<8x192xf32>
    %39 = arith.addf %38, %37 : vector<8x192xf32>
    %40 = arith.divf %38, %39 : vector<8x192xf32>
    %41 = vector.extract_strided_slice %34 {offsets = [0, 192], sizes = [8, 64], strides = [1, 1]} : vector<8x256xf32> to vector<8x64xf32>
    %42 = math.tanh %41 : vector<8x64xf32>
    %43 = vector.extract_strided_slice %40 {offsets = [0, 64], sizes = [8, 64], strides = [1, 1]} : vector<8x192xf32> to vector<8x64xf32>
    %44 = arith.mulf %43, %25 : vector<8x64xf32>
    %45 = vector.extract_strided_slice %40 {offsets = [0, 0], sizes = [8, 64], strides = [1, 1]} : vector<8x192xf32> to vector<8x64xf32>
    %46 = arith.mulf %45, %42 : vector<8x64xf32>
    %47 = arith.addf %44, %46 : vector<8x64xf32>
    %48 = vector.extract_strided_slice %40 {offsets = [0, 128], sizes = [8, 64], strides = [1, 1]} : vector<8x192xf32> to vector<8x64xf32>
    %49 = math.tanh %47 : vector<8x64xf32>
    %50 = arith.mulf %48, %49 : vector<8x64xf32>
    %c8 = arith.constant 8 : index
    %c0_15 = arith.constant 0 : index
    %51 = vector.load %arg12[%c8, %c0_15] : memref<64x128xf32, #tpu.memory_space<vmem>>, vector<8x64xf32>
    tpu.vector_store %arg12[%c8, %c0_15], %50 {strides = array<i32>} : memref<64x128xf32, #tpu.memory_space<vmem>>, vector<8x64xf32>,
    %c48 = arith.constant 48 : index
    %c64_16 = arith.constant 64 : index
    %52 = vector.load %arg12[%c48, %c64_16] : memref<64x128xf32, #tpu.memory_space<vmem>>, vector<8x64xf32>
    tpu.vector_store %arg12[%c48, %c64_16], %50 {strides = array<i32>} : memref<64x128xf32, #tpu.memory_space<vmem>>, vector<8x64xf32>,
    %53 = vector.extract_strided_slice %5 {offsets = [16, 0], sizes = [8, 256], strides = [1, 1]} : vector<64x256xf32> to vector<8x256xf32>
    %54 = arith.truncf %50 : vector<8x64xf32> to vector<8x64xbf16>
    %cst_17 = arith.constant dense<0.000000e+00> : vector<8x256xf32>
    %55 = tpu.matmul %54, %6, %cst_17 {dimension_numbers = #tpu.dot_dimension_numbers<[1], [0], [0], [1], [0, 0, 1, 1], [], []>} : vector<8x64xbf16>, vector<64x256xbf16>, vector<8x256xf32> -> vector<8x256xf32>
    %56 = arith.addf %53, %55 : vector<8x256xf32>
    %57 = vector.extract_strided_slice %56 {offsets = [0, 0], sizes = [8, 192], strides = [1, 1]} : vector<8x256xf32> to vector<8x192xf32>
    %58 = arith.negf %57 : vector<8x192xf32>
    %59 = math.exp %58 : vector<8x192xf32>
    %cst_18 = arith.constant 1.000000e+00 : f32
    %60 = vector.broadcast %cst_18 : f32 to vector<8x192xf32>
    %61 = arith.addf %60, %59 : vector<8x192xf32>
    %62 = arith.divf %60, %61 : vector<8x192xf32>
    %63 = vector.extract_strided_slice %56 {offsets = [0, 192], sizes = [8, 64], strides = [1, 1]} : vector<8x256xf32> to vector<8x64xf32>
    %64 = math.tanh %63 : vector<8x64xf32>
    %65 = vector.extract_strided_slice %62 {offsets = [0, 64], sizes = [8, 64], strides = [1, 1]} : vector<8x192xf32> to vector<8x64xf32>
    %66 = arith.mulf %65, %47 : vector<8x64xf32>
    %67 = vector.extract_strided_slice %62 {offsets = [0, 0], sizes = [8, 64], strides = [1, 1]} : vector<8x192xf32> to vector<8x64xf32>
    %68 = arith.mulf %67, %64 : vector<8x64xf32>
    %69 = arith.addf %66, %68 : vector<8x64xf32>
    %70 = vector.extract_strided_slice %62 {offsets = [0, 128], sizes = [8, 64], strides = [1, 1]} : vector<8x192xf32> to vector<8x64xf32>
    %71 = math.tanh %69 : vector<8x64xf32>
    %72 = arith.mulf %70, %71 : vector<8x64xf32>
    %c16 = arith.constant 16 : index
    %c0_19 = arith.constant 0 : index
    %73 = vector.load %arg12[%c16, %c0_19] : memref<64x128xf32, #tpu.memory_space<vmem>>, vector<8x64xf32>
    tpu.vector_store %arg12[%c16, %c0_19], %72 {strides = array<i32>} : memref<64x128xf32, #tpu.memory_space<vmem>>, vector<8x64xf32>,
    %c40 = arith.constant 40 : index
    %c64_20 = arith.constant 64 : index
    %74 = vector.load %arg12[%c40, %c64_20] : memref<64x128xf32, #tpu.memory_space<vmem>>, vector<8x64xf32>
    tpu.vector_store %arg12[%c40, %c64_20], %72 {strides = array<i32>} : memref<64x128xf32, #tpu.memory_space<vmem>>, vector<8x64xf32>,
    %75 = vector.extract_strided_slice %5 {offsets = [24, 0], sizes = [8, 256], strides = [1, 1]} : vector<64x256xf32> to vector<8x256xf32>
    %76 = arith.truncf %72 : vector<8x64xf32> to vector<8x64xbf16>
    %cst_21 = arith.constant dense<0.000000e+00> : vector<8x256xf32>
    %77 = tpu.matmul %76, %6, %cst_21 {dimension_numbers = #tpu.dot_dimension_numbers<[1], [0], [0], [1], [0, 0, 1, 1], [], []>} : vector<8x64xbf16>, vector<64x256xbf16>, vector<8x256xf32> -> vector<8x256xf32>
    %78 = arith.addf %75, %77 : vector<8x256xf32>
    %79 = vector.extract_strided_slice %78 {offsets = [0, 0], sizes = [8, 192], strides = [1, 1]} : vector<8x256xf32> to vector<8x192xf32>
    %80 = arith.negf %79 : vector<8x192xf32>
    %81 = math.exp %80 : vector<8x192xf32>
    %cst_22 = arith.constant 1.000000e+00 : f32
    %82 = vector.broadcast %cst_22 : f32 to vector<8x192xf32>
    %83 = arith.addf %82, %81 : vector<8x192xf32>
    %84 = arith.divf %82, %83 : vector<8x192xf32>
    %85 = vector.extract_strided_slice %78 {offsets = [0, 192], sizes = [8, 64], strides = [1, 1]} : vector<8x256xf32> to vector<8x64xf32>
    %86 = math.tanh %85 : vector<8x64xf32>
    %87 = vector.extract_strided_slice %84 {offsets = [0, 64], sizes = [8, 64], strides = [1, 1]} : vector<8x192xf32> to vector<8x64xf32>
    %88 = arith.mulf %87, %69 : vector<8x64xf32>
    %89 = vector.extract_strided_slice %84 {offsets = [0, 0], sizes = [8, 64], strides = [1, 1]} : vector<8x192xf32> to vector<8x64xf32>
    %90 = arith.mulf %89, %86 : vector<8x64xf32>
    %91 = arith.addf %88, %90 : vector<8x64xf32>
    %92 = vector.extract_strided_slice %84 {offsets = [0, 128], sizes = [8, 64], strides = [1, 1]} : vector<8x192xf32> to vector<8x64xf32>
    %93 = math.tanh %91 : vector<8x64xf32>
    %94 = arith.mulf %92, %93 : vector<8x64xf32>
    %c24 = arith.constant 24 : index
    %c0_23 = arith.constant 0 : index
    %95 = vector.load %arg12[%c24, %c0_23] : memref<64x128xf32, #tpu.memory_space<vmem>>, vector<8x64xf32>
    tpu.vector_store %arg12[%c24, %c0_23], %94 {strides = array<i32>} : memref<64x128xf32, #tpu.memory_space<vmem>>, vector<8x64xf32>,
    %c32 = arith.constant 32 : index
    %c64_24 = arith.constant 64 : index
    %96 = vector.load %arg12[%c32, %c64_24] : memref<64x128xf32, #tpu.memory_space<vmem>>, vector<8x64xf32>
    tpu.vector_store %arg12[%c32, %c64_24], %94 {strides = array<i32>} : memref<64x128xf32, #tpu.memory_space<vmem>>, vector<8x64xf32>,
    %97 = vector.extract_strided_slice %5 {offsets = [32, 0], sizes = [8, 256], strides = [1, 1]} : vector<64x256xf32> to vector<8x256xf32>
    %98 = arith.truncf %94 : vector<8x64xf32> to vector<8x64xbf16>
    %cst_25 = arith.constant dense<0.000000e+00> : vector<8x256xf32>
    %99 = tpu.matmul %98, %6, %cst_25 {dimension_numbers = #tpu.dot_dimension_numbers<[1], [0], [0], [1], [0, 0, 1, 1], [], []>} : vector<8x64xbf16>, vector<64x256xbf16>, vector<8x256xf32> -> vector<8x256xf32>
    %100 = arith.addf %97, %99 : vector<8x256xf32>
    %101 = vector.extract_strided_slice %100 {offsets = [0, 0], sizes = [8, 192], strides = [1, 1]} : vector<8x256xf32> to vector<8x192xf32>
    %102 = arith.negf %101 : vector<8x192xf32>
    %103 = math.exp %102 : vector<8x192xf32>
    %cst_26 = arith.constant 1.000000e+00 : f32
    %104 = vector.broadcast %cst_26 : f32 to vector<8x192xf32>
    %105 = arith.addf %104, %103 : vector<8x192xf32>
    %106 = arith.divf %104, %105 : vector<8x192xf32>
    %107 = vector.extract_strided_slice %100 {offsets = [0, 192], sizes = [8, 64], strides = [1, 1]} : vector<8x256xf32> to vector<8x64xf32>
    %108 = math.tanh %107 : vector<8x64xf32>
    %109 = vector.extract_strided_slice %106 {offsets = [0, 64], sizes = [8, 64], strides = [1, 1]} : vector<8x192xf32> to vector<8x64xf32>
    %110 = arith.mulf %109, %91 : vector<8x64xf32>
    %111 = vector.extract_strided_slice %106 {offsets = [0, 0], sizes = [8, 64], strides = [1, 1]} : vector<8x192xf32> to vector<8x64xf32>
    %112 = arith.mulf %111, %108 : vector<8x64xf32>
    %113 = arith.addf %110, %112 : vector<8x64xf32>
    %114 = vector.extract_strided_slice %106 {offsets = [0, 128], sizes = [8, 64], strides = [1, 1]} : vector<8x192xf32> to vector<8x64xf32>
    %115 = math.tanh %113 : vector<8x64xf32>
    %116 = arith.mulf %114, %115 : vector<8x64xf32>
    %c32_27 = arith.constant 32 : index
    %c0_28 = arith.constant 0 : index
    %117 = vector.load %arg12[%c32_27, %c0_28] : memref<64x128xf32, #tpu.memory_space<vmem>>, vector<8x64xf32>
    tpu.vector_store %arg12[%c32_27, %c0_28], %116 {strides = array<i32>} : memref<64x128xf32, #tpu.memory_space<vmem>>, vector<8x64xf32>,
    %c24_29 = arith.constant 24 : index
    %c64_30 = arith.constant 64 : index
    %118 = vector.load %arg12[%c24_29, %c64_30] : memref<64x128xf32, #tpu.memory_space<vmem>>, vector<8x64xf32>
    tpu.vector_store %arg12[%c24_29, %c64_30], %116 {strides = array<i32>} : memref<64x128xf32, #tpu.memory_space<vmem>>, vector<8x64xf32>,
    %119 = vector.extract_strided_slice %5 {offsets = [40, 0], sizes = [8, 256], strides = [1, 1]} : vector<64x256xf32> to vector<8x256xf32>
    %120 = arith.truncf %116 : vector<8x64xf32> to vector<8x64xbf16>
    %cst_31 = arith.constant dense<0.000000e+00> : vector<8x256xf32>
    %121 = tpu.matmul %120, %6, %cst_31 {dimension_numbers = #tpu.dot_dimension_numbers<[1], [0], [0], [1], [0, 0, 1, 1], [], []>} : vector<8x64xbf16>, vector<64x256xbf16>, vector<8x256xf32> -> vector<8x256xf32>
    %122 = arith.addf %119, %121 : vector<8x256xf32>
    %123 = vector.extract_strided_slice %122 {offsets = [0, 0], sizes = [8, 192], strides = [1, 1]} : vector<8x256xf32> to vector<8x192xf32>
    %124 = arith.negf %123 : vector<8x192xf32>
    %125 = math.exp %124 : vector<8x192xf32>
    %cst_32 = arith.constant 1.000000e+00 : f32
    %126 = vector.broadcast %cst_32 : f32 to vector<8x192xf32>
    %127 = arith.addf %126, %125 : vector<8x192xf32>
    %128 = arith.divf %126, %127 : vector<8x192xf32>
    %129 = vector.extract_strided_slice %122 {offsets = [0, 192], sizes = [8, 64], strides = [1, 1]} : vector<8x256xf32> to vector<8x64xf32>
    %130 = math.tanh %129 : vector<8x64xf32>
    %131 = vector.extract_strided_slice %128 {offsets = [0, 64], sizes = [8, 64], strides = [1, 1]} : vector<8x192xf32> to vector<8x64xf32>
    %132 = arith.mulf %131, %113 : vector<8x64xf32>
    %133 = vector.extract_strided_slice %128 {offsets = [0, 0], sizes = [8, 64], strides = [1, 1]} : vector<8x192xf32> to vector<8x64xf32>
    %134 = arith.mulf %133, %130 : vector<8x64xf32>
    %135 = arith.addf %132, %134 : vector<8x64xf32>
    %136 = vector.extract_strided_slice %128 {offsets = [0, 128], sizes = [8, 64], strides = [1, 1]} : vector<8x192xf32> to vector<8x64xf32>
    %137 = math.tanh %135 : vector<8x64xf32>
    %138 = arith.mulf %136, %137 : vector<8x64xf32>
    %c40_33 = arith.constant 40 : index
    %c0_34 = arith.constant 0 : index
    %139 = vector.load %arg12[%c40_33, %c0_34] : memref<64x128xf32, #tpu.memory_space<vmem>>, vector<8x64xf32>
    tpu.vector_store %arg12[%c40_33, %c0_34], %138 {strides = array<i32>} : memref<64x128xf32, #tpu.memory_space<vmem>>, vector<8x64xf32>,
    %c16_35 = arith.constant 16 : index
    %c64_36 = arith.constant 64 : index
    %140 = vector.load %arg12[%c16_35, %c64_36] : memref<64x128xf32, #tpu.memory_space<vmem>>, vector<8x64xf32>
    tpu.vector_store %arg12[%c16_35, %c64_36], %138 {strides = array<i32>} : memref<64x128xf32, #tpu.memory_space<vmem>>, vector<8x64xf32>,
    %141 = vector.extract_strided_slice %5 {offsets = [48, 0], sizes = [8, 256], strides = [1, 1]} : vector<64x256xf32> to vector<8x256xf32>
    %142 = arith.truncf %138 : vector<8x64xf32> to vector<8x64xbf16>
    %cst_37 = arith.constant dense<0.000000e+00> : vector<8x256xf32>
    %143 = tpu.matmul %142, %6, %cst_37 {dimension_numbers = #tpu.dot_dimension_numbers<[1], [0], [0], [1], [0, 0, 1, 1], [], []>} : vector<8x64xbf16>, vector<64x256xbf16>, vector<8x256xf32> -> vector<8x256xf32>
    %144 = arith.addf %141, %143 : vector<8x256xf32>
    %145 = vector.extract_strided_slice %144 {offsets = [0, 0], sizes = [8, 192], strides = [1, 1]} : vector<8x256xf32> to vector<8x192xf32>
    %146 = arith.negf %145 : vector<8x192xf32>
    %147 = math.exp %146 : vector<8x192xf32>
    %cst_38 = arith.constant 1.000000e+00 : f32
    %148 = vector.broadcast %cst_38 : f32 to vector<8x192xf32>
    %149 = arith.addf %148, %147 : vector<8x192xf32>
    %150 = arith.divf %148, %149 : vector<8x192xf32>
    %151 = vector.extract_strided_slice %144 {offsets = [0, 192], sizes = [8, 64], strides = [1, 1]} : vector<8x256xf32> to vector<8x64xf32>
    %152 = math.tanh %151 : vector<8x64xf32>
    %153 = vector.extract_strided_slice %150 {offsets = [0, 64], sizes = [8, 64], strides = [1, 1]} : vector<8x192xf32> to vector<8x64xf32>
    %154 = arith.mulf %153, %135 : vector<8x64xf32>
    %155 = vector.extract_strided_slice %150 {offsets = [0, 0], sizes = [8, 64], strides = [1, 1]} : vector<8x192xf32> to vector<8x64xf32>
    %156 = arith.mulf %155, %152 : vector<8x64xf32>
    %157 = arith.addf %154, %156 : vector<8x64xf32>
    %158 = vector.extract_strided_slice %150 {offsets = [0, 128], sizes = [8, 64], strides = [1, 1]} : vector<8x192xf32> to vector<8x64xf32>
    %159 = math.tanh %157 : vector<8x64xf32>
    %160 = arith.mulf %158, %159 : vector<8x64xf32>
    %c48_39 = arith.constant 48 : index
    %c0_40 = arith.constant 0 : index
    %161 = vector.load %arg12[%c48_39, %c0_40] : memref<64x128xf32, #tpu.memory_space<vmem>>, vector<8x64xf32>
    tpu.vector_store %arg12[%c48_39, %c0_40], %160 {strides = array<i32>} : memref<64x128xf32, #tpu.memory_space<vmem>>, vector<8x64xf32>,
    %c8_41 = arith.constant 8 : index
    %c64_42 = arith.constant 64 : index
    %162 = vector.load %arg12[%c8_41, %c64_42] : memref<64x128xf32, #tpu.memory_space<vmem>>, vector<8x64xf32>
    tpu.vector_store %arg12[%c8_41, %c64_42], %160 {strides = array<i32>} : memref<64x128xf32, #tpu.memory_space<vmem>>, vector<8x64xf32>,
    %163 = vector.extract_strided_slice %5 {offsets = [56, 0], sizes = [8, 256], strides = [1, 1]} : vector<64x256xf32> to vector<8x256xf32>
    %164 = arith.truncf %160 : vector<8x64xf32> to vector<8x64xbf16>
    %cst_43 = arith.constant dense<0.000000e+00> : vector<8x256xf32>
    %165 = tpu.matmul %164, %6, %cst_43 {dimension_numbers = #tpu.dot_dimension_numbers<[1], [0], [0], [1], [0, 0, 1, 1], [], []>} : vector<8x64xbf16>, vector<64x256xbf16>, vector<8x256xf32> -> vector<8x256xf32>
    %166 = arith.addf %163, %165 : vector<8x256xf32>
    %167 = vector.extract_strided_slice %166 {offsets = [0, 0], sizes = [8, 192], strides = [1, 1]} : vector<8x256xf32> to vector<8x192xf32>
    %168 = arith.negf %167 : vector<8x192xf32>
    %169 = math.exp %168 : vector<8x192xf32>
    %cst_44 = arith.constant 1.000000e+00 : f32
    %170 = vector.broadcast %cst_44 : f32 to vector<8x192xf32>
    %171 = arith.addf %170, %169 : vector<8x192xf32>
    %172 = arith.divf %170, %171 : vector<8x192xf32>
    %173 = vector.extract_strided_slice %166 {offsets = [0, 192], sizes = [8, 64], strides = [1, 1]} : vector<8x256xf32> to vector<8x64xf32>
    %174 = math.tanh %173 : vector<8x64xf32>
    %175 = vector.extract_strided_slice %172 {offsets = [0, 64], sizes = [8, 64], strides = [1, 1]} : vector<8x192xf32> to vector<8x64xf32>
    %176 = arith.mulf %175, %157 : vector<8x64xf32>
    %177 = vector.extract_strided_slice %172 {offsets = [0, 0], sizes = [8, 64], strides = [1, 1]} : vector<8x192xf32> to vector<8x64xf32>
    %178 = arith.mulf %177, %174 : vector<8x64xf32>
    %179 = arith.addf %176, %178 : vector<8x64xf32>
    %180 = vector.extract_strided_slice %172 {offsets = [0, 128], sizes = [8, 64], strides = [1, 1]} : vector<8x192xf32> to vector<8x64xf32>
    %181 = math.tanh %179 : vector<8x64xf32>
    %182 = arith.mulf %180, %181 : vector<8x64xf32>
    %c56_45 = arith.constant 56 : index
    %c0_46 = arith.constant 0 : index
    %183 = vector.load %arg12[%c56_45, %c0_46] : memref<64x128xf32, #tpu.memory_space<vmem>>, vector<8x64xf32>
    tpu.vector_store %arg12[%c56_45, %c0_46], %182 {strides = array<i32>} : memref<64x128xf32, #tpu.memory_space<vmem>>, vector<8x64xf32>,
    %c0_47 = arith.constant 0 : index
    %c64_48 = arith.constant 64 : index
    %184 = vector.load %arg12[%c0_47, %c64_48] : memref<64x128xf32, #tpu.memory_space<vmem>>, vector<8x64xf32>
    tpu.vector_store %arg12[%c0_47, %c64_48], %182 {strides = array<i32>} : memref<64x128xf32, #tpu.memory_space<vmem>>, vector<8x64xf32>,
    %c0_49 = arith.constant 0 : index
    %c0_50 = arith.constant 0 : index
    %185 = vector.load %arg12[%c0_49, %c0_50] : memref<64x128xf32, #tpu.memory_space<vmem>>, vector<64x128xf32>
    %186 = arith.truncf %185 : vector<64x128xf32> to vector<64x128xbf16>
    %c0_51 = arith.constant 0 : index
    %c0_52 = arith.constant 0 : index
    %187 = vector.load %arg5[%c0_51, %c0_52] : memref<128x256xbf16, #tpu.memory_space<vmem>>, vector<128x256xbf16>
    %cst_53 = arith.constant dense<0.000000e+00> : vector<64x256xf32>
    %188 = tpu.matmul %186, %187, %cst_53 {dimension_numbers = #tpu.dot_dimension_numbers<[1], [0], [0], [1], [0, 0, 1, 1], [], []>} : vector<64x128xbf16>, vector<128x256xbf16>, vector<64x256xf32> -> vector<64x256xf32>
    %c0_54 = arith.constant 0 : index
    %c0_55 = arith.constant 0 : index
    %189 = vector.load %arg7[%c0_54, %c0_55] : memref<1x256xf32, #tpu.memory_space<vmem>>, vector<1x256xf32>
    %190 = vector.broadcast %189 : vector<1x256xf32> to vector<64x256xf32>
    %191 = arith.addf %188, %190 : vector<64x256xf32>
    %c0_56 = arith.constant 0 : index
    %c0_57 = arith.constant 0 : index
    %192 = vector.load %arg6[%c0_56, %c0_57] : memref<64x256xbf16, #tpu.memory_space<vmem>>, vector<64x256xbf16>
    %cst_58 = arith.constant 0.000000e+00 : f32
    %193 = vector.broadcast %cst_58 : f32 to vector<8x64xf32>
    %cst_59 = arith.constant 0.000000e+00 : f32
    %194 = vector.broadcast %cst_59 : f32 to vector<8x64xf32>
    %195 = vector.extract_strided_slice %191 {offsets = [0, 0], sizes = [8, 256], strides = [1, 1]} : vector<64x256xf32> to vector<8x256xf32>
    %196 = arith.truncf %193 : vector<8x64xf32> to vector<8x64xbf16>
    %cst_60 = arith.constant dense<0.000000e+00> : vector<8x256xf32>
    %197 = tpu.matmul %196, %192, %cst_60 {dimension_numbers = #tpu.dot_dimension_numbers<[1], [0], [0], [1], [0, 0, 1, 1], [], []>} : vector<8x64xbf16>, vector<64x256xbf16>, vector<8x256xf32> -> vector<8x256xf32>
    %198 = arith.addf %195, %197 : vector<8x256xf32>
    %199 = vector.extract_strided_slice %198 {offsets = [0, 0], sizes = [8, 192], strides = [1, 1]} : vector<8x256xf32> to vector<8x192xf32>
    %200 = arith.negf %199 : vector<8x192xf32>
    %201 = math.exp %200 : vector<8x192xf32>
    %cst_61 = arith.constant 1.000000e+00 : f32
    %202 = vector.broadcast %cst_61 : f32 to vector<8x192xf32>
    %203 = arith.addf %202, %201 : vector<8x192xf32>
    %204 = arith.divf %202, %203 : vector<8x192xf32>
    %205 = vector.extract_strided_slice %198 {offsets = [0, 192], sizes = [8, 64], strides = [1, 1]} : vector<8x256xf32> to vector<8x64xf32>
    %206 = math.tanh %205 : vector<8x64xf32>
    %207 = vector.extract_strided_slice %204 {offsets = [0, 64], sizes = [8, 64], strides = [1, 1]} : vector<8x192xf32> to vector<8x64xf32>
    %208 = arith.mulf %207, %194 : vector<8x64xf32>
    %209 = vector.extract_strided_slice %204 {offsets = [0, 0], sizes = [8, 64], strides = [1, 1]} : vector<8x192xf32> to vector<8x64xf32>
    %210 = arith.mulf %209, %206 : vector<8x64xf32>
    %211 = arith.addf %208, %210 : vector<8x64xf32>
    %212 = vector.extract_strided_slice %204 {offsets = [0, 128], sizes = [8, 64], strides = [1, 1]} : vector<8x192xf32> to vector<8x64xf32>
    %213 = math.tanh %211 : vector<8x64xf32>
    %214 = arith.mulf %212, %213 : vector<8x64xf32>
    %215 = vector.extract_strided_slice %191 {offsets = [8, 0], sizes = [8, 256], strides = [1, 1]} : vector<64x256xf32> to vector<8x256xf32>
    %216 = arith.truncf %214 : vector<8x64xf32> to vector<8x64xbf16>
    %cst_62 = arith.constant dense<0.000000e+00> : vector<8x256xf32>
    %217 = tpu.matmul %216, %192, %cst_62 {dimension_numbers = #tpu.dot_dimension_numbers<[1], [0], [0], [1], [0, 0, 1, 1], [], []>} : vector<8x64xbf16>, vector<64x256xbf16>, vector<8x256xf32> -> vector<8x256xf32>
    %218 = arith.addf %215, %217 : vector<8x256xf32>
    %219 = vector.extract_strided_slice %218 {offsets = [0, 0], sizes = [8, 192], strides = [1, 1]} : vector<8x256xf32> to vector<8x192xf32>
    %220 = arith.negf %219 : vector<8x192xf32>
    %221 = math.exp %220 : vector<8x192xf32>
    %cst_63 = arith.constant 1.000000e+00 : f32
    %222 = vector.broadcast %cst_63 : f32 to vector<8x192xf32>
    %223 = arith.addf %222, %221 : vector<8x192xf32>
    %224 = arith.divf %222, %223 : vector<8x192xf32>
    %225 = vector.extract_strided_slice %218 {offsets = [0, 192], sizes = [8, 64], strides = [1, 1]} : vector<8x256xf32> to vector<8x64xf32>
    %226 = math.tanh %225 : vector<8x64xf32>
    %227 = vector.extract_strided_slice %224 {offsets = [0, 64], sizes = [8, 64], strides = [1, 1]} : vector<8x192xf32> to vector<8x64xf32>
    %228 = arith.mulf %227, %211 : vector<8x64xf32>
    %229 = vector.extract_strided_slice %224 {offsets = [0, 0], sizes = [8, 64], strides = [1, 1]} : vector<8x192xf32> to vector<8x64xf32>
    %230 = arith.mulf %229, %226 : vector<8x64xf32>
    %231 = arith.addf %228, %230 : vector<8x64xf32>
    %232 = vector.extract_strided_slice %224 {offsets = [0, 128], sizes = [8, 64], strides = [1, 1]} : vector<8x192xf32> to vector<8x64xf32>
    %233 = math.tanh %231 : vector<8x64xf32>
    %234 = arith.mulf %232, %233 : vector<8x64xf32>
    %235 = vector.extract_strided_slice %191 {offsets = [16, 0], sizes = [8, 256], strides = [1, 1]} : vector<64x256xf32> to vector<8x256xf32>
    %236 = arith.truncf %234 : vector<8x64xf32> to vector<8x64xbf16>
    %cst_64 = arith.constant dense<0.000000e+00> : vector<8x256xf32>
    %237 = tpu.matmul %236, %192, %cst_64 {dimension_numbers = #tpu.dot_dimension_numbers<[1], [0], [0], [1], [0, 0, 1, 1], [], []>} : vector<8x64xbf16>, vector<64x256xbf16>, vector<8x256xf32> -> vector<8x256xf32>
    %238 = arith.addf %235, %237 : vector<8x256xf32>
    %239 = vector.extract_strided_slice %238 {offsets = [0, 0], sizes = [8, 192], strides = [1, 1]} : vector<8x256xf32> to vector<8x192xf32>
    %240 = arith.negf %239 : vector<8x192xf32>
    %241 = math.exp %240 : vector<8x192xf32>
    %cst_65 = arith.constant 1.000000e+00 : f32
    %242 = vector.broadcast %cst_65 : f32 to vector<8x192xf32>
    %243 = arith.addf %242, %241 : vector<8x192xf32>
    %244 = arith.divf %242, %243 : vector<8x192xf32>
    %245 = vector.extract_strided_slice %238 {offsets = [0, 192], sizes = [8, 64], strides = [1, 1]} : vector<8x256xf32> to vector<8x64xf32>
    %246 = math.tanh %245 : vector<8x64xf32>
    %247 = vector.extract_strided_slice %244 {offsets = [0, 64], sizes = [8, 64], strides = [1, 1]} : vector<8x192xf32> to vector<8x64xf32>
    %248 = arith.mulf %247, %231 : vector<8x64xf32>
    %249 = vector.extract_strided_slice %244 {offsets = [0, 0], sizes = [8, 64], strides = [1, 1]} : vector<8x192xf32> to vector<8x64xf32>
    %250 = arith.mulf %249, %246 : vector<8x64xf32>
    %251 = arith.addf %248, %250 : vector<8x64xf32>
    %252 = vector.extract_strided_slice %244 {offsets = [0, 128], sizes = [8, 64], strides = [1, 1]} : vector<8x192xf32> to vector<8x64xf32>
    %253 = math.tanh %251 : vector<8x64xf32>
    %254 = arith.mulf %252, %253 : vector<8x64xf32>
    %255 = vector.extract_strided_slice %191 {offsets = [24, 0], sizes = [8, 256], strides = [1, 1]} : vector<64x256xf32> to vector<8x256xf32>
    %256 = arith.truncf %254 : vector<8x64xf32> to vector<8x64xbf16>
    %cst_66 = arith.constant dense<0.000000e+00> : vector<8x256xf32>
    %257 = tpu.matmul %256, %192, %cst_66 {dimension_numbers = #tpu.dot_dimension_numbers<[1], [0], [0], [1], [0, 0, 1, 1], [], []>} : vector<8x64xbf16>, vector<64x256xbf16>, vector<8x256xf32> -> vector<8x256xf32>
    %258 = arith.addf %255, %257 : vector<8x256xf32>
    %259 = vector.extract_strided_slice %258 {offsets = [0, 0], sizes = [8, 192], strides = [1, 1]} : vector<8x256xf32> to vector<8x192xf32>
    %260 = arith.negf %259 : vector<8x192xf32>
    %261 = math.exp %260 : vector<8x192xf32>
    %cst_67 = arith.constant 1.000000e+00 : f32
    %262 = vector.broadcast %cst_67 : f32 to vector<8x192xf32>
    %263 = arith.addf %262, %261 : vector<8x192xf32>
    %264 = arith.divf %262, %263 : vector<8x192xf32>
    %265 = vector.extract_strided_slice %258 {offsets = [0, 192], sizes = [8, 64], strides = [1, 1]} : vector<8x256xf32> to vector<8x64xf32>
    %266 = math.tanh %265 : vector<8x64xf32>
    %267 = vector.extract_strided_slice %264 {offsets = [0, 64], sizes = [8, 64], strides = [1, 1]} : vector<8x192xf32> to vector<8x64xf32>
    %268 = arith.mulf %267, %251 : vector<8x64xf32>
    %269 = vector.extract_strided_slice %264 {offsets = [0, 0], sizes = [8, 64], strides = [1, 1]} : vector<8x192xf32> to vector<8x64xf32>
    %270 = arith.mulf %269, %266 : vector<8x64xf32>
    %271 = arith.addf %268, %270 : vector<8x64xf32>
    %272 = vector.extract_strided_slice %264 {offsets = [0, 128], sizes = [8, 64], strides = [1, 1]} : vector<8x192xf32> to vector<8x64xf32>
    %273 = math.tanh %271 : vector<8x64xf32>
    %274 = arith.mulf %272, %273 : vector<8x64xf32>
    %275 = vector.extract_strided_slice %191 {offsets = [32, 0], sizes = [8, 256], strides = [1, 1]} : vector<64x256xf32> to vector<8x256xf32>
    %276 = arith.truncf %274 : vector<8x64xf32> to vector<8x64xbf16>
    %cst_68 = arith.constant dense<0.000000e+00> : vector<8x256xf32>
    %277 = tpu.matmul %276, %192, %cst_68 {dimension_numbers = #tpu.dot_dimension_numbers<[1], [0], [0], [1], [0, 0, 1, 1], [], []>} : vector<8x64xbf16>, vector<64x256xbf16>, vector<8x256xf32> -> vector<8x256xf32>
    %278 = arith.addf %275, %277 : vector<8x256xf32>
    %279 = vector.extract_strided_slice %278 {offsets = [0, 0], sizes = [8, 192], strides = [1, 1]} : vector<8x256xf32> to vector<8x192xf32>
    %280 = arith.negf %279 : vector<8x192xf32>
    %281 = math.exp %280 : vector<8x192xf32>
    %cst_69 = arith.constant 1.000000e+00 : f32
    %282 = vector.broadcast %cst_69 : f32 to vector<8x192xf32>
    %283 = arith.addf %282, %281 : vector<8x192xf32>
    %284 = arith.divf %282, %283 : vector<8x192xf32>
    %285 = vector.extract_strided_slice %278 {offsets = [0, 192], sizes = [8, 64], strides = [1, 1]} : vector<8x256xf32> to vector<8x64xf32>
    %286 = math.tanh %285 : vector<8x64xf32>
    %287 = vector.extract_strided_slice %284 {offsets = [0, 64], sizes = [8, 64], strides = [1, 1]} : vector<8x192xf32> to vector<8x64xf32>
    %288 = arith.mulf %287, %271 : vector<8x64xf32>
    %289 = vector.extract_strided_slice %284 {offsets = [0, 0], sizes = [8, 64], strides = [1, 1]} : vector<8x192xf32> to vector<8x64xf32>
    %290 = arith.mulf %289, %286 : vector<8x64xf32>
    %291 = arith.addf %288, %290 : vector<8x64xf32>
    %292 = vector.extract_strided_slice %284 {offsets = [0, 128], sizes = [8, 64], strides = [1, 1]} : vector<8x192xf32> to vector<8x64xf32>
    %293 = math.tanh %291 : vector<8x64xf32>
    %294 = arith.mulf %292, %293 : vector<8x64xf32>
    %295 = vector.extract_strided_slice %191 {offsets = [40, 0], sizes = [8, 256], strides = [1, 1]} : vector<64x256xf32> to vector<8x256xf32>
    %296 = arith.truncf %294 : vector<8x64xf32> to vector<8x64xbf16>
    %cst_70 = arith.constant dense<0.000000e+00> : vector<8x256xf32>
    %297 = tpu.matmul %296, %192, %cst_70 {dimension_numbers = #tpu.dot_dimension_numbers<[1], [0], [0], [1], [0, 0, 1, 1], [], []>} : vector<8x64xbf16>, vector<64x256xbf16>, vector<8x256xf32> -> vector<8x256xf32>
    %298 = arith.addf %295, %297 : vector<8x256xf32>
    %299 = vector.extract_strided_slice %298 {offsets = [0, 0], sizes = [8, 192], strides = [1, 1]} : vector<8x256xf32> to vector<8x192xf32>
    %300 = arith.negf %299 : vector<8x192xf32>
    %301 = math.exp %300 : vector<8x192xf32>
    %cst_71 = arith.constant 1.000000e+00 : f32
    %302 = vector.broadcast %cst_71 : f32 to vector<8x192xf32>
    %303 = arith.addf %302, %301 : vector<8x192xf32>
    %304 = arith.divf %302, %303 : vector<8x192xf32>
    %305 = vector.extract_strided_slice %298 {offsets = [0, 192], sizes = [8, 64], strides = [1, 1]} : vector<8x256xf32> to vector<8x64xf32>
    %306 = math.tanh %305 : vector<8x64xf32>
    %307 = vector.extract_strided_slice %304 {offsets = [0, 64], sizes = [8, 64], strides = [1, 1]} : vector<8x192xf32> to vector<8x64xf32>
    %308 = arith.mulf %307, %291 : vector<8x64xf32>
    %309 = vector.extract_strided_slice %304 {offsets = [0, 0], sizes = [8, 64], strides = [1, 1]} : vector<8x192xf32> to vector<8x64xf32>
    %310 = arith.mulf %309, %306 : vector<8x64xf32>
    %311 = arith.addf %308, %310 : vector<8x64xf32>
    %312 = vector.extract_strided_slice %304 {offsets = [0, 128], sizes = [8, 64], strides = [1, 1]} : vector<8x192xf32> to vector<8x64xf32>
    %313 = math.tanh %311 : vector<8x64xf32>
    %314 = arith.mulf %312, %313 : vector<8x64xf32>
    %315 = vector.extract_strided_slice %191 {offsets = [48, 0], sizes = [8, 256], strides = [1, 1]} : vector<64x256xf32> to vector<8x256xf32>
    %316 = arith.truncf %314 : vector<8x64xf32> to vector<8x64xbf16>
    %cst_72 = arith.constant dense<0.000000e+00> : vector<8x256xf32>
    %317 = tpu.matmul %316, %192, %cst_72 {dimension_numbers = #tpu.dot_dimension_numbers<[1], [0], [0], [1], [0, 0, 1, 1], [], []>} : vector<8x64xbf16>, vector<64x256xbf16>, vector<8x256xf32> -> vector<8x256xf32>
    %318 = arith.addf %315, %317 : vector<8x256xf32>
    %319 = vector.extract_strided_slice %318 {offsets = [0, 0], sizes = [8, 192], strides = [1, 1]} : vector<8x256xf32> to vector<8x192xf32>
    %320 = arith.negf %319 : vector<8x192xf32>
    %321 = math.exp %320 : vector<8x192xf32>
    %cst_73 = arith.constant 1.000000e+00 : f32
    %322 = vector.broadcast %cst_73 : f32 to vector<8x192xf32>
    %323 = arith.addf %322, %321 : vector<8x192xf32>
    %324 = arith.divf %322, %323 : vector<8x192xf32>
    %325 = vector.extract_strided_slice %318 {offsets = [0, 192], sizes = [8, 64], strides = [1, 1]} : vector<8x256xf32> to vector<8x64xf32>
    %326 = math.tanh %325 : vector<8x64xf32>
    %327 = vector.extract_strided_slice %324 {offsets = [0, 64], sizes = [8, 64], strides = [1, 1]} : vector<8x192xf32> to vector<8x64xf32>
    %328 = arith.mulf %327, %311 : vector<8x64xf32>
    %329 = vector.extract_strided_slice %324 {offsets = [0, 0], sizes = [8, 64], strides = [1, 1]} : vector<8x192xf32> to vector<8x64xf32>
    %330 = arith.mulf %329, %326 : vector<8x64xf32>
    %331 = arith.addf %328, %330 : vector<8x64xf32>
    %332 = vector.extract_strided_slice %324 {offsets = [0, 128], sizes = [8, 64], strides = [1, 1]} : vector<8x192xf32> to vector<8x64xf32>
    %333 = math.tanh %331 : vector<8x64xf32>
    %334 = arith.mulf %332, %333 : vector<8x64xf32>
    %335 = vector.extract_strided_slice %191 {offsets = [56, 0], sizes = [8, 256], strides = [1, 1]} : vector<64x256xf32> to vector<8x256xf32>
    %336 = arith.truncf %334 : vector<8x64xf32> to vector<8x64xbf16>
    %cst_74 = arith.constant dense<0.000000e+00> : vector<8x256xf32>
    %337 = tpu.matmul %336, %192, %cst_74 {dimension_numbers = #tpu.dot_dimension_numbers<[1], [0], [0], [1], [0, 0, 1, 1], [], []>} : vector<8x64xbf16>, vector<64x256xbf16>, vector<8x256xf32> -> vector<8x256xf32>
    %338 = arith.addf %335, %337 : vector<8x256xf32>
    %339 = vector.extract_strided_slice %338 {offsets = [0, 0], sizes = [8, 192], strides = [1, 1]} : vector<8x256xf32> to vector<8x192xf32>
    %340 = arith.negf %339 : vector<8x192xf32>
    %341 = math.exp %340 : vector<8x192xf32>
    %cst_75 = arith.constant 1.000000e+00 : f32
    %342 = vector.broadcast %cst_75 : f32 to vector<8x192xf32>
    %343 = arith.addf %342, %341 : vector<8x192xf32>
    %344 = arith.divf %342, %343 : vector<8x192xf32>
    %345 = vector.extract_strided_slice %338 {offsets = [0, 192], sizes = [8, 64], strides = [1, 1]} : vector<8x256xf32> to vector<8x64xf32>
    %346 = math.tanh %345 : vector<8x64xf32>
    %347 = vector.extract_strided_slice %344 {offsets = [0, 64], sizes = [8, 64], strides = [1, 1]} : vector<8x192xf32> to vector<8x64xf32>
    %348 = arith.mulf %347, %331 : vector<8x64xf32>
    %349 = vector.extract_strided_slice %344 {offsets = [0, 0], sizes = [8, 64], strides = [1, 1]} : vector<8x192xf32> to vector<8x64xf32>
    %350 = arith.mulf %349, %346 : vector<8x64xf32>
    %351 = arith.addf %348, %350 : vector<8x64xf32>
    %352 = vector.extract_strided_slice %344 {offsets = [0, 128], sizes = [8, 64], strides = [1, 1]} : vector<8x192xf32> to vector<8x64xf32>
    %353 = math.tanh %351 : vector<8x64xf32>
    %354 = arith.mulf %352, %353 : vector<8x64xf32>
    %355 = vector.extract_strided_slice %354 {offsets = [0, 0], sizes = [8, 32], strides = [1, 1]} : vector<8x64xf32> to vector<8x32xf32>
    %c0_76 = arith.constant 0 : index
    %c0_77 = arith.constant 0 : index
    %356 = vector.load %arg8[%c0_76, %c0_77] : memref<32x128xf32, #tpu.memory_space<vmem>>, vector<32x128xf32>
    %cst_78 = arith.constant dense<0.000000e+00> : vector<8x128xf32>
    %357 = tpu.matmul %355, %356, %cst_78 {dimension_numbers = #tpu.dot_dimension_numbers<[1], [0], [0], [1], [0, 0, 1, 1], [], []>} : vector<8x32xf32>, vector<32x128xf32>, vector<8x128xf32> -> vector<8x128xf32>
    %358 = vector.extract_strided_slice %214 {offsets = [0, 32], sizes = [8, 32], strides = [1, 1]} : vector<8x64xf32> to vector<8x32xf32>
    %c0_79 = arith.constant 0 : index
    %c0_80 = arith.constant 0 : index
    %359 = vector.load %arg9[%c0_79, %c0_80] : memref<32x128xf32, #tpu.memory_space<vmem>>, vector<32x128xf32>
    %cst_81 = arith.constant dense<0.000000e+00> : vector<8x128xf32>
    %360 = tpu.matmul %358, %359, %cst_81 {dimension_numbers = #tpu.dot_dimension_numbers<[1], [0], [0], [1], [0, 0, 1, 1], [], []>} : vector<8x32xf32>, vector<32x128xf32>, vector<8x128xf32> -> vector<8x128xf32>
    %361 = arith.addf %357, %360 : vector<8x128xf32>
    %c0_82 = arith.constant 0 : index
    %c0_83 = arith.constant 0 : index
    %362 = vector.load %arg10[%c0_82, %c0_83] : memref<1x128xf32, #tpu.memory_space<vmem>>, vector<1x128xf32>
    %363 = vector.broadcast %362 : vector<1x128xf32> to vector<8x128xf32>
    %364 = arith.addf %361, %363 : vector<8x128xf32>
    %c0_84 = arith.constant 0 : index
    %c0_85 = arith.constant 0 : index
    %365 = vector.load %arg11[%c0_84, %c0_85] : memref<8x128xf32, #tpu.memory_space<vmem>>, vector<8x128xf32>
    tpu.vector_store %arg11[%c0_84, %c0_85], %364 {strides = array<i32>} : memref<8x128xf32, #tpu.memory_space<vmem>>, vector<8x128xf32>,
    return
  }
  func.func @transform_0(%arg0: i32) -> (i32, i32) {
    %c0_i32 = arith.constant 0 : i32
    %c0_i32_0 = arith.constant 0 : i32
    return %arg0, %c0_i32 : i32, i32
  }
  func.func @transform_1(%arg0: i32) -> (i32, i32) {
    %c0_i32 = arith.constant 0 : i32
    %c0_i32_0 = arith.constant 0 : i32
    %c0_i32_1 = arith.constant 0 : i32
    return %c0_i32, %c0_i32_0 : i32, i32
  }
  func.func @transform_2(%arg0: i32) -> (i32, i32) {
    %c0_i32 = arith.constant 0 : i32
    %c0_i32_0 = arith.constant 0 : i32
    %c0_i32_1 = arith.constant 0 : i32
    return %c0_i32, %c0_i32_0 : i32, i32
  }
  func.func @transform_3(%arg0: i32) -> (i32, i32) {
    %c0_i32 = arith.constant 0 : i32
    %c0_i32_0 = arith.constant 0 : i32
    %c0_i32_1 = arith.constant 0 : i32
    return %c0_i32, %c0_i32_0 : i32, i32
  }
  func.func @transform_4(%arg0: i32) -> (i32, i32) {
    %c0_i32 = arith.constant 0 : i32
    %c0_i32_0 = arith.constant 0 : i32
    %c0_i32_1 = arith.constant 0 : i32
    return %c0_i32, %c0_i32_0 : i32, i32
  }
  func.func @transform_5(%arg0: i32) -> (i32, i32) {
    %c0_i32 = arith.constant 0 : i32
    %c0_i32_0 = arith.constant 0 : i32
    %c0_i32_1 = arith.constant 0 : i32
    return %c0_i32, %c0_i32_0 : i32, i32
  }
  func.func @transform_6(%arg0: i32) -> (i32, i32) {
    %c0_i32 = arith.constant 0 : i32
    %c0_i32_0 = arith.constant 0 : i32
    %c0_i32_1 = arith.constant 0 : i32
    return %c0_i32, %c0_i32_0 : i32, i32
  }
  func.func @transform_7(%arg0: i32) -> (i32, i32) {
    %c0_i32 = arith.constant 0 : i32
    %c0_i32_0 = arith.constant 0 : i32
    %c0_i32_1 = arith.constant 0 : i32
    return %c0_i32, %c0_i32_0 : i32, i32
  }
  func.func @transform_8(%arg0: i32) -> (i32, i32) {
    %c0_i32 = arith.constant 0 : i32
    %c0_i32_0 = arith.constant 0 : i32
    %c0_i32_1 = arith.constant 0 : i32
    return %c0_i32, %c0_i32_0 : i32, i32
  }
  func.func @transform_9(%arg0: i32) -> (i32, i32) {
    %c0_i32 = arith.constant 0 : i32
    %c0_i32_0 = arith.constant 0 : i32
    %c0_i32_1 = arith.constant 0 : i32
    return %c0_i32, %c0_i32_0 : i32, i32
  }
  func.func @transform_10(%arg0: i32) -> (i32, i32) {
    %c0_i32 = arith.constant 0 : i32
    %c0_i32_0 = arith.constant 0 : i32
    return %arg0, %c0_i32 : i32, i32
  }
}

</mosaic_0001>

<bundles_post_ra>
// kernel: brnn_forward.1
= control target key start
LH: loop header
LB: loop body
LE: loop exit
PB: predicated region body
PF: predicated region fallthrough
CT: control target
= control target key end

     0   :  { %15 = vsyncpa [#allocation4], 0  ;;  %s3327_s0 = inlined_call_operand.vmem [shape: bf16[64,56], index: 0, kind: input, shape index: {}]   ;;  %s3328_s1 = inlined_call_operand.hbm [shape: bf16[56,256], index: 1, kind: input, shape index: {}]   ;;  %s3329_s2 = inlined_call_operand.vmem [shape: bf16[64,256], index: 2, kind: input, shape index: {}]   ;;  %s3330_s3 = inlined_call_operand.vmem [shape: f32[1,256], index: 3, kind: input, shape index: {}]   ;;  %s3331_s4 = inlined_call_operand.vmem [shape: bf16[128,256], index: 4, kind: input, shape index: {}]   ;;  %s3332_s5 = inlined_call_operand.vmem [shape: bf16[64,256], index: 5, kind: input, shape index: {}]   ;;  %s3333_s6 = inlined_call_operand.vmem [shape: f32[1,256], index: 6, kind: input, shape index: {}]   ;;  %s3334_s7 = inlined_call_operand.hbm [shape: f32[32,128], index: 7, kind: input, shape index: {}]   ;;  %s3335_s8 = inlined_call_operand.hbm [shape: f32[32,128], index: 8, kind: input, shape index: {}]   ;;  %s3336_s9 = inlined_call_operand.vmem [shape: f32[1,128], index: 9, kind: input, shape index: {}]   ;;  %s3337_s10 = inlined_call_operand.vmem [shape: f32[8,128], index: 10, kind: output, shape index: {}]  }
   0x1   :  { %16 = vsyncpa [#allocation6], 0  ;;  %s46_s15 = sshll.u32 %s3334_s7, 4  ;;  %s2584_s16 = smov [#allocation5]   ;;  %s47_s15 = int_to_ptr.hbm [resolvable:$true] %s46_s15 }
   0x2   :  { %s48_s17 = sshll.u32 %s2584_s16, 4  ;;  %s23_s20 = sshll.u32 %s3328_s1, 4  ;;  %s49_s17 = int_to_ptr.vmem [resolvable:$true] %s48_s17  ;;  %s24_s20 = int_to_ptr.hbm [resolvable:$true] %s23_s20 }
   0x3   :  { %s2585_s21 = smov 128   ;;  %s2586_s22 = smov 8  }
   0x4   :  { %54 = dma.hbm_to_vmem [thread:$0]  %s47_s15, 512, %s49_s17, [#allocation6], %s2585_s21, %s2585_s21, %s2586_s22  }
   0x5   :  { %s2587_s23 = smov [#allocation3]   ;;  %s59_s27 = sshll.u32 %s3335_s8, 4  ;;  %s60_s27 = int_to_ptr.hbm [resolvable:$true] %s59_s27 }
   0x6   :  { %s25_s24 = sshll.u32 %s2587_s23, 4  ;;  %s2588_s7 = smov [#allocation7]   ;;  %s26_s24 = int_to_ptr.vmem [resolvable:$true] %s25_s24 }
   0x7   :  { %31 = dma.hbm_to_vmem [thread:$0]  %s24_s20, 896, %s26_s24, [#allocation4], %s2585_s21, %s2585_s21, %s2586_s22  }
   0x8   :  { %s61_s28 = sshll.u32 %s2588_s7, 4  ;;  %s62_s28 = int_to_ptr.vmem [resolvable:$true] %s61_s28 }
   0x9   :  { %67 = dma.hbm_to_vmem [thread:$0]  %s60_s27, 512, %s62_s28, [#allocation6], %s2585_s21, %s2585_s21, %s2586_s22  }
   0xa   :  { %2580 = dma.done.wait [#allocation4], 896  }
   0xb   :  { %2581 = vsyncadd [#allocation4], 4294966400 }
   0xc   :  { %2582 = dma.done.wait [#allocation6], 1024  }
   0xd   :  { %2583 = vsyncadd [#allocation6], 4294966272  ;;  %v2281_v0 = vld [vmem:[%s3329_s2 + $0x34] sm:$0xf]  ;;  %v2103_v1 = vld [vmem:[%s3329_s2 + $0x38] sm:$0xf0] }
   0xe   :  { %v97_v2 = vld [vmem:[#allocation3 + $0x30] sm:$0xff]  ;;  %v2662_v3 = vor.u32 %v2281_v0, %v2103_v1  ;;  %v2279_v5 = vld [vmem:[%s3329_s2 + $0x24] sm:$0xf]  ;;  %v2095_v6 = vld [vmem:[%s3329_s2 + $0x28] sm:$0xf0]  ;;  %vm172_vm0 = vcmask 1043456  }
   0xf   :  { %v144_v4 = vunpack.c.h.b16 %v97_v2  ;;  %v143_v7 = vunpack.c.l.b16 %v97_v2  ;;  %v2671_v9 = vor.u32 %v2279_v5, %v2095_v6  ;;  %v2273_v10 = vld [vmem:[#allocation3 + $0x24] sm:$0xf]  ;;  %v2063_v11 = vld [vmem:[#allocation3 + $0x28] sm:$0xf0]  ;;  %v2277_v13 = vld [vmem:[%s3329_s2 + $0x14] sm:$0xf] }
  0x10   :  { %306 = vmatpush.bf16.msra.mxu3 %v2662_v3  ;;  %v2087_v14 = vld [vmem:[%s3329_s2 + $0x18] sm:$0xf0]  ;;  %v2271_v16 = vld [vmem:[#allocation3 + $0x14] sm:$0xf]  ;;  %v2101_v18 = vld [vmem:[%s3329_s2 + $0x30] sm:$0xf]  ;;  %v2066_v20 = vor.u32 %v2273_v10, %v2063_v11 }
  0x11   :  { %v152_v8 = vpack.c.b16 %v144_v4, %v144_v4  ;;  %v151_v12 = vpack.c.b16 %v143_v7, %v143_v7  ;;  %v2055_v17 = vld [vmem:[#allocation3 + $0x18] sm:$0xf0]  ;;  %v2282_v19 = vld [vmem:[%s3329_s2 + $0x34] sm:$0xf0]  ;;  %v2093_v23 = vld [vmem:[%s3329_s2 + $0x20] sm:$0xf]  ;;  %v2696_v25 = vor.u32 %v2277_v13, %v2087_v14 }
  0x12   :  { %v2686_v21 = vor.u32 %v2282_v19, %v2101_v18  ;;  %v2280_v24 = vld [vmem:[%s3329_s2 + $0x24] sm:$0xf0]  ;;  %v2275_v26 = vld [vmem:[%s3329_s2 + $0x4] sm:$0xf]  ;;  %v2061_v27 = vld [vmem:[#allocation3 + $0x20] sm:$0xf]  ;;  %v2058_v36 = vor.u32 %v2271_v16, %v2055_v17 }
  0x13   :  { %v177_v15 = vsel %vm172_vm0, %v152_v8, 0  ;;  %v174_v22 = vsel %vm172_vm0, %v151_v12, 0  ;;  %v2274_v28 = vld [vmem:[#allocation3 + $0x24] sm:$0xf0]  ;;  %v2079_v29 = vld [vmem:[%s3329_s2 + $0x8] sm:$0xf0]  ;;  %v2705_v30 = vor.u32 %v2280_v24, %v2093_v23 }
  0x14   :  { %212 = vmatpush.bf16.msra.mxu1 %v177_v15  ;;  %307 = vmatpush.bf16.msra.mxu3 %v2671_v9  ;;  %v2062_v31 = vor.u32 %v2274_v28, %v2061_v27  ;;  %v2053_v32 = vld [vmem:[#allocation3 + $0x10] sm:$0xf]  ;;  %v2272_v33 = vld [vmem:[#allocation3 + $0x14] sm:$0xf0]  ;;  %v2714_v37 = vor.u32 %v2275_v26, %v2079_v29  ;;  %v2269_v38 = vld [vmem:[#allocation3 + $0x4] sm:$0xf] }
  0x15   :  { %183 = vmatpush.bf16.msra.mxu0 %v174_v22  ;;  %293 = vmatpush.bf16.msra.mxu2 %v2686_v21  ;;  %v2085_v34 = vld [vmem:[%s3329_s2 + $0x10] sm:$0xf]  ;;  %v2278_v35 = vld [vmem:[%s3329_s2 + $0x14] sm:$0xf0]  ;;  %v2047_v39 = vld [vmem:[#allocation3 + $0x8] sm:$0xf0]  ;;  %v2054_v40 = vor.u32 %v2272_v33, %v2053_v32 }
  0x16   :  { %v2717_v41 = vor.u32 %v2278_v35, %v2085_v34  ;;  %v2045_v42 = vld [vmem:[#allocation3] sm:$0xf]  ;;  %v2270_v43 = vld [vmem:[#allocation3 + $0x4] sm:$0xf0]  ;;  %v2050_v46 = vor.u32 %v2269_v38, %v2047_v39  ;;  %v2589_v50 = vmov 0   ;;  %vm159_vm1 = vcmask 457728  }
  0x17   :  { %v2077_v44 = vld [vmem:[%s3329_s2] sm:$0xf]  ;;  %v2276_v45 = vld [vmem:[%s3329_s2 + $0x4] sm:$0xf0]  ;;  %v2046_v47 = vor.u32 %v2270_v43, %v2045_v42  ;;  %s2590_s19 = smov 64   ;;  %vm285_vm10 = vcmask 523264  }
  0x18   :  { %213 = vmatpush.bf16.msra.mxu1 %v2066_v20  ;;  %308 = vmatpush.bf16.msra.mxu3 %v2696_v25  ;;  %v2727_v48 = vor.u32 %v2276_v45, %v2077_v44  ;;  %v2265_v49 = vld [vmem:[%s3327_s0] sm:$0xff] }
  0x19   :  { %184 = vmatpush.bf16.msra.mxu0 %v2062_v31  ;;  %294 = vmatpush.bf16.msra.mxu2 %v2705_v30  ;;  %v98_v51 = vld [vmem:[%s3330_s3] sm:$0x3] }
  0x1a   :  { %v2772_v52 = vperm.slane %v98_v51, 1  ;;  %v2776_v61 = vperm.slane %v98_v51, 0 }
  0x1c   :  { %214 = vmatpush.bf16.msra.mxu1 %v2058_v36  ;;  %309 = vmatpush.bf16.msra.mxu3 %v2714_v37 }
  0x1d   :  { %185 = vmatpush.bf16.msra.mxu0 %v2054_v40  ;;  %295 = vmatpush.bf16.msra.mxu2 %v2717_v41 }
  0x1f   :  { %310 = vmatmul.bf16.vlgmr.msra.gmra.mxu3 %v2589_v50 }
  0x20   :  { %401 = vmatpush.bf16.msrb.mxu3 %v2662_v3  ;;  %215 = vmatpush.bf16.msra.mxu1 %v2050_v46 }
  0x21   :  { %186 = vmatpush.bf16.msra.mxu0 %v2046_v47  ;;  %296 = vmatpush.bf16.msra.mxu2 %v2727_v48 }
  0x23   :  { %2071 = vmatmul.msk.bf16.vlgmr.msra.gmra.mxu1 %vm159_vm1, %v2265_v49 }
  0x24   :  { %683 = vmatpush.bf16.msrb.mxu1 %v2662_v3  ;;  %402 = vmatpush.bf16.msrb.mxu3 %v2671_v9 }
  0x25   :  { %388 = vmatpush.bf16.msrb.mxu2 %v2686_v21  ;;  %2067 = vmatmul.msk.bf16.vlgmr.msra.gmra.mxu0 %vm159_vm1, %v2265_v49 }
  0x26   :  { %297 = vmatmul.bf16.vlgmr.msra.gmra.mxu2 %v2589_v50  ;;  %670 = vmatpush.bf16.msrb.mxu0 %v2686_v21 }
  0x28   :  { %684 = vmatpush.bf16.msrb.mxu1 %v2671_v9  ;;  %403 = vmatpush.bf16.msrb.mxu3 %v2696_v25 }
  0x29   :  { %389 = vmatpush.bf16.msrb.mxu2 %v2705_v30 }
  0x2a   :  { %671 = vmatpush.bf16.msrb.mxu0 %v2705_v30 }
  0x2c   :  { %685 = vmatpush.bf16.msrb.mxu1 %v2696_v25  ;;  %404 = vmatpush.bf16.msrb.mxu3 %v2714_v37 }
  0x2d   :  { %390 = vmatpush.bf16.msrb.mxu2 %v2717_v41 }
  0x2e   :  { %672 = vmatpush.bf16.msrb.mxu0 %v2717_v41 }
  0x30   :  { %495 = vmatpush.bf16.msra.mxu3 %v2662_v3  ;;  %686 = vmatpush.bf16.msrb.mxu1 %v2714_v37 }
  0x31   :  { %391 = vmatpush.bf16.msrb.mxu2 %v2727_v48 }
  0x32   :  { %673 = vmatpush.bf16.msrb.mxu0 %v2727_v48 }
  0x34   :  { %871 = vmatpush.bf16.msra.mxu1 %v2662_v3  ;;  %496 = vmatpush.bf16.msra.mxu3 %v2671_v9 }
  0x35   :  { %482 = vmatpush.bf16.msra.mxu2 %v2686_v21 }
  0x36   :  { %858 = vmatpush.bf16.msra.mxu0 %v2686_v21 }
  0x38   :  { %872 = vmatpush.bf16.msra.mxu1 %v2671_v9  ;;  %497 = vmatpush.bf16.msra.mxu3 %v2696_v25 }
  0x39   :  { %483 = vmatpush.bf16.msra.mxu2 %v2705_v30 }
  0x3a   :  { %859 = vmatpush.bf16.msra.mxu0 %v2705_v30 }
  0x3c   :  { %873 = vmatpush.bf16.msra.mxu1 %v2696_v25  ;;  %498 = vmatpush.bf16.msra.mxu3 %v2714_v37 }
  0x3d   :  { %484 = vmatpush.bf16.msra.mxu2 %v2717_v41 }
  0x3e   :  { %860 = vmatpush.bf16.msra.mxu0 %v2717_v41 }
  0x40   :  { %874 = vmatpush.bf16.msra.mxu1 %v2714_v37 }
  0x41   :  { %485 = vmatpush.bf16.msra.mxu2 %v2727_v48 }
  0x42   :  { %861 = vmatpush.bf16.msra.mxu0 %v2727_v48 }
  0xa0   :  { %v217_v53 = vpop.f32.mrf.mxu1 }
  0xa1   :  { %v218_v54 = vadd.f32 %v217_v53, %v2772_v52 }
  0xa2   :  { %v311_v55 = vpop.f32.mrf.mxu3  ;;  %v188_v62 = vpop.f32.mrf.mxu0 }
  0xa3   :  { %v316_v56 = vadd.f32 %v311_v55, %v218_v54  ;;  %v189_v63 = vadd.f32 %v188_v62, %v2776_v61 }
  0xa5   :  { %2316 = vtanh.f32 %v316_v56  ;;  %v2108_v23 = vmul.f32 -1.442695, %v316_v56 }
  0xa8   :  { %v219_v43 = vpop.f32.mrf.mxu1 }
  0xa9   :  { %v298_v57 = vpop.f32.mrf.mxu2  ;;  %v220_v44 = vadd.f32 %v219_v43, %v2772_v52 }
  0xaa   :  { %v313_v58 = vpop.f32.mrf.mxu3  ;;  %v315_v0 = vadd.f32 %v298_v57, %v189_v63  ;;  %v190_v54 = vpop.f32.mrf.mxu0 }
  0xab   :  { %v2317_v59 = vpop.eup %2316  ;;  %v191_v55 = vadd.f32 %v190_v54, %v2776_v61 }
  0xac   :  { %358 = vrot.lane.b32.xlu0 %v2317_v59, %s2590_s19  ;;  %v2107_v1 = vmul.f32 -1.442695, %v315_v0 }
  0xae   :  { %2318 = vpow2.f32 %v2107_v1 }
  0xb1   :  { %v300_v60 = vpop.f32.mrf.mxu2 }
  0xb4   :  { %v2319_v2 = vpop.eup %2318 }
  0xb5   :  { %v323_v4 = vadd.f32 1.0, %v2319_v2 }
  0xb7   :  { %2320 = vrcp.f32 %v323_v4  ;;  %vm330_vm2 = vweird.f32 %v323_v4  ;;  %v336_v10 = vand.u32 2147483648, %v323_v4  ;;  %v334_v12 = vand.u32 2147483647, %v323_v4 }
  0xb9   :  { %v337_v13 = vor.u32 1.1754944e-38, %v336_v10  ;;  %vm335_vm5 = vcmp.eq.f32.partialorder %v334_v12, 8.507059e+37 }
  0xbd   :  { %v2321_v5 = vpop.eup %2320 }
  0xbe   :  { %v326_v6 = vmul.f32 %v2321_v5, %v323_v4  ;;  %vm331_vm3 = vweird.f32 %v2321_v5 }
  0xbf   :  { %vm332_vm4 = vmor %vm330_vm2, %vm331_vm3 }
  0xc0   :  { %v327_v7 = vsub.f32 1.0, %v326_v6 }
  0xc2   :  { %v328_v8 = vmul.f32 %v2321_v5, %v327_v7 }
  0xc4   :  { %v329_v11 = vadd.f32 %v2321_v5, %v328_v8 }
  0xc6   :  { %v333_v14 = vsel %vm332_vm4, %v2321_v5, %v329_v11 }
  0xc7   :  { %v338_v16 = vsel %vm335_vm5, %v337_v13, %v333_v14 }
  0xc8   :  { %v356_v18 = vmul.f32 0.0, %v338_v16 }
 0x11e   :  { %v359_v15 = vpop.permute.xlu0 %358 }
 0x11f   :  { %v361_v17 = vmul.f32 %v359_v15, %v338_v16 }
 0x121   :  { %363 = vrot.lane.b32.xlu0 %v361_v17, %s2590_s19 }
 0x193   :  { %v364_v19 = vpop.permute.xlu0 %363 }
 0x194   :  { %v2780_v20 = vadd.f32 %v364_v19, %v356_v18  ;;  %v2266_v18 = vld [vmem:[%s3327_s0 + $0x8] sm:$0xff] }
 0x195   :  { %2072 = vmatmul.msk.bf16.gmra.mxu1 %vm159_vm1, %v2266_v18  ;;  %2068 = vmatmul.msk.bf16.gmra.mxu0 %vm159_vm1, %v2266_v18 }
 0x196   :  { %2322 = vtanh.f32 %v2780_v20 }
 0x197   :  { %2324 = vpow2.f32 %v2108_v23 }
 0x19c   :  { %v2323_v22 = vpop.eup %2322 }
 0x19d   :  { %369 = vrot.lane.b32.xlu1 %v2323_v22, %s2590_s19  ;;  %v2325_v24 = vpop.eup %2324 }
 0x19e   :  { %v324_v26 = vadd.f32 1.0, %v2325_v24 }
 0x1a0   :  { %2326 = vrcp.f32 %v324_v26  ;;  %v351_v33 = vand.u32 2147483648, %v324_v26  ;;  %vm345_vm7 = vweird.f32 %v324_v26  ;;  %v349_v34 = vand.u32 2147483647, %v324_v26 }
 0x1a2   :  { %v352_v36 = vor.u32 1.1754944e-38, %v351_v33  ;;  %vm350_vm9 = vcmp.eq.f32.partialorder %v349_v34, 8.507059e+37 }
 0x1a6   :  { %v2327_v27 = vpop.eup %2326 }
 0x1a7   :  { %v341_v28 = vmul.f32 %v2327_v27, %v324_v26  ;;  %vm346_vm6 = vweird.f32 %v2327_v27 }
 0x1a8   :  { %vm347_vm8 = vmor %vm345_vm7, %vm346_vm6 }
 0x1a9   :  { %v342_v29 = vsub.f32 1.0, %v341_v28 }
 0x1ab   :  { %v343_v31 = vmul.f32 %v2327_v27, %v342_v29 }
 0x1ad   :  { %v344_v32 = vadd.f32 %v2327_v27, %v343_v31 }
 0x1af   :  { %v348_v35 = vsel %vm347_vm8, %v2327_v27, %v344_v32 }
 0x1b0   :  { %v353_v38 = vsel %vm350_vm9, %v352_v36, %v348_v35 }
 0x20f   :  { %v370_v39 = vpop.permute.xlu1 %369 }
 0x210   :  { %v2784_v40 = vmul.f32 %v370_v39, %v353_v38 }
 0x212   :  { %373 = vst.msk [vmem:[#allocation2] sm:$0xff] %vm285_vm10, %v2784_v40  ;;  %v380_v42 = vpack.c.bf16 %v2784_v40, %v2784_v40  ;;  %v222_v35 = vpop.f32.mrf.mxu1 }
 0x213   :  { %v223_v36 = vadd.f32 %v222_v35, %v2772_v52 }
 0x214   :  { %2109 = vmatmul.msk.bf16.vlgmr.msrb.gmra.mxu2 %vm285_vm10, %v380_v42  ;;  %2110 = vmatmul.msk.bf16.vlgmr.msrb.gmra.mxu3 %vm285_vm10, %v380_v42 }
 0x215   :  { %589 = vmatpush.bf16.msrb.mxu3 %v2662_v3  ;;  %576 = vmatpush.bf16.msrb.mxu2 %v2686_v21 }
 0x219   :  { %590 = vmatpush.bf16.msrb.mxu3 %v2671_v9  ;;  %577 = vmatpush.bf16.msrb.mxu2 %v2705_v30 }
 0x21d   :  { %591 = vmatpush.bf16.msrb.mxu3 %v2696_v25  ;;  %578 = vmatpush.bf16.msrb.mxu2 %v2717_v41 }
 0x221   :  { %592 = vmatpush.bf16.msrb.mxu3 %v2714_v37  ;;  %579 = vmatpush.bf16.msrb.mxu2 %v2727_v48 }
 0x297   :  { %v393_v45 = vpop.f32.mrf.mxu2  ;;  %v406_v46 = vpop.f32.mrf.mxu3 }
 0x298   :  { %v411_v47 = vadd.f32 %v406_v46, %v220_v44  ;;  %v410_v56 = vadd.f32 %v393_v45, %v191_v55  ;;  %v193_v46 = vpop.f32.mrf.mxu0 }
 0x29a   :  { %2328 = vtanh.f32 %v411_v47  ;;  %v2111_v57 = vmul.f32 -1.442695, %v410_v56  ;;  %v2112_v15 = vmul.f32 -1.442695, %v411_v47  ;;  %v194_v47 = vadd.f32 %v193_v46, %v2776_v61 }
 0x29c   :  { %2330 = vpow2.f32 %v2111_v57 }
 0x29f   :  { %v395_v49 = vpop.f32.mrf.mxu2  ;;  %v408_v51 = vpop.f32.mrf.mxu3 }
 0x2a0   :  { %v2329_v53 = vpop.eup %2328 }
 0x2a1   :  { %453 = vrot.lane.b32.xlu1 %v2329_v53, %s2590_s19 }
 0x2a2   :  { %v2331_v58 = vpop.eup %2330 }
 0x2a3   :  { %v418_v59 = vadd.f32 1.0, %v2331_v58 }
 0x2a5   :  { %2332 = vrcp.f32 %v418_v59  ;;  %v431_v2 = vand.u32 2147483648, %v418_v59  ;;  %vm425_vm12 = vweird.f32 %v418_v59  ;;  %v429_v4 = vand.u32 2147483647, %v418_v59 }
 0x2a7   :  { %v432_v6 = vor.u32 1.1754944e-38, %v431_v2  ;;  %vm430_vm14 = vcmp.eq.f32.partialorder %v429_v4, 8.507059e+37 }
 0x2ab   :  { %v2333_v60 = vpop.eup %2332 }
 0x2ac   :  { %v421_v62 = vmul.f32 %v2333_v60, %v418_v59  ;;  %vm426_vm11 = vweird.f32 %v2333_v60 }
 0x2ad   :  { %vm427_vm13 = vmor %vm425_vm12, %vm426_vm11 }
 0x2ae   :  { %v422_v63 = vsub.f32 1.0, %v421_v62 }
 0x2b0   :  { %v423_v0 = vmul.f32 %v2333_v60, %v422_v63 }
 0x2b2   :  { %v424_v1 = vadd.f32 %v2333_v60, %v423_v0 }
 0x2b4   :  { %v428_v5 = vsel %vm427_vm13, %v2333_v60, %v424_v1 }
 0x2b5   :  { %v433_v8 = vsel %vm430_vm14, %v432_v6, %v428_v5 }
 0x2b6   :  { %v451_v11 = vmul.f32 %v433_v8, %v2780_v20 }
 0x313   :  { %v454_v7 = vpop.permute.xlu1 %453 }
 0x314   :  { %v456_v10 = vmul.f32 %v454_v7, %v433_v8 }
 0x316   :  { %458 = vrot.lane.b32.xlu2 %v456_v10, %s2590_s19 }
 0x370   :  { %v459_v12 = vpop.permute.xlu2 %458 }
 0x371   :  { %v2805_v13 = vadd.f32 %v459_v12, %v451_v11 }
 0x373   :  { %2334 = vtanh.f32 %v2805_v13 }
 0x374   :  { %2336 = vpow2.f32 %v2112_v15 }
 0x379   :  { %v2335_v14 = vpop.eup %2334 }
 0x37a   :  { %464 = vrot.lane.b32.xlu2 %v2335_v14, %s2590_s19  ;;  %v2337_v16 = vpop.eup %2336 }
 0x37b   :  { %v419_v17 = vadd.f32 1.0, %v2337_v16 }
 0x37d   :  { %2338 = vrcp.f32 %v419_v17  ;;  %v446_v26 = vand.u32 2147483648, %v419_v17  ;;  %vm440_vm0 = vweird.f32 %v419_v17  ;;  %v444_v27 = vand.u32 2147483647, %v419_v17 }
 0x37f   :  { %v447_v29 = vor.u32 1.1754944e-38, %v446_v26  ;;  %vm445_vm3 = vcmp.eq.f32.partialorder %v444_v27, 8.507059e+37 }
 0x383   :  { %v2339_v19 = vpop.eup %2338 }
 0x384   :  { %v436_v20 = vmul.f32 %v2339_v19, %v419_v17  ;;  %vm441_vm15 = vweird.f32 %v2339_v19 }
 0x385   :  { %vm442_vm2 = vmor %vm440_vm0, %vm441_vm15 }
 0x386   :  { %v437_v22 = vsub.f32 1.0, %v436_v20 }
 0x388   :  { %v438_v23 = vmul.f32 %v2339_v19, %v437_v22 }
 0x38a   :  { %v439_v24 = vadd.f32 %v2339_v19, %v438_v23 }
 0x38c   :  { %v443_v28 = vsel %vm442_vm2, %v2339_v19, %v439_v24 }
 0x38d   :  { %v448_v31 = vsel %vm445_vm3, %v447_v29, %v443_v28  ;;  %v224_v28 = vpop.f32.mrf.mxu1 }
 0x38e   :  { %v225_v29 = vadd.f32 %v224_v28, %v2772_v52 }
 0x3d4   :  { %v465_v32 = vpop.permute.xlu2 %464 }
 0x3d5   :  { %v2814_v33 = vmul.f32 %v465_v32, %v448_v31 }
 0x3d7   :  { %468 = vst.msk [vmem:[#allocation2 + $0x8] sm:$0xff] %vm285_vm10, %v2814_v33  ;;  %v474_v34 = vpack.c.bf16 %v2814_v33, %v2814_v33 }
 0x3d9   :  { %2113 = vmatmul.msk.bf16.vlgmr.msra.gmra.mxu2 %vm285_vm10, %v474_v34  ;;  %2114 = vmatmul.msk.bf16.vlgmr.msra.gmra.mxu3 %vm285_vm10, %v474_v34 }
 0x3da   :  { %777 = vmatpush.bf16.msra.mxu3 %v2662_v3  ;;  %764 = vmatpush.bf16.msra.mxu2 %v2686_v21 }
 0x3de   :  { %778 = vmatpush.bf16.msra.mxu3 %v2671_v9  ;;  %765 = vmatpush.bf16.msra.mxu2 %v2705_v30 }
 0x3e2   :  { %779 = vmatpush.bf16.msra.mxu3 %v2696_v25  ;;  %766 = vmatpush.bf16.msra.mxu2 %v2717_v41 }
 0x3e6   :  { %780 = vmatpush.bf16.msra.mxu3 %v2714_v37  ;;  %767 = vmatpush.bf16.msra.mxu2 %v2727_v48 }
 0x45c   :  { %v487_v38 = vpop.f32.mrf.mxu2  ;;  %v500_v39 = vpop.f32.mrf.mxu3 }
 0x45d   :  { %v505_v42 = vadd.f32 %v500_v39, %v223_v36  ;;  %v504_v49 = vadd.f32 %v487_v38, %v194_v47 }
 0x45f   :  { %2340 = vtanh.f32 %v505_v42  ;;  %v2115_v51 = vmul.f32 -1.442695, %v504_v49  ;;  %v2116_v10 = vmul.f32 -1.442695, %v505_v42 }
 0x461   :  { %2342 = vpow2.f32 %v2115_v51 }
 0x464   :  { %v489_v43 = vpop.f32.mrf.mxu2  ;;  %v502_v44 = vpop.f32.mrf.mxu3 }
 0x465   :  { %v2341_v45 = vpop.eup %2340 }
 0x466   :  { %547 = vrot.lane.b32.xlu0 %v2341_v45, %s2590_s19 }
 0x467   :  { %v2343_v53 = vpop.eup %2342 }
 0x468   :  { %v512_v54 = vadd.f32 1.0, %v2343_v53 }
 0x46a   :  { %2344 = vrcp.f32 %v512_v54  ;;  %v525_v60 = vand.u32 2147483648, %v512_v54  ;;  %vm519_vm5 = vweird.f32 %v512_v54  ;;  %v523_v62 = vand.u32 2147483647, %v512_v54 }
 0x46c   :  { %v526_v0 = vor.u32 1.1754944e-38, %v525_v60  ;;  %vm524_vm7 = vcmp.eq.f32.partialorder %v523_v62, 8.507059e+37 }
 0x470   :  { %v2345_v55 = vpop.eup %2344 }
 0x471   :  { %v515_v56 = vmul.f32 %v2345_v55, %v512_v54  ;;  %vm520_vm4 = vweird.f32 %v2345_v55  ;;  %v2267_v54 = vld [vmem:[%s3327_s0 + $0x10] sm:$0xff] }
 0x472   :  { %vm521_vm6 = vmor %vm519_vm5, %vm520_vm4  ;;  %2073 = vmatmul.msk.bf16.gmra.mxu1 %vm159_vm1, %v2267_v54  ;;  %2069 = vmatmul.msk.bf16.gmra.mxu0 %vm159_vm1, %v2267_v54 }
 0x473   :  { %v516_v57 = vsub.f32 1.0, %v515_v56 }
 0x475   :  { %v517_v58 = vmul.f32 %v2345_v55, %v516_v57 }
 0x477   :  { %v518_v59 = vadd.f32 %v2345_v55, %v517_v58 }
 0x479   :  { %v522_v63 = vsel %vm521_vm6, %v2345_v55, %v518_v59  ;;  %v2268_v55 = vld [vmem:[%s3327_s0 + $0x18] sm:$0xff] }
 0x47a   :  { %v527_v2 = vsel %vm524_vm7, %v526_v0, %v522_v63 }
 0x47b   :  { %v545_v5 = vmul.f32 %v527_v2, %v2805_v13 }
 0x482   :  { %2074 = vmatmul.msk.bf16.gmra.mxu1 %vm159_vm1, %v2268_v55  ;;  %2070 = vmatmul.msk.bf16.gmra.mxu0 %vm159_vm1, %v2268_v55 }
 0x4d8   :  { %v548_v1 = vpop.permute.xlu0 %547 }
 0x4d9   :  { %v550_v4 = vmul.f32 %v548_v1, %v527_v2 }
 0x4db   :  { %552 = vrot.lane.b32.xlu1 %v550_v4, %s2590_s19 }
 0x54d   :  { %v553_v6 = vpop.permute.xlu1 %552 }
 0x54e   :  { %v2835_v7 = vadd.f32 %v553_v6, %v545_v5 }
 0x550   :  { %2346 = vtanh.f32 %v2835_v7 }
 0x551   :  { %2348 = vpow2.f32 %v2116_v10 }
 0x556   :  { %v2347_v8 = vpop.eup %2346 }
 0x557   :  { %558 = vrot.lane.b32.xlu2 %v2347_v8, %s2590_s19  ;;  %v2349_v11 = vpop.eup %2348 }
 0x558   :  { %v513_v12 = vadd.f32 1.0, %v2349_v11 }
 0x55a   :  { %2350 = vrcp.f32 %v513_v12  ;;  %v540_v13 = vand.u32 2147483648, %v513_v12  ;;  %vm534_vm9 = vweird.f32 %v513_v12  ;;  %v538_v19 = vand.u32 2147483647, %v513_v12 }
 0x55c   :  { %v541_v22 = vor.u32 1.1754944e-38, %v540_v13  ;;  %vm539_vm12 = vcmp.eq.f32.partialorder %v538_v19, 8.507059e+37 }
 0x560   :  { %v2351_v14 = vpop.eup %2350 }
 0x561   :  { %v530_v15 = vmul.f32 %v2351_v14, %v513_v12  ;;  %vm535_vm8 = vweird.f32 %v2351_v14 }
 0x562   :  { %vm536_vm11 = vmor %vm534_vm9, %vm535_vm8 }
 0x563   :  { %v531_v16 = vsub.f32 1.0, %v530_v15 }
 0x565   :  { %v532_v17 = vmul.f32 %v2351_v14, %v531_v16 }
 0x567   :  { %v533_v18 = vadd.f32 %v2351_v14, %v532_v17  ;;  %v227_v17 = vpop.f32.mrf.mxu1 }
 0x569   :  { %v537_v20 = vsel %vm536_vm11, %v2351_v14, %v533_v18 }
 0x56a   :  { %v542_v23 = vsel %vm539_vm12, %v541_v22, %v537_v20 }
 0x56f   :  { %v2884_v13 = vpop.f32.mrf.mxu1 }
 0x577   :  { %v2888_v20 = vpop.f32.mrf.mxu1 }
 0x5b1   :  { %v559_v24 = vpop.permute.xlu2 %558 }
 0x5b2   :  { %v2839_v26 = vmul.f32 %v559_v24, %v542_v23  ;;  %v2892_v23 = vpop.f32.mrf.mxu1 }
 0x5b4   :  { %562 = vst.msk [vmem:[#allocation2 + $0x10] sm:$0xff] %vm285_vm10, %v2839_v26  ;;  %v568_v27 = vpack.c.bf16 %v2839_v26, %v2839_v26 }
 0x5b6   :  { %2117 = vmatmul.msk.bf16.vlgmr.msrb.gmra.mxu2 %vm285_vm10, %v568_v27  ;;  %2118 = vmatmul.msk.bf16.vlgmr.msrb.gmra.mxu3 %vm285_vm10, %v568_v27  ;;  %v228_v27 = vadd.f32 %v227_v17, %v2772_v52 }
 0x5b7   :  { %965 = vmatpush.bf16.msrb.mxu3 %v2662_v3  ;;  %952 = vmatpush.bf16.msrb.mxu2 %v2686_v21 }
 0x5bb   :  { %966 = vmatpush.bf16.msrb.mxu3 %v2671_v9  ;;  %953 = vmatpush.bf16.msrb.mxu2 %v2705_v30  ;;  %v195_v30 = vpop.f32.mrf.mxu0 }
 0x5bf   :  { %967 = vmatpush.bf16.msrb.mxu3 %v2696_v25  ;;  %954 = vmatpush.bf16.msrb.mxu2 %v2717_v41  ;;  %v196_v25 = vadd.f32 %v195_v30, %v2776_v61 }
 0x5c3   :  { %968 = vmatpush.bf16.msrb.mxu3 %v2714_v37  ;;  %955 = vmatpush.bf16.msrb.mxu2 %v2727_v48  ;;  %v198_v16 = vpop.f32.mrf.mxu0 }
 0x5c4   :  { %v199_v24 = vadd.f32 %v198_v16, %v2776_v61 }
 0x5cb   :  { %v2882_v18 = vpop.f32.mrf.mxu0 }
 0x5d3   :  { %v2886_v19 = vpop.f32.mrf.mxu0 }
 0x5db   :  { %v2890_v22 = vpop.f32.mrf.mxu0 }
 0x639   :  { %v581_v31 = vpop.f32.mrf.mxu2  ;;  %v594_v32 = vpop.f32.mrf.mxu3 }
 0x63a   :  { %v599_v3 = vadd.f32 %v594_v32, %v225_v29  ;;  %v598_v41 = vadd.f32 %v581_v31, %v196_v25 }
 0x63c   :  { %2352 = vtanh.f32 %v599_v3  ;;  %v2119_v35 = vmul.f32 -1.442695, %v598_v41  ;;  %v2120_v60 = vmul.f32 -1.442695, %v599_v3 }
 0x63e   :  { %2354 = vpow2.f32 %v2119_v35 }
 0x641   :  { %v583_v21 = vpop.f32.mrf.mxu2  ;;  %v596_v34 = vpop.f32.mrf.mxu3 }
 0x642   :  { %v2353_v9 = vpop.eup %2352 }
 0x643   :  { %641 = vrot.lane.b32.xlu0 %v2353_v9, %s2590_s19 }
 0x644   :  { %v2355_v37 = vpop.eup %2354 }
 0x645   :  { %v606_v48 = vadd.f32 1.0, %v2355_v37 }
 0x647   :  { %2356 = vrcp.f32 %v606_v48  ;;  %v619_v44 = vand.u32 2147483648, %v606_v48  ;;  %vm613_vm14 = vweird.f32 %v606_v48  ;;  %v617_v45 = vand.u32 2147483647, %v606_v48 }
 0x649   :  { %v620_v47 = vor.u32 1.1754944e-38, %v619_v44  ;;  %vm618_vm0 = vcmp.eq.f32.partialorder %v617_v45, 8.507059e+37 }
 0x64d   :  { %v2357_v36 = vpop.eup %2356 }
 0x64e   :  { %v609_v38 = vmul.f32 %v2357_v36, %v606_v48  ;;  %vm614_vm13 = vweird.f32 %v2357_v36 }
 0x64f   :  { %vm615_vm15 = vmor %vm613_vm14, %vm614_vm13 }
 0x650   :  { %v610_v39 = vsub.f32 1.0, %v609_v38 }
 0x652   :  { %v611_v42 = vmul.f32 %v2357_v36, %v610_v39 }
 0x654   :  { %v612_v43 = vadd.f32 %v2357_v36, %v611_v42 }
 0x656   :  { %v616_v46 = vsel %vm615_vm15, %v2357_v36, %v612_v43 }
 0x657   :  { %v621_v51 = vsel %vm618_vm0, %v620_v47, %v616_v46 }
 0x658   :  { %v639_v56 = vmul.f32 %v621_v51, %v2835_v7 }
 0x6b5   :  { %v642_v49 = vpop.permute.xlu0 %641 }
 0x6b6   :  { %v644_v53 = vmul.f32 %v642_v49, %v621_v51 }
 0x6b8   :  { %646 = vrot.lane.b32.xlu1 %v644_v53, %s2590_s19 }
 0x72a   :  { %v647_v57 = vpop.permute.xlu1 %646 }
 0x72b   :  { %v2870_v58 = vadd.f32 %v647_v57, %v639_v56 }
 0x72d   :  { %2358 = vtanh.f32 %v2870_v58 }
 0x72e   :  { %2360 = vpow2.f32 %v2120_v60 }
 0x733   :  { %v2359_v59 = vpop.eup %2358 }
 0x734   :  { %652 = vrot.lane.b32.xlu2 %v2359_v59, %s2590_s19  ;;  %v2361_v62 = vpop.eup %2360 }
 0x735   :  { %v607_v63 = vadd.f32 1.0, %v2361_v62 }
 0x737   :  { %2362 = vrcp.f32 %v607_v63  ;;  %v634_v6 = vand.u32 2147483648, %v607_v63  ;;  %vm628_vm2 = vweird.f32 %v607_v63  ;;  %v632_v7 = vand.u32 2147483647, %v607_v63 }
 0x739   :  { %v635_v10 = vor.u32 1.1754944e-38, %v634_v6  ;;  %vm633_vm4 = vcmp.eq.f32.partialorder %v632_v7, 8.507059e+37 }
 0x73d   :  { %v2363_v0 = vpop.eup %2362 }
 0x73e   :  { %v624_v1 = vmul.f32 %v2363_v0, %v607_v63  ;;  %vm629_vm1 = vweird.f32 %v2363_v0 }
 0x73f   :  { %vm630_vm3 = vmor %vm628_vm2, %vm629_vm1 }
 0x740   :  { %v625_v2 = vsub.f32 1.0, %v624_v1 }
 0x742   :  { %v626_v4 = vmul.f32 %v2363_v0, %v625_v2 }
 0x744   :  { %v627_v5 = vadd.f32 %v2363_v0, %v626_v4 }
 0x746   :  { %v631_v8 = vsel %vm630_vm3, %v2363_v0, %v627_v5 }
 0x747   :  { %v636_v11 = vsel %vm633_vm4, %v635_v10, %v631_v8  ;;  %v230_v8 = vadd.f32 %v2884_v13, %v2772_v52  ;;  %v201_v10 = vadd.f32 %v2882_v18, %v2776_v61 }
 0x78e   :  { %v653_v12 = vpop.permute.xlu2 %652 }
 0x78f   :  { %v2874_v14 = vmul.f32 %v653_v12, %v636_v11 }
 0x791   :  { %656 = vst.msk [vmem:[#allocation2 + $0x18] sm:$0xff] %vm285_vm10, %v2874_v14  ;;  %v662_v15 = vpack.c.bf16 %v2874_v14, %v2874_v14 }
 0x793   :  { %2121 = vmatmul.msk.bf16.vlgmr.msrb.gmra.mxu0 %vm285_vm10, %v662_v15  ;;  %2122 = vmatmul.msk.bf16.vlgmr.msrb.gmra.mxu1 %vm285_vm10, %v662_v15 }
 0x810   :  { %v675_v28 = vpop.f32.mrf.mxu0  ;;  %v688_v29 = vpop.f32.mrf.mxu1 }
 0x811   :  { %v692_v31 = vadd.f32 %v675_v28, %v199_v24  ;;  %v693_v32 = vadd.f32 %v688_v29, %v228_v27 }
 0x813   :  { %2364 = vtanh.f32 %v693_v32  ;;  %v2123_v9 = vmul.f32 -1.442695, %v692_v31  ;;  %v2124_v54 = vmul.f32 -1.442695, %v693_v32 }
 0x815   :  { %2366 = vpow2.f32 %v2123_v9 }
 0x818   :  { %v677_v3 = vpop.f32.mrf.mxu0  ;;  %v690_v21 = vpop.f32.mrf.mxu1 }
 0x819   :  { %v2365_v34 = vpop.eup %2364 }
 0x81a   :  { %735 = vrot.lane.b32.xlu0 %v2365_v34, %s2590_s19 }
 0x81b   :  { %v2367_v30 = vpop.eup %2366 }
 0x81c   :  { %v700_v25 = vadd.f32 1.0, %v2367_v30 }
 0x81e   :  { %2368 = vrcp.f32 %v700_v25  ;;  %v713_v38 = vand.u32 2147483648, %v700_v25  ;;  %vm707_vm6 = vweird.f32 %v700_v25  ;;  %v711_v39 = vand.u32 2147483647, %v700_v25 }
 0x820   :  { %v714_v43 = vor.u32 1.1754944e-38, %v713_v38  ;;  %vm712_vm8 = vcmp.eq.f32.partialorder %v711_v39, 8.507059e+37 }
 0x824   :  { %v2369_v41 = vpop.eup %2368 }
 0x825   :  { %v703_v35 = vmul.f32 %v2369_v41, %v700_v25  ;;  %vm708_vm5 = vweird.f32 %v2369_v41 }
 0x826   :  { %vm709_vm7 = vmor %vm707_vm6, %vm708_vm5 }
 0x827   :  { %v704_v37 = vsub.f32 1.0, %v703_v35 }
 0x829   :  { %v705_v48 = vmul.f32 %v2369_v41, %v704_v37 }
 0x82b   :  { %v706_v36 = vadd.f32 %v2369_v41, %v705_v48 }
 0x82d   :  { %v710_v42 = vsel %vm709_vm7, %v2369_v41, %v706_v36 }
 0x82e   :  { %v715_v45 = vsel %vm712_vm8, %v714_v43, %v710_v42 }
 0x82f   :  { %v733_v47 = vmul.f32 %v715_v45, %v2870_v58 }
 0x88c   :  { %v736_v44 = vpop.permute.xlu0 %735 }
 0x88d   :  { %v738_v46 = vmul.f32 %v736_v44, %v715_v45 }
 0x88f   :  { %740 = vrot.lane.b32.xlu1 %v738_v46, %s2590_s19 }
 0x901   :  { %v741_v49 = vpop.permute.xlu1 %740 }
 0x902   :  { %v743_v51 = vadd.f32 %v741_v49, %v733_v47 }
 0x904   :  { %2370 = vtanh.f32 %v743_v51 }
 0x905   :  { %2372 = vpow2.f32 %v2124_v54 }
 0x90a   :  { %v2371_v53 = vpop.eup %2370 }
 0x90b   :  { %746 = vrot.lane.b32.xlu2 %v2371_v53, %s2590_s19  ;;  %v2373_v55 = vpop.eup %2372 }
 0x90c   :  { %v701_v56 = vadd.f32 1.0, %v2373_v55 }
 0x90e   :  { %2374 = vrcp.f32 %v701_v56  ;;  %v728_v0 = vand.u32 2147483648, %v701_v56  ;;  %vm722_vm11 = vweird.f32 %v701_v56  ;;  %v726_v58 = vand.u32 2147483647, %v701_v56 }
 0x910   :  { %v729_v2 = vor.u32 1.1754944e-38, %v728_v0  ;;  %vm727_vm13 = vcmp.eq.f32.partialorder %v726_v58, 8.507059e+37  ;;  %v204_v0 = vadd.f32 %v2886_v19, %v2776_v61 }
 0x914   :  { %v2375_v57 = vpop.eup %2374 }
 0x915   :  { %v718_v59 = vmul.f32 %v2375_v57, %v701_v56  ;;  %vm723_vm9 = vweird.f32 %v2375_v57 }
 0x916   :  { %vm724_vm12 = vmor %vm722_vm11, %vm723_vm9 }
 0x917   :  { %v719_v60 = vsub.f32 1.0, %v718_v59 }
 0x919   :  { %v720_v62 = vmul.f32 %v2375_v57, %v719_v60 }
 0x91b   :  { %v721_v63 = vadd.f32 %v2375_v57, %v720_v62 }
 0x91d   :  { %v725_v1 = vsel %vm724_vm12, %v2375_v57, %v721_v63  ;;  %v233_v63 = vadd.f32 %v2888_v20, %v2772_v52 }
 0x91e   :  { %v730_v4 = vsel %vm727_vm13, %v729_v2, %v725_v1 }
 0x965   :  { %v747_v5 = vpop.permute.xlu2 %746 }
 0x966   :  { %v2900_v6 = vmul.f32 %v747_v5, %v730_v4 }
 0x968   :  { %v756_v7 = vpack.c.bf16 %v2900_v6, %v2900_v6 }
 0x96a   :  { %2125 = vmatmul.msk.bf16.vlgmr.msra.gmra.mxu2 %vm285_vm10, %v756_v7  ;;  %2126 = vmatmul.msk.bf16.vlgmr.msra.gmra.mxu3 %vm285_vm10, %v756_v7 }
 0x9ed   :  { %v769_v11 = vpop.f32.mrf.mxu2  ;;  %v782_v12 = vpop.f32.mrf.mxu3 }
 0x9ee   :  { %v786_v15 = vadd.f32 %v769_v11, %v201_v10  ;;  %v787_v16 = vadd.f32 %v782_v12, %v230_v8 }
 0x9f0   :  { %2376 = vtanh.f32 %v787_v16  ;;  %v2127_v28 = vmul.f32 -1.442695, %v786_v15  ;;  %v2128_v42 = vmul.f32 -1.442695, %v787_v16 }
 0x9f2   :  { %2378 = vpow2.f32 %v2127_v28 }
 0x9f5   :  { %v771_v17 = vpop.f32.mrf.mxu2  ;;  %v784_v24 = vpop.f32.mrf.mxu3 }
 0x9f6   :  { %v2377_v27 = vpop.eup %2376 }
 0x9f7   :  { %829 = vrot.lane.b32.xlu0 %v2377_v27, %s2590_s19 }
 0x9f8   :  { %v2379_v29 = vpop.eup %2378 }
 0x9f9   :  { %v794_v31 = vadd.f32 1.0, %v2379_v29 }
 0x9fb   :  { %2380 = vrcp.f32 %v794_v31  ;;  %v807_v34 = vand.u32 2147483648, %v794_v31  ;;  %vm801_vm15 = vweird.f32 %v794_v31  ;;  %v805_v9 = vand.u32 2147483647, %v794_v31 }
 0x9fd   :  { %v808_v25 = vor.u32 1.1754944e-38, %v807_v34  ;;  %vm806_vm1 = vcmp.eq.f32.partialorder %v805_v9, 8.507059e+37 }
 0xa01   :  { %v2381_v32 = vpop.eup %2380 }
 0xa02   :  { %v797_v13 = vmul.f32 %v2381_v32, %v794_v31  ;;  %vm802_vm14 = vweird.f32 %v2381_v32 }
 0xa03   :  { %vm803_vm0 = vmor %vm801_vm15, %vm802_vm14 }
 0xa04   :  { %v798_v3 = vsub.f32 1.0, %v797_v13 }
 0xa06   :  { %v799_v21 = vmul.f32 %v2381_v32, %v798_v3 }
 0xa08   :  { %v800_v18 = vadd.f32 %v2381_v32, %v799_v21 }
 0xa0a   :  { %v804_v30 = vsel %vm803_vm0, %v2381_v32, %v800_v18 }
 0xa0b   :  { %v809_v35 = vsel %vm806_vm1, %v808_v25, %v804_v30 }
 0xa0c   :  { %v827_v48 = vmul.f32 %v809_v35, %v743_v51 }
 0xa69   :  { %v830_v41 = vpop.permute.xlu0 %829 }
 0xa6a   :  { %v832_v37 = vmul.f32 %v830_v41, %v809_v35 }
 0xa6c   :  { %834 = vrot.lane.b32.xlu1 %v832_v37, %s2590_s19 }
 0xade   :  { %v835_v36 = vpop.permute.xlu1 %834 }
 0xadf   :  { %v837_v38 = vadd.f32 %v835_v36, %v827_v48 }
 0xae1   :  { %2382 = vtanh.f32 %v837_v38 }
 0xae2   :  { %2384 = vpow2.f32 %v2128_v42 }
 0xae7   :  { %v2383_v39 = vpop.eup %2382 }
 0xae8   :  { %840 = vrot.lane.b32.xlu2 %v2383_v39, %s2590_s19  ;;  %v2385_v43 = vpop.eup %2384 }
 0xae9   :  { %v795_v44 = vadd.f32 1.0, %v2385_v43 }
 0xaeb   :  { %2386 = vrcp.f32 %v795_v44  ;;  %v822_v54 = vand.u32 2147483648, %v795_v44  ;;  %vm816_vm3 = vweird.f32 %v795_v44  ;;  %v820_v51 = vand.u32 2147483647, %v795_v44 }
 0xaed   :  { %v823_v56 = vor.u32 1.1754944e-38, %v822_v54  ;;  %vm821_vm5 = vcmp.eq.f32.partialorder %v820_v51, 8.507059e+37 }
 0xaf1   :  { %v2387_v45 = vpop.eup %2386 }
 0xaf2   :  { %v812_v46 = vmul.f32 %v2387_v45, %v795_v44  ;;  %vm817_vm2 = vweird.f32 %v2387_v45 }
 0xaf3   :  { %vm818_vm4 = vmor %vm816_vm3, %vm817_vm2  ;;  %vm378_vm3 = vcmask 1048064  }
 0xaf4   :  { %v813_v47 = vsub.f32 1.0, %v812_v46 }
 0xaf6   :  { %v814_v49 = vmul.f32 %v2387_v45, %v813_v47 }
 0xaf8   :  { %v815_v53 = vadd.f32 %v2387_v45, %v814_v49  ;;  %v235_v49 = vadd.f32 %v2892_v23, %v2772_v52 }
 0xafa   :  { %v819_v55 = vsel %vm818_vm4, %v2387_v45, %v815_v53 }
 0xafb   :  { %v824_v57 = vsel %vm821_vm5, %v823_v56, %v819_v55 }
 0xb42   :  { %v841_v59 = vpop.permute.xlu2 %840 }
 0xb43   :  { %v2913_v60 = vmul.f32 %v841_v59, %v824_v57  ;;  %v206_v59 = vadd.f32 %v2890_v22, %v2776_v61 }
 0xb45   :  { %v850_v62 = vpack.c.bf16 %v2913_v60, %v2913_v60 }
 0xb47   :  { %2129 = vmatmul.msk.bf16.vlgmr.msra.gmra.mxu0 %vm285_vm10, %v850_v62  ;;  %2130 = vmatmul.msk.bf16.vlgmr.msra.gmra.mxu1 %vm285_vm10, %v850_v62 }
 0xbc4   :  { %v863_v58 = vpop.f32.mrf.mxu0  ;;  %v876_v1 = vpop.f32.mrf.mxu1 }
 0xbc5   :  { %v880_v2 = vadd.f32 %v863_v58, %v204_v0  ;;  %v881_v4 = vadd.f32 %v876_v1, %v233_v63 }
 0xbc7   :  { %2388 = vtanh.f32 %v881_v4  ;;  %v2131_v10 = vmul.f32 -1.442695, %v880_v2  ;;  %v2132_v9 = vmul.f32 -1.442695, %v881_v4 }
 0xbc9   :  { %2390 = vpow2.f32 %v2131_v10 }
 0xbcc   :  { %v865_v5 = vpop.f32.mrf.mxu0  ;;  %v878_v7 = vpop.f32.mrf.mxu1 }
 0xbcd   :  { %v2389_v8 = vpop.eup %2388 }
 0xbce   :  { %923 = vrot.lane.b32.xlu0 %v2389_v8, %s2590_s19 }
 0xbcf   :  { %v2391_v11 = vpop.eup %2390 }
 0xbd0   :  { %v888_v12 = vadd.f32 1.0, %v2391_v11 }
 0xbd2   :  { %2392 = vrcp.f32 %v888_v12  ;;  %v901_v24 = vand.u32 2147483648, %v888_v12  ;;  %vm895_vm7 = vweird.f32 %v888_v12  ;;  %v899_v27 = vand.u32 2147483647, %v888_v12 }
 0xbd4   :  { %v902_v29 = vor.u32 1.1754944e-38, %v901_v24  ;;  %vm900_vm9 = vcmp.eq.f32.partialorder %v899_v27, 8.507059e+37 }
 0xbd8   :  { %v2393_v15 = vpop.eup %2392 }
 0xbd9   :  { %v891_v20 = vmul.f32 %v2393_v15, %v888_v12  ;;  %vm896_vm6 = vweird.f32 %v2393_v15 }
 0xbda   :  { %vm897_vm8 = vmor %vm895_vm7, %vm896_vm6 }
 0xbdb   :  { %v892_v16 = vsub.f32 1.0, %v891_v20 }
 0xbdd   :  { %v893_v17 = vmul.f32 %v2393_v15, %v892_v16 }
 0xbdf   :  { %v894_v19 = vadd.f32 %v2393_v15, %v893_v17 }
 0xbe1   :  { %v898_v28 = vsel %vm897_vm8, %v2393_v15, %v894_v19 }
 0xbe2   :  { %v903_v32 = vsel %vm900_vm9, %v902_v29, %v898_v28  ;;  %v2195_v28 = vld [vmem:[%s3331_s4 + $0x70] sm:$0xf]  ;;  %v2298_v29 = vld [vmem:[%s3331_s4 + $0x74] sm:$0xf0] }
 0xbe3   :  { %v921_v3 = vmul.f32 %v903_v32, %v837_v38 }
 0xc40   :  { %v924_v31 = vpop.permute.xlu0 %923 }
 0xc41   :  { %v926_v13 = vmul.f32 %v924_v31, %v903_v32  ;;  %v2297_v31 = vld [vmem:[%s3331_s4 + $0x74] sm:$0xf]  ;;  %v2196_v32 = vor.u32 %v2298_v29, %v2195_v28  ;;  %v2288_v28 = vld [vmem:[%s3331_s4 + $0x24] sm:$0xf0]  ;;  %v2287_v29 = vld [vmem:[%s3331_s4 + $0x24] sm:$0xf] }
 0xc43   :  { %928 = vrot.lane.b32.xlu1 %v926_v13, %s2590_s19  ;;  %v2197_v13 = vld [vmem:[%s3331_s4 + $0x78] sm:$0xf0]  ;;  %1152 = vmatpush.bf16.msrb.mxu0 %v2196_v32 }
 0xcb5   :  { %v929_v21 = vpop.permute.xlu1 %928 }
 0xcb6   :  { %v2925_v18 = vadd.f32 %v929_v21, %v921_v3  ;;  %v2187_v3 = vld [vmem:[%s3331_s4 + $0x60] sm:$0xf]  ;;  %v2296_v21 = vld [vmem:[%s3331_s4 + $0x64] sm:$0xf0] }
 0xcb8   :  { %2394 = vtanh.f32 %v2925_v18 }
 0xcb9   :  { %2396 = vpow2.f32 %v2132_v9  ;;  %v2189_v9 = vld [vmem:[%s3331_s4 + $0x68] sm:$0xf0] }
 0xcbe   :  { %v2395_v34 = vpop.eup %2394 }
 0xcbf   :  { %934 = vrot.lane.b32.xlu2 %v2395_v34, %s2590_s19  ;;  %v2397_v30 = vpop.eup %2396  ;;  %v2295_v34 = vld [vmem:[%s3331_s4 + $0x64] sm:$0xf] }
 0xcc0   :  { %v889_v25 = vadd.f32 1.0, %v2397_v30  ;;  %v2305_v30 = vld [vmem:[%s3332_s5 + $0x34] sm:$0xf] }
 0xcc2   :  { %2398 = vrcp.f32 %v889_v25  ;;  %v916_v38 = vand.u32 2147483648, %v889_v25  ;;  %vm910_vm12 = vweird.f32 %v889_v25  ;;  %v914_v39 = vand.u32 2147483647, %v889_v25 }
 0xcc4   :  { %v917_v43 = vor.u32 1.1754944e-38, %v916_v38  ;;  %vm915_vm14 = vcmp.eq.f32.partialorder %v914_v39, 8.507059e+37  ;;  %v2303_v38 = vld [vmem:[%s3332_s5 + $0x24] sm:$0xf]  ;;  %v2293_v39 = vld [vmem:[%s3331_s4 + $0x54] sm:$0xf] }
 0xcc8   :  { %v2399_v41 = vpop.eup %2398 }
 0xcc9   :  { %v906_v35 = vmul.f32 %v2399_v41, %v889_v25  ;;  %vm911_vm11 = vweird.f32 %v2399_v41  ;;  %v2188_v25 = vor.u32 %v2296_v21, %v2187_v3 }
 0xcca   :  { %vm912_vm13 = vmor %vm910_vm12, %vm911_vm11 }
 0xccb   :  { %v907_v37 = vsub.f32 1.0, %v906_v35  ;;  %v2192_v35 = vor.u32 %v2295_v34, %v2189_v9  ;;  %1153 = vmatpush.bf16.msrb.mxu0 %v2188_v25 }
 0xccd   :  { %v908_v48 = vmul.f32 %v2399_v41, %v907_v37 }
 0xccf   :  { %v909_v36 = vadd.f32 %v2399_v41, %v908_v48  ;;  %v2179_v48 = vld [vmem:[%s3331_s4 + $0x50] sm:$0xf] }
 0xcd1   :  { %v913_v42 = vsel %vm912_vm13, %v2399_v41, %v909_v36  ;;  %v2229_v41 = vld [vmem:[%s3332_s5 + $0x38] sm:$0xf0]  ;;  %v2294_v36 = vld [vmem:[%s3331_s4 + $0x54] sm:$0xf0] }
 0xcd2   :  { %v918_v44 = vsel %vm915_vm14, %v917_v43, %v913_v42  ;;  %v2979_v37 = vor.u32 %v2305_v30, %v2229_v41  ;;  %v2181_v42 = vld [vmem:[%s3331_s4 + $0x58] sm:$0xf0]  ;;  %v2221_v43 = vld [vmem:[%s3332_s5 + $0x28] sm:$0xf0] }
 0xcd4   :  { %1275 = vmatpush.bf16.msra.mxu3 %v2979_v37 }
 0xd19   :  { %v935_v45 = vpop.permute.xlu2 %934 }
 0xd1a   :  { %v2929_v46 = vmul.f32 %v935_v45, %v918_v44  ;;  %v3000_v44 = vor.u32 %v2303_v38, %v2221_v43  ;;  %v2227_v45 = vld [vmem:[%s3332_s5 + $0x30] sm:$0xf]  ;;  %v2300_v43 = vld [vmem:[%s3332_s5 + $0x4] sm:$0xf0] }
 0xd1c   :  { %v944_v47 = vpack.c.bf16 %v2929_v46, %v2929_v46  ;;  %1276 = vmatpush.bf16.msra.mxu3 %v3000_v44 }
 0xd1e   :  { %2133 = vmatmul.msk.bf16.vlgmr.msrb.gmra.mxu2 %vm285_vm10, %v944_v47  ;;  %2134 = vmatmul.msk.bf16.vlgmr.msrb.gmra.mxu3 %vm285_vm10, %v944_v47 }
 0xda1   :  { %v957_v53 = vpop.f32.mrf.mxu2  ;;  %v970_v54 = vpop.f32.mrf.mxu3 }
 0xda2   :  { %v975_v51 = vadd.f32 %v970_v54, %v235_v49  ;;  %v974_v62 = vadd.f32 %v957_v53, %v206_v59  ;;  %v2180_v49 = vor.u32 %v2294_v36, %v2179_v48  ;;  %v2306_v53 = vld [vmem:[%s3332_s5 + $0x34] sm:$0xf0]  ;;  %v2301_v54 = vld [vmem:[%s3332_s5 + $0x14] sm:$0xf]  ;;  %v2291_v59 = vld [vmem:[%s3331_s4 + $0x44] sm:$0xf] }
 0xda3   :  { %v2286_v48 = vld [vmem:[%s3331_s4 + $0x14] sm:$0xf0]  ;;  %v2285_v36 = vld [vmem:[%s3331_s4 + $0x14] sm:$0xf] }
 0xda4   :  { %2400 = vtanh.f32 %v975_v51  ;;  %v2135_v63 = vmul.f32 -1.442695, %v974_v62  ;;  %v2136_v19 = vmul.f32 -1.442695, %v975_v51  ;;  %v2213_v51 = vld [vmem:[%s3332_s5 + $0x18] sm:$0xf0]  ;;  %v3025_v62 = vor.u32 %v2306_v53, %v2227_v45  ;;  %1154 = vmatpush.bf16.msrb.mxu0 %v2180_v49 }
 0xda5   :  { %v2139_v49 = vld [vmem:[%s3331_s4] sm:$0xf]  ;;  %v2284_v53 = vld [vmem:[%s3331_s4 + $0x4] sm:$0xf0] }
 0xda6   :  { %2402 = vpow2.f32 %v2135_v63  ;;  %v2173_v63 = vld [vmem:[%s3331_s4 + $0x48] sm:$0xf0]  ;;  %1262 = vmatpush.bf16.msra.mxu2 %v3025_v62 }
 0xda9   :  { %v959_v55 = vpop.f32.mrf.mxu2  ;;  %v972_v56 = vpop.f32.mrf.mxu3 }
 0xdaa   :  { %v2401_v57 = vpop.eup %2400  ;;  %v2184_v55 = vor.u32 %v2293_v39, %v2181_v42  ;;  %v2171_v56 = vld [vmem:[%s3331_s4 + $0x40] sm:$0xf]  ;;  %v2149_v39 = vld [vmem:[%s3331_s4 + $0x18] sm:$0xf0] }
 0xdab   :  { %1017 = vrot.lane.b32.xlu0 %v2401_v57, %s2590_s19  ;;  %v2292_v57 = vld [vmem:[%s3331_s4 + $0x44] sm:$0xf0]  ;;  %v2203_v42 = vld [vmem:[%s3332_s5] sm:$0xf]  ;;  %v2152_v45 = vor.u32 %v2285_v36, %v2149_v39 }
 0xdac   :  { %v2403_v0 = vpop.eup %2402 }
 0xdad   :  { %v982_v52 = vadd.f32 1.0, %v2403_v0  ;;  %v2219_v0 = vld [vmem:[%s3332_s5 + $0x20] sm:$0xf] }
 0xdaf   :  { %2404 = vrcp.f32 %v982_v52  ;;  %v995_v5 = vand.u32 2147483648, %v982_v52  ;;  %vm989_vm0 = vweird.f32 %v982_v52  ;;  %v993_v7 = vand.u32 2147483647, %v982_v52 }
 0xdb1   :  { %v996_v10 = vor.u32 1.1754944e-38, %v995_v5  ;;  %vm994_vm2 = vcmp.eq.f32.partialorder %v993_v7, 8.507059e+37  ;;  %v2299_v5 = vld [vmem:[%s3332_s5 + $0x4] sm:$0xf]  ;;  %v2205_v7 = vld [vmem:[%s3332_s5 + $0x8] sm:$0xf0] }
 0xdb3   :  { %940 = vrot.lane.b32.xlu0 %v2929_v46, %s2590_s19 }
 0xdb5   :  { %v2405_v23 = vpop.eup %2404 }
 0xdb6   :  { %v985_v58 = vmul.f32 %v2405_v23, %v982_v52  ;;  %vm990_vm15 = vweird.f32 %v2405_v23  ;;  %v2304_v52 = vld [vmem:[%s3332_s5 + $0x24] sm:$0xf0] }
 0xdb7   :  { %vm991_vm1 = vmor %vm989_vm0, %vm990_vm15 }
 0xdb8   :  { %v986_v1 = vsub.f32 1.0, %v985_v58  ;;  %v3040_v58 = vor.u32 %v2301_v54, %v2213_v51  ;;  %v2283_v54 = vld [vmem:[%s3331_s4 + $0x4] sm:$0xf]  ;;  %v2140_v51 = vor.u32 %v2284_v53, %v2139_v49 }
 0xdba   :  { %v987_v2 = vmul.f32 %v2405_v23, %v986_v1  ;;  %v3042_v1 = vor.u32 %v2304_v52, %v2219_v0  ;;  %1277 = vmatpush.bf16.msra.mxu3 %v3040_v58 }
 0xdbc   :  { %v988_v4 = vadd.f32 %v2405_v23, %v987_v2  ;;  %v2172_v2 = vor.u32 %v2292_v57, %v2171_v56  ;;  %1263 = vmatpush.bf16.msra.mxu2 %v3042_v1 }
 0xdbe   :  { %v992_v8 = vsel %vm991_vm1, %v2405_v23, %v988_v4  ;;  %v2163_v4 = vld [vmem:[%s3331_s4 + $0x30] sm:$0xf]  ;;  %1155 = vmatpush.bf16.msrb.mxu0 %v2172_v2 }
 0xdbf   :  { %v997_v22 = vsel %vm994_vm2, %v996_v10, %v992_v8  ;;  %v2176_v8 = vor.u32 %v2291_v59, %v2173_v63  ;;  %v2290_v10 = vld [vmem:[%s3331_s4 + $0x34] sm:$0xf0] }
 0xdc0   :  { %v1015_v15 = vmul.f32 %v997_v22, %v2925_v18  ;;  %v2200_v18 = vor.u32 %v2297_v31, %v2197_v13  ;;  %v2157_v31 = vld [vmem:[%s3331_s4 + $0x28] sm:$0xf0] }
 0xdc1   :  { %v2160_v3 = vor.u32 %v2287_v29, %v2157_v31 }
 0xdc2   :  { %1181 = vmatpush.bf16.msrb.mxu1 %v2200_v18 }
 0xdc6   :  { %1182 = vmatpush.bf16.msrb.mxu1 %v2192_v35 }
 0xdca   :  { %1183 = vmatpush.bf16.msrb.mxu1 %v2184_v55  ;;  %v2141_v55 = vld [vmem:[%s3331_s4 + $0x8] sm:$0xf0] }
 0xdcb   :  { %v2144_v56 = vor.u32 %v2283_v54, %v2141_v55 }
 0xdce   :  { %1184 = vmatpush.bf16.msrb.mxu1 %v2176_v8 }
 0xe1d   :  { %v1018_v61 = vpop.permute.xlu0 %1017 }
 0xe1e   :  { %v1020_v11 = vmul.f32 %v1018_v61, %v997_v22  ;;  %v2211_v61 = vld [vmem:[%s3332_s5 + $0x10] sm:$0xf]  ;;  %v2302_v22 = vld [vmem:[%s3332_s5 + $0x14] sm:$0xf0] }
 0xe20   :  { %1022 = vrot.lane.b32.xlu1 %v1020_v11, %s2590_s19  ;;  %v2289_v11 = vld [vmem:[%s3331_s4 + $0x34] sm:$0xf] }
 0xe25   :  { %v941_v12 = vpop.permute.xlu0 %940 }
 0xe26   :  { %943 = vst.msk [vmem:[#allocation2 + $0x8] sm:$0xff] %vm378_vm3, %v941_v12  ;;  %v2165_v12 = vld [vmem:[%s3331_s4 + $0x38] sm:$0xf0] }
 0xe2d   :  { %v1039_v63 = vld [vmem:[#allocation2 + $0x8] sm:$0xff] }
 0xe92   :  { %v1023_v20 = vpop.permute.xlu1 %1022 }
 0xe93   :  { %v1025_v16 = vadd.f32 %v1023_v20, %v1015_v15  ;;  %v3070_v20 = vor.u32 %v2299_v5, %v2205_v7 }
 0xe95   :  { %2406 = vtanh.f32 %v1025_v16  ;;  %v3072_v16 = vor.u32 %v2302_v22, %v2211_v61  ;;  %1278 = vmatpush.bf16.msra.mxu3 %v3070_v20 }
 0xe96   :  { %2408 = vpow2.f32 %v2136_v19  ;;  %v2168_v19 = vor.u32 %v2289_v11, %v2165_v12 }
 0xe97   :  { %1264 = vmatpush.bf16.msra.mxu2 %v3072_v16 }
 0xe98   :  { %1185 = vmatpush.bf16.msrb.mxu1 %v2168_v19  ;;  %1279 = vmatmul.bf16.vlgmr.msra.gmra.mxu3 %v2589_v50 }
 0xe99   :  { %1363 = vmatpush.bf16.msrb.mxu3 %v2979_v37 }
 0xe9b   :  { %v2407_v17 = vpop.eup %2406 }
 0xe9c   :  { %1028 = vrot.lane.b32.xlu2 %v2407_v17, %s2590_s19  ;;  %v2409_v24 = vpop.eup %2408  ;;  %v2164_v17 = vor.u32 %v2290_v10, %v2163_v4  ;;  %1186 = vmatpush.bf16.msrb.mxu1 %v2160_v3  ;;  %v1066_v4 = vld [vmem:[%s3333_s6] sm:$0x3]  ;;  %s2591_s6 = smov 96  }
 0xe9d   :  { %v2946_v27 = vadd.f32 1.0, %v2409_v24  ;;  %v2155_v24 = vld [vmem:[%s3331_s4 + $0x20] sm:$0xf]  ;;  %1364 = vmatpush.bf16.msrb.mxu3 %v3000_v44  ;;  %v3170_v5 = vperm.slane %v1066_v4, 1  ;;  %v3174_v22 = vperm.slane %v1066_v4, 0 }
 0xe9e   :  { %1156 = vmatpush.bf16.msrb.mxu0 %v2164_v17  ;;  %v2156_v13 = vor.u32 %v2288_v28, %v2155_v24 }
 0xe9f   :  { %2410 = vrcp.f32 %v2946_v27  ;;  %v1010_v18 = vand.u32 2147483648, %v2946_v27  ;;  %vm1004_vm5 = vweird.f32 %v2946_v27  ;;  %v1008_v34 = vand.u32 2147483647, %v2946_v27 }
 0xea0   :  { %1187 = vmatpush.bf16.msrb.mxu1 %v2152_v45 }
 0xea1   :  { %v1011_v30 = vor.u32 1.1754944e-38, %v1010_v18  ;;  %1365 = vmatpush.bf16.msrb.mxu3 %v3040_v58  ;;  %vm1009_vm7 = vcmp.eq.f32.partialorder %v1008_v34, 8.507059e+37 }
 0xea2   :  { %1157 = vmatpush.bf16.msrb.mxu0 %v2156_v13 }
 0xea4   :  { %1188 = vmatpush.bf16.msrb.mxu1 %v2144_v56 }
 0xea5   :  { %v3005_v47 = vpop.eup %2410  ;;  %1366 = vmatpush.bf16.msrb.mxu3 %v3070_v20 }
 0xea6   :  { %v1000_v23 = vmul.f32 %v3005_v47, %v2946_v27  ;;  %vm1005_vm4 = vweird.f32 %v3005_v47  ;;  %v2147_v27 = vld [vmem:[%s3331_s4 + $0x10] sm:$0xf] }
 0xea7   :  { %vm1006_vm6 = vmor %vm1004_vm5, %vm1005_vm4  ;;  %v2148_v38 = vor.u32 %v2286_v48, %v2147_v27 }
 0xea8   :  { %v1001_v15 = vsub.f32 1.0, %v1000_v23  ;;  %1715 = vmatpush.bf16.msra.mxu1 %v2979_v37 }
 0xea9   :  { %1451 = vmatpush.bf16.msra.mxu3 %v2979_v37  ;;  %1158 = vmatpush.bf16.msrb.mxu0 %v2148_v38 }
 0xeaa   :  { %v1002_v32 = vmul.f32 %v3005_v47, %v1001_v15 }
 0xeac   :  { %v1003_v21 = vadd.f32 %v3005_v47, %v1002_v32  ;;  %1716 = vmatpush.bf16.msra.mxu1 %v3000_v44 }
 0xead   :  { %1452 = vmatpush.bf16.msra.mxu3 %v3000_v44  ;;  %1159 = vmatpush.bf16.msrb.mxu0 %v2140_v51 }
 0xeae   :  { %v1007_v9 = vsel %vm1006_vm6, %v3005_v47, %v1003_v21  ;;  %v3126_v47 = vor.u32 %v2300_v43, %v2203_v42 }
 0xeaf   :  { %v1012_v25 = vsel %vm1009_vm7, %v1011_v30, %v1007_v9 }
 0xeb0   :  { %1265 = vmatpush.bf16.msra.mxu2 %v3126_v47  ;;  %1717 = vmatpush.bf16.msra.mxu1 %v3040_v58 }
 0xeb1   :  { %1453 = vmatpush.bf16.msra.mxu3 %v3040_v58  ;;  %1702 = vmatpush.bf16.msra.mxu0 %v3025_v62 }
 0xeb3   :  { %1266 = vmatmul.bf16.vlgmr.msra.gmra.mxu2 %v2589_v50 }
 0xeb4   :  { %1350 = vmatpush.bf16.msrb.mxu2 %v3025_v62  ;;  %1718 = vmatpush.bf16.msra.mxu1 %v3070_v20 }
 0xeb5   :  { %1454 = vmatpush.bf16.msra.mxu3 %v3070_v20  ;;  %1703 = vmatpush.bf16.msra.mxu0 %v3042_v1 }
 0xeb8   :  { %1351 = vmatpush.bf16.msrb.mxu2 %v3042_v1 }
 0xeb9   :  { %1704 = vmatpush.bf16.msra.mxu0 %v3072_v16 }
 0xebc   :  { %1352 = vmatpush.bf16.msrb.mxu2 %v3072_v16 }
 0xebd   :  { %1705 = vmatpush.bf16.msra.mxu0 %v3126_v47 }
 0xec0   :  { %1353 = vmatpush.bf16.msrb.mxu2 %v3126_v47 }
 0xec4   :  { %1438 = vmatpush.bf16.msra.mxu2 %v3025_v62 }
 0xec8   :  { %1439 = vmatpush.bf16.msra.mxu2 %v3042_v1 }
 0xecc   :  { %1440 = vmatpush.bf16.msra.mxu2 %v3072_v16 }
 0xed0   :  { %1441 = vmatpush.bf16.msra.mxu2 %v3126_v47 }
 0xef6   :  { %v1029_v41 = vpop.permute.xlu2 %1028 }
 0xef7   :  { %v3099_v35 = vmul.f32 %v1029_v41, %v1012_v25 }
 0xef9   :  { %1034 = vrot.lane.b32.xlu1 %v3099_v35, %s2590_s19 }
 0xf1b   :  { %v1280_v57 = vpop.f32.mrf.mxu3 }
 0xf23   :  { %v1282_v52 = vpop.f32.mrf.mxu3 }
 0xf36   :  { %v1267_v23 = vpop.f32.mrf.mxu2 }
 0xf3e   :  { %v1269_v2 = vpop.f32.mrf.mxu2 }
 0xf6b   :  { %v1035_v50 = vpop.permute.xlu1 %1034 }
 0xf6c   :  { %1037 = vst.msk [vmem:[#allocation2] sm:$0xff] %vm378_vm3, %v1035_v50 }
 0xf73   :  { %v1038_v59 = vld [vmem:[#allocation2] sm:$0xff] }
 0xf74   :  { %v1046_v0 = vpack.c.bf16 %v1039_v63, %v1038_v59 }
 0xf76   :  { %1160 = vmatmul.bf16.vlgmr.msrb.gmra.mxu0 %v1046_v0  ;;  %1189 = vmatmul.bf16.vlgmr.msrb.gmra.mxu1 %v1046_v0 }
 0xf77   :  { %1891 = vmatpush.bf16.msrb.mxu1 %v2979_v37  ;;  %1878 = vmatpush.bf16.msrb.mxu0 %v3025_v62 }
 0xf7b   :  { %1892 = vmatpush.bf16.msrb.mxu1 %v3000_v44  ;;  %1879 = vmatpush.bf16.msrb.mxu0 %v3042_v1 }
 0xf7f   :  { %1893 = vmatpush.bf16.msrb.mxu1 %v3040_v58  ;;  %1880 = vmatpush.bf16.msrb.mxu0 %v3072_v16 }
 0xf83   :  { %1894 = vmatpush.bf16.msrb.mxu1 %v3070_v20  ;;  %1881 = vmatpush.bf16.msrb.mxu0 %v3126_v47 }
 0xff3   :  { %v1190_v7 = vpop.f32.mrf.mxu1  ;;  %v1161_v11 = vpop.f32.mrf.mxu0 }
 0xff4   :  { %v1191_v8 = vadd.f32 %v1190_v7, %v3170_v5  ;;  %v1162_v12 = vadd.f32 %v1161_v11, %v3174_v22 }
 0xff6   :  { %v1285_v10 = vadd.f32 %v1280_v57, %v1191_v8  ;;  %v1284_v15 = vadd.f32 %v1267_v23, %v1162_v12 }
 0xff8   :  { %2412 = vtanh.f32 %v1285_v10  ;;  %v2233_v17 = vmul.f32 -1.442695, %v1284_v15  ;;  %v2234_v38 = vmul.f32 -1.442695, %v1285_v10 }
 0xffa   :  { %2414 = vpow2.f32 %v2233_v17 }
 0xffb   :  { %v1192_v23 = vpop.f32.mrf.mxu1  ;;  %v1163_v12 = vpop.f32.mrf.mxu0 }
 0xffc   :  { %v1193_v2 = vadd.f32 %v1192_v23, %v3170_v5  ;;  %v1164_v15 = vadd.f32 %v1163_v12, %v3174_v22 }
 0xffe   :  { %v2413_v61 = vpop.eup %2412 }
 0xfff   :  { %1327 = vrot.lane.b32.xlu2 %v2413_v61, %s2590_s19 }
0x1000   :  { %v2415_v19 = vpop.eup %2414 }
0x1001   :  { %v1292_v24 = vadd.f32 1.0, %v2415_v19 }
0x1003   :  { %2416 = vrcp.f32 %v1292_v24  ;;  %v1305_v3 = vand.u32 2147483648, %v1292_v24  ;;  %vm1299_vm9 = vweird.f32 %v1292_v24  ;;  %v1303_v21 = vand.u32 2147483647, %v1292_v24 }
0x1005   :  { %v1306_v34 = vor.u32 1.1754944e-38, %v1305_v3  ;;  %vm1304_vm12 = vcmp.eq.f32.partialorder %v1303_v21, 8.507059e+37 }
0x1009   :  { %v2417_v28 = vpop.eup %2416 }
0x100a   :  { %v1295_v29 = vmul.f32 %v2417_v28, %v1292_v24  ;;  %vm1300_vm8 = vweird.f32 %v2417_v28 }
0x100b   :  { %vm1301_vm11 = vmor %vm1299_vm9, %vm1300_vm8 }
0x100c   :  { %v1296_v31 = vsub.f32 1.0, %v1295_v29 }
0x100e   :  { %v1297_v32 = vmul.f32 %v2417_v28, %v1296_v31 }
0x1010   :  { %v1298_v13 = vadd.f32 %v2417_v28, %v1297_v32 }
0x1012   :  { %v1302_v18 = vsel %vm1301_vm11, %v2417_v28, %v1298_v13 }
0x1013   :  { %v1307_v30 = vsel %vm1304_vm12, %v1306_v34, %v1302_v18 }
0x1014   :  { %v1325_v41 = vmul.f32 0.0, %v1307_v30 }
0x1059   :  { %v1328_v9 = vpop.permute.xlu2 %1327 }
0x105a   :  { %v1330_v25 = vmul.f32 %v1328_v9, %v1307_v30 }
0x105c   :  { %1332 = vrot.lane.b32.xlu0 %v1330_v25, %s2590_s19 }
0x10ce   :  { %v1333_v27 = vpop.permute.xlu0 %1332 }
0x10cf   :  { %v3178_v48 = vadd.f32 %v1333_v27, %v1325_v41 }
0x10d1   :  { %2418 = vtanh.f32 %v3178_v48 }
0x10d2   :  { %2420 = vpow2.f32 %v2234_v38 }
0x10d7   :  { %v2419_v36 = vpop.eup %2418 }
0x10d8   :  { %1338 = vrot.lane.b32.xlu1 %v2419_v36, %s2590_s19  ;;  %v2421_v39 = vpop.eup %2420 }
0x10d9   :  { %v1293_v42 = vadd.f32 1.0, %v2421_v39 }
0x10db   :  { %2422 = vrcp.f32 %v1293_v42  ;;  %v1320_v51 = vand.u32 2147483648, %v1293_v42  ;;  %vm1314_vm14 = vweird.f32 %v1293_v42  ;;  %v1318_v55 = vand.u32 2147483647, %v1293_v42 }
0x10dd   :  { %v1321_v50 = vor.u32 1.1754944e-38, %v1320_v51  ;;  %vm1319_vm0 = vcmp.eq.f32.partialorder %v1318_v55, 8.507059e+37 }
0x10e0   :  { %752 = vrot.lane.b32.xlu1 %v2900_v6, %s2590_s19 }
0x10e1   :  { %v2423_v43 = vpop.eup %2422 }
0x10e2   :  { %v1310_v45 = vmul.f32 %v2423_v43, %v1293_v42  ;;  %vm1315_vm13 = vweird.f32 %v2423_v43 }
0x10e3   :  { %vm1316_vm15 = vmor %vm1314_vm14, %vm1315_vm13 }
0x10e4   :  { %v1311_v49 = vsub.f32 1.0, %v1310_v45 }
0x10e6   :  { %v1312_v53 = vmul.f32 %v2423_v43, %v1311_v49 }
0x10e8   :  { %v1313_v54 = vadd.f32 %v2423_v43, %v1312_v53 }
0x10ea   :  { %v1317_v56 = vsel %vm1316_vm15, %v2423_v43, %v1313_v54 }
0x10eb   :  { %v1322_v57 = vsel %vm1319_vm0, %v1321_v50, %v1317_v56 }
0x114a   :  { %v1339_v59 = vpop.permute.xlu1 %1338 }
0x114b   :  { %v3184_v63 = vmul.f32 %v1339_v59, %v1322_v57 }
0x114d   :  { %v1342_v0 = vpack.c.bf16 %v3184_v63, %v3184_v63 }
0x114f   :  { %2235 = vmatmul.msk.bf16.vlgmr.msrb.gmra.mxu2 %vm285_vm10, %v1342_v0  ;;  %2236 = vmatmul.msk.bf16.vlgmr.msrb.gmra.mxu3 %vm285_vm10, %v1342_v0 }
0x1150   :  { %1539 = vmatpush.bf16.msrb.mxu3 %v2979_v37  ;;  %1526 = vmatpush.bf16.msrb.mxu2 %v3025_v62 }
0x1152   :  { %v753_v52 = vpop.permute.xlu1 %752 }
0x1153   :  { %755 = vst.msk [vmem:[#allocation2 + $0x18] sm:$0xff] %vm378_vm3, %v753_v52 }
0x1154   :  { %1540 = vmatpush.bf16.msrb.mxu3 %v3000_v44  ;;  %1527 = vmatpush.bf16.msrb.mxu2 %v3042_v1 }
0x1158   :  { %1541 = vmatpush.bf16.msrb.mxu3 %v3040_v58  ;;  %1528 = vmatpush.bf16.msrb.mxu2 %v3072_v16 }
0x115a   :  { %v1041_v38 = vld [vmem:[#allocation2 + $0x18] sm:$0xff] }
0x115c   :  { %1542 = vmatpush.bf16.msrb.mxu3 %v3070_v20  ;;  %1529 = vmatpush.bf16.msrb.mxu2 %v3126_v47 }
0x11d2   :  { %v1355_v4 = vpop.f32.mrf.mxu2  ;;  %v1368_v7 = vpop.f32.mrf.mxu3 }
0x11d3   :  { %v1373_v8 = vadd.f32 %v1368_v7, %v1193_v2  ;;  %v1372_v17 = vadd.f32 %v1355_v4, %v1164_v15 }
0x11d5   :  { %2424 = vtanh.f32 %v1373_v8  ;;  %v2237_v19 = vmul.f32 -1.442695, %v1372_v17  ;;  %v2238_v53 = vmul.f32 -1.442695, %v1373_v8 }
0x11d7   :  { %2426 = vpow2.f32 %v2237_v19 }
0x11da   :  { %v1357_v10 = vpop.f32.mrf.mxu2  ;;  %v1370_v61 = vpop.f32.mrf.mxu3 }
0x11db   :  { %v2425_v11 = vpop.eup %2424 }
0x11dc   :  { %1415 = vrot.lane.b32.xlu2 %v2425_v11, %s2590_s19 }
0x11dd   :  { %v2427_v24 = vpop.eup %2426 }
0x11de   :  { %v1380_v28 = vadd.f32 1.0, %v2427_v24 }
0x11e0   :  { %2428 = vrcp.f32 %v1380_v28  ;;  %v1393_v21 = vand.u32 2147483648, %v1380_v28  ;;  %vm1387_vm2 = vweird.f32 %v1380_v28  ;;  %v1391_v18 = vand.u32 2147483647, %v1380_v28 }
0x11e2   :  { %v1394_v9 = vor.u32 1.1754944e-38, %v1393_v21  ;;  %vm1392_vm5 = vcmp.eq.f32.partialorder %v1391_v18, 8.507059e+37 }
0x11e4   :  { %846 = vrot.lane.b32.xlu2 %v2913_v60, %s2590_s19 }
0x11e6   :  { %v2429_v29 = vpop.eup %2428 }
0x11e7   :  { %v1383_v31 = vmul.f32 %v2429_v29, %v1380_v28  ;;  %vm1388_vm1 = vweird.f32 %v2429_v29 }
0x11e8   :  { %vm1389_vm4 = vmor %vm1387_vm2, %vm1388_vm1 }
0x11e9   :  { %v1384_v32 = vsub.f32 1.0, %v1383_v31 }
0x11eb   :  { %v1385_v13 = vmul.f32 %v2429_v29, %v1384_v32 }
0x11ed   :  { %v1386_v3 = vadd.f32 %v2429_v29, %v1385_v13 }
0x11ef   :  { %v1390_v34 = vsel %vm1389_vm4, %v2429_v29, %v1386_v3 }
0x11f0   :  { %v1395_v25 = vsel %vm1392_vm5, %v1394_v9, %v1390_v34 }
0x11f1   :  { %v1413_v42 = vmul.f32 %v1395_v25, %v3178_v48 }
0x1236   :  { %v1416_v30 = vpop.permute.xlu2 %1415 }
0x1237   :  { %v1418_v41 = vmul.f32 %v1416_v30, %v1395_v25 }
0x1239   :  { %1420 = vrot.lane.b32.xlu0 %v1418_v41, %s2590_s19 }
0x123e   :  { %v847_v27 = vpop.permute.xlu2 %846 }
0x123f   :  { %849 = vst.msk [vmem:[#allocation2 + $0x10] sm:$0xff] %vm378_vm3, %v847_v27 }
0x1246   :  { %v1040_v36 = vld [vmem:[#allocation2 + $0x10] sm:$0xff] }
0x1247   :  { %v1047_v39 = vpack.c.bf16 %v1041_v38, %v1040_v36 }
0x1249   :  { %1165 = vmatmul.bf16.gmra.mxu0 %v1047_v39  ;;  %1194 = vmatmul.bf16.gmra.mxu1 %v1047_v39 }
0x12ab   :  { %v1421_v43 = vpop.permute.xlu0 %1420 }
0x12ac   :  { %v3207_v45 = vadd.f32 %v1421_v43, %v1413_v42 }
0x12ae   :  { %2430 = vtanh.f32 %v3207_v45 }
0x12af   :  { %2432 = vpow2.f32 %v2238_v53 }
0x12b4   :  { %v2431_v49 = vpop.eup %2430 }
0x12b5   :  { %1426 = vrot.lane.b32.xlu0 %v2431_v49, %s2590_s19  ;;  %v2433_v54 = vpop.eup %2432 }
0x12b6   :  { %v1381_v51 = vadd.f32 1.0, %v2433_v54 }
0x12b8   :  { %2434 = vrcp.f32 %v1381_v51  ;;  %v1408_v48 = vand.u32 2147483648, %v1381_v51  ;;  %vm1402_vm7 = vweird.f32 %v1381_v51  ;;  %v1406_v0 = vand.u32 2147483647, %v1381_v51 }
0x12ba   :  { %v1409_v23 = vor.u32 1.1754944e-38, %v1408_v48  ;;  %vm1407_vm9 = vcmp.eq.f32.partialorder %v1406_v0, 8.507059e+37 }
0x12be   :  { %v2435_v55 = vpop.eup %2434 }
0x12bf   :  { %v1398_v56 = vmul.f32 %v2435_v55, %v1381_v51  ;;  %vm1403_vm6 = vweird.f32 %v2435_v55 }
0x12c0   :  { %vm1404_vm8 = vmor %vm1402_vm7, %vm1403_vm6 }
0x12c1   :  { %v1399_v50 = vsub.f32 1.0, %v1398_v56 }
0x12c3   :  { %v1400_v57 = vmul.f32 %v2435_v55, %v1399_v50 }
0x12c5   :  { %v1401_v59 = vadd.f32 %v2435_v55, %v1400_v57 }
0x12c6   :  { %v1195_v10 = vpop.f32.mrf.mxu1  ;;  %v1166_v28 = vpop.f32.mrf.mxu0 }
0x12c7   :  { %v1405_v52 = vsel %vm1404_vm8, %v2435_v55, %v1401_v59  ;;  %v1196_v61 = vadd.f32 %v1195_v10, %v3170_v5  ;;  %v1167_v29 = vadd.f32 %v1166_v28, %v3174_v22 }
0x12c8   :  { %v1410_v2 = vsel %vm1407_vm9, %v1409_v23, %v1405_v52 }
0x1327   :  { %v1427_v4 = vpop.permute.xlu0 %1426 }
0x1328   :  { %v1429_v7 = vmul.f32 %v1427_v4, %v1410_v2 }
0x132a   :  { %v1430_v8 = vpack.c.bf16 %v1429_v7, %v1429_v7 }
0x132c   :  { %2239 = vmatmul.msk.bf16.vlgmr.msra.gmra.mxu2 %vm285_vm10, %v1430_v8  ;;  %2240 = vmatmul.msk.bf16.vlgmr.msra.gmra.mxu3 %vm285_vm10, %v1430_v8 }
0x132d   :  { %1627 = vmatpush.bf16.msra.mxu3 %v2979_v37  ;;  %1614 = vmatpush.bf16.msra.mxu2 %v3025_v62 }
0x1331   :  { %1628 = vmatpush.bf16.msra.mxu3 %v3000_v44  ;;  %1615 = vmatpush.bf16.msra.mxu2 %v3042_v1 }
0x1335   :  { %1629 = vmatpush.bf16.msra.mxu3 %v3040_v58  ;;  %1616 = vmatpush.bf16.msra.mxu2 %v3072_v16 }
0x1339   :  { %1630 = vmatpush.bf16.msra.mxu3 %v3070_v20  ;;  %1617 = vmatpush.bf16.msra.mxu2 %v3126_v47 }
0x13af   :  { %v1443_v11 = vpop.f32.mrf.mxu2  ;;  %v1456_v12 = vpop.f32.mrf.mxu3 }
0x13b0   :  { %v1461_v15 = vadd.f32 %v1456_v12, %v1196_v61  ;;  %v1460_v31 = vadd.f32 %v1443_v11, %v1167_v29 }
0x13b2   :  { %2436 = vtanh.f32 %v1461_v15  ;;  %v2241_v32 = vmul.f32 -1.442695, %v1460_v31  ;;  %v2242_v51 = vmul.f32 -1.442695, %v1461_v15 }
0x13b4   :  { %2438 = vpow2.f32 %v2241_v32 }
0x13b7   :  { %v1445_v17 = vpop.f32.mrf.mxu2  ;;  %v1458_v19 = vpop.f32.mrf.mxu3 }
0x13b8   :  { %v2437_v24 = vpop.eup %2436 }
0x13b9   :  { %1503 = vrot.lane.b32.xlu1 %v2437_v24, %s2590_s19 }
0x13ba   :  { %v2439_v13 = vpop.eup %2438 }
0x13bb   :  { %v1468_v3 = vadd.f32 1.0, %v2439_v13 }
0x13bd   :  { %2440 = vrcp.f32 %v1468_v3  ;;  %v1481_v25 = vand.u32 2147483648, %v1468_v3  ;;  %vm1475_vm12 = vweird.f32 %v1468_v3  ;;  %v1479_v41 = vand.u32 2147483647, %v1468_v3 }
0x13bf   :  { %v1482_v36 = vor.u32 1.1754944e-38, %v1481_v25  ;;  %vm1480_vm14 = vcmp.eq.f32.partialorder %v1479_v41, 8.507059e+37 }
0x13c3   :  { %v2441_v21 = vpop.eup %2440 }
0x13c4   :  { %v1471_v18 = vmul.f32 %v2441_v21, %v1468_v3  ;;  %vm1476_vm11 = vweird.f32 %v2441_v21 }
0x13c5   :  { %vm1477_vm13 = vmor %vm1475_vm12, %vm1476_vm11 }
0x13c6   :  { %v1472_v34 = vsub.f32 1.0, %v1471_v18 }
0x13c8   :  { %v1473_v9 = vmul.f32 %v2441_v21, %v1472_v34 }
0x13ca   :  { %v1474_v30 = vadd.f32 %v2441_v21, %v1473_v9 }
0x13cc   :  { %v1478_v27 = vsel %vm1477_vm13, %v2441_v21, %v1474_v30 }
0x13cd   :  { %v1483_v39 = vsel %vm1480_vm14, %v1482_v36, %v1478_v27 }
0x13ce   :  { %v1501_v43 = vmul.f32 %v1483_v39, %v3207_v45 }
0x142b   :  { %v1504_v38 = vpop.permute.xlu1 %1503 }
0x142c   :  { %v1506_v42 = vmul.f32 %v1504_v38, %v1483_v39 }
0x142e   :  { %1508 = vrot.lane.b32.xlu2 %v1506_v42, %s2590_s19 }
0x1488   :  { %v1509_v49 = vpop.permute.xlu2 %1508 }
0x1489   :  { %v3226_v53 = vadd.f32 %v1509_v49, %v1501_v43 }
0x148b   :  { %2442 = vtanh.f32 %v3226_v53 }
0x148c   :  { %2444 = vpow2.f32 %v2242_v51 }
0x1491   :  { %v2443_v54 = vpop.eup %2442 }
0x1492   :  { %1514 = vrot.lane.b32.xlu0 %v2443_v54, %s2590_s19  ;;  %v2445_v55 = vpop.eup %2444 }
0x1493   :  { %v1469_v56 = vadd.f32 1.0, %v2445_v55 }
0x1495   :  { %2446 = vrcp.f32 %v1469_v56  ;;  %v1496_v0 = vand.u32 2147483648, %v1469_v56  ;;  %vm1490_vm0 = vweird.f32 %v1469_v56  ;;  %v1494_v52 = vand.u32 2147483647, %v1469_v56 }
0x1497   :  { %v1497_v2 = vor.u32 1.1754944e-38, %v1496_v0  ;;  %vm1495_vm2 = vcmp.eq.f32.partialorder %v1494_v52, 8.507059e+37 }
0x149a   :  { %564 = vrot.lane.b32.xlu0 %v2839_v26, %s2590_s19 }
0x149b   :  { %v2447_v50 = vpop.eup %2446 }
0x149c   :  { %v1486_v57 = vmul.f32 %v2447_v50, %v1469_v56  ;;  %vm1491_vm15 = vweird.f32 %v2447_v50 }
0x149d   :  { %vm1492_vm1 = vmor %vm1490_vm0, %vm1491_vm15 }
0x149e   :  { %v1487_v59 = vsub.f32 1.0, %v1486_v57 }
0x14a0   :  { %v1488_v45 = vmul.f32 %v2447_v50, %v1487_v59 }
0x14a2   :  { %v1489_v48 = vadd.f32 %v2447_v50, %v1488_v45 }
0x14a4   :  { %v1493_v23 = vsel %vm1492_vm1, %v2447_v50, %v1489_v48 }
0x14a5   :  { %v1498_v4 = vsel %vm1495_vm2, %v1497_v2, %v1493_v23 }
0x1504   :  { %v1515_v26 = vpop.permute.xlu0 %1514 }
0x1505   :  { %v1517_v7 = vmul.f32 %v1515_v26, %v1498_v4 }
0x1507   :  { %v1518_v8 = vpack.c.bf16 %v1517_v7, %v1517_v7 }
0x1509   :  { %2243 = vmatmul.msk.bf16.vlgmr.msrb.gmra.mxu2 %vm285_vm10, %v1518_v8  ;;  %2244 = vmatmul.msk.bf16.vlgmr.msrb.gmra.mxu3 %vm285_vm10, %v1518_v8 }
0x150a   :  { %1803 = vmatpush.bf16.msrb.mxu3 %v2979_v37  ;;  %1790 = vmatpush.bf16.msrb.mxu2 %v3025_v62  ;;  %v1197_v37 = vpop.f32.mrf.mxu1 }
0x150b   :  { %v1198_v62 = vadd.f32 %v1197_v37, %v3170_v5 }
0x150c   :  { %v565_v10 = vpop.permute.xlu0 %564 }
0x150d   :  { %567 = vst.msk [vmem:[#allocation2 + $0x28] sm:$0xff] %vm378_vm3, %v565_v10 }
0x150e   :  { %844 = vst.msk [vmem:[#allocation2 + $0x28] sm:$0xff] %vm285_vm10, %v2913_v60  ;;  %1804 = vmatpush.bf16.msrb.mxu3 %v3000_v44  ;;  %1791 = vmatpush.bf16.msrb.mxu2 %v3042_v1 }
0x1512   :  { %1805 = vmatpush.bf16.msrb.mxu3 %v3040_v58  ;;  %1792 = vmatpush.bf16.msrb.mxu2 %v3072_v16  ;;  %v1168_v58 = vpop.f32.mrf.mxu0 }
0x1513   :  { %v1169_v1 = vadd.f32 %v1168_v58, %v3174_v22 }
0x1515   :  { %v1043_v25 = vld [vmem:[#allocation2 + $0x28] sm:$0xff] }
0x1516   :  { %1806 = vmatpush.bf16.msrb.mxu3 %v3070_v20  ;;  %1793 = vmatpush.bf16.msrb.mxu2 %v3126_v47 }
0x158c   :  { %v1531_v61 = vpop.f32.mrf.mxu2  ;;  %v1544_v11 = vpop.f32.mrf.mxu3 }
0x158d   :  { %v1549_v12 = vadd.f32 %v1544_v11, %v1198_v62  ;;  %v1548_v20 = vadd.f32 %v1531_v61, %v1169_v1 }
0x158f   :  { %2448 = vtanh.f32 %v1549_v12  ;;  %v2245_v16 = vmul.f32 -1.442695, %v1548_v20  ;;  %v2246_v42 = vmul.f32 -1.442695, %v1549_v12 }
0x1591   :  { %2450 = vpow2.f32 %v2245_v16 }
0x1594   :  { %v1533_v60 = vpop.f32.mrf.mxu2  ;;  %v1546_v15 = vpop.f32.mrf.mxu3 }
0x1595   :  { %v2449_v44 = vpop.eup %2448 }
0x1596   :  { %1591 = vrot.lane.b32.xlu1 %v2449_v44, %s2590_s19 }
0x1597   :  { %v2451_v47 = vpop.eup %2450 }
0x1598   :  { %v1556_v17 = vadd.f32 1.0, %v2451_v47 }
0x159a   :  { %2452 = vrcp.f32 %v1556_v17  ;;  %v1569_v32 = vand.u32 2147483648, %v1556_v17  ;;  %vm1563_vm5 = vweird.f32 %v1556_v17  ;;  %v1567_v13 = vand.u32 2147483647, %v1556_v17 }
0x159c   :  { %v1570_v3 = vor.u32 1.1754944e-38, %v1569_v32  ;;  %vm1568_vm7 = vcmp.eq.f32.partialorder %v1567_v13, 8.507059e+37 }
0x159e   :  { %658 = vrot.lane.b32.xlu1 %v2874_v14, %s2590_s19 }
0x15a0   :  { %v2453_v19 = vpop.eup %2452 }
0x15a1   :  { %v1559_v24 = vmul.f32 %v2453_v19, %v1556_v17  ;;  %vm1564_vm4 = vweird.f32 %v2453_v19 }
0x15a2   :  { %vm1565_vm6 = vmor %vm1563_vm5, %vm1564_vm4 }
0x15a3   :  { %v1560_v28 = vsub.f32 1.0, %v1559_v24 }
0x15a5   :  { %v1561_v29 = vmul.f32 %v2453_v19, %v1560_v28 }
0x15a7   :  { %v1562_v31 = vadd.f32 %v2453_v19, %v1561_v29 }
0x15a9   :  { %v1566_v14 = vsel %vm1565_vm6, %v2453_v19, %v1562_v31 }
0x15aa   :  { %v1571_v18 = vsel %vm1568_vm7, %v1570_v3, %v1566_v14 }
0x15ab   :  { %v1589_v27 = vmul.f32 %v1571_v18, %v3226_v53 }
0x1608   :  { %v1592_v21 = vpop.permute.xlu1 %1591 }
0x1609   :  { %v1594_v34 = vmul.f32 %v1592_v21, %v1571_v18 }
0x160b   :  { %1596 = vrot.lane.b32.xlu2 %v1594_v34, %s2590_s19 }
0x1610   :  { %v659_v9 = vpop.permute.xlu1 %658 }
0x1611   :  { %661 = vst.msk [vmem:[#allocation2 + $0x20] sm:$0xff] %vm378_vm3, %v659_v9 }
0x1612   :  { %750 = vst.msk [vmem:[#allocation2 + $0x20] sm:$0xff] %vm285_vm10, %v2900_v6 }
0x1619   :  { %v1042_v30 = vld [vmem:[#allocation2 + $0x20] sm:$0xff] }
0x161a   :  { %v1048_v41 = vpack.c.bf16 %v1043_v25, %v1042_v30 }
0x161c   :  { %1170 = vmatmul.bf16.gmra.mxu0 %v1048_v41  ;;  %1199 = vmatmul.bf16.gmra.mxu1 %v1048_v41 }
0x1665   :  { %v1597_v36 = vpop.permute.xlu2 %1596 }
0x1666   :  { %v3255_v38 = vadd.f32 %v1597_v36, %v1589_v27 }
0x1668   :  { %2454 = vtanh.f32 %v3255_v38 }
0x1669   :  { %2456 = vpow2.f32 %v2246_v42 }
0x166e   :  { %v2455_v39 = vpop.eup %2454 }
0x166f   :  { %1602 = vrot.lane.b32.xlu2 %v2455_v39, %s2590_s19  ;;  %v2457_v6 = vpop.eup %2456 }
0x1670   :  { %v1557_v43 = vadd.f32 1.0, %v2457_v6 }
0x1672   :  { %2458 = vrcp.f32 %v1557_v43  ;;  %v1584_v56 = vand.u32 2147483648, %v1557_v43  ;;  %vm1578_vm9 = vweird.f32 %v1557_v43  ;;  %v1582_v50 = vand.u32 2147483647, %v1557_v43 }
0x1674   :  { %v1585_v59 = vor.u32 1.1754944e-38, %v1584_v56  ;;  %vm1583_vm12 = vcmp.eq.f32.partialorder %v1582_v50, 8.507059e+37 }
0x1677   :  { %375 = vrot.lane.b32.xlu2 %v2784_v40, %s2590_s19 }
0x1678   :  { %v2459_v49 = vpop.eup %2458 }
0x1679   :  { %v1574_v54 = vmul.f32 %v2459_v49, %v1557_v43  ;;  %vm1579_vm8 = vweird.f32 %v2459_v49 }
0x167a   :  { %vm1580_vm11 = vmor %vm1578_vm9, %vm1579_vm8 }
0x167b   :  { %v1575_v51 = vsub.f32 1.0, %v1574_v54 }
0x167d   :  { %v1576_v53 = vmul.f32 %v2459_v49, %v1575_v51 }
0x167f   :  { %v1577_v55 = vadd.f32 %v2459_v49, %v1576_v53 }
0x1681   :  { %v1581_v57 = vsel %vm1580_vm11, %v2459_v49, %v1577_v55 }
0x1682   :  { %v1586_v45 = vsel %vm1583_vm12, %v1585_v59, %v1581_v57 }
0x1699   :  { %v1200_v23 = vpop.f32.mrf.mxu1  ;;  %v1171_v62 = vpop.f32.mrf.mxu0 }
0x169a   :  { %v1201_v2 = vadd.f32 %v1200_v23, %v3170_v5  ;;  %v1172_v61 = vadd.f32 %v1171_v62, %v3174_v22 }
0x16a1   :  { %v1173_v53 = vpop.f32.mrf.mxu0  ;;  %v1202_v55 = vpop.f32.mrf.mxu1 }
0x16c9   :  { %v1603_v40 = vpop.permute.xlu2 %1602 }
0x16ca   :  { %v1605_v48 = vmul.f32 %v1603_v40, %v1586_v45  ;;  %v1203_v45 = vadd.f32 %v1202_v55, %v3170_v5 }
0x16cc   :  { %v1606_v0 = vpack.c.bf16 %v1605_v48, %v1605_v48 }
0x16ce   :  { %2247 = vmatmul.msk.bf16.vlgmr.msra.gmra.mxu2 %vm285_vm10, %v1606_v0  ;;  %2248 = vmatmul.msk.bf16.vlgmr.msra.gmra.mxu3 %vm285_vm10, %v1606_v0 }
0x16d1   :  { %v376_v52 = vpop.permute.xlu2 %375 }
0x16d2   :  { %379 = vst.msk [vmem:[#allocation2 + $0x38] sm:$0xff] %vm378_vm3, %v376_v52 }
0x16d3   :  { %1032 = vst.msk [vmem:[#allocation2 + $0x38] sm:$0xff] %vm285_vm10, %v3099_v35 }
0x16da   :  { %v1045_v32 = vld [vmem:[#allocation2 + $0x38] sm:$0xff] }
0x1751   :  { %v1619_v4 = vpop.f32.mrf.mxu2  ;;  %v1632_v26 = vpop.f32.mrf.mxu3 }
0x1752   :  { %v1637_v7 = vadd.f32 %v1632_v26, %v1201_v2  ;;  %v1636_v11 = vadd.f32 %v1619_v4, %v1172_v61  ;;  %v1174_v4 = vadd.f32 %v1173_v53, %v3174_v22 }
0x1754   :  { %2460 = vtanh.f32 %v1637_v7  ;;  %v2249_v35 = vmul.f32 -1.442695, %v1636_v11  ;;  %v2250_v34 = vmul.f32 -1.442695, %v1637_v7 }
0x1756   :  { %2462 = vpow2.f32 %v2249_v35 }
0x1759   :  { %v1621_v8 = vpop.f32.mrf.mxu2  ;;  %v1634_v10 = vpop.f32.mrf.mxu3 }
0x175a   :  { %v2461_v37 = vpop.eup %2460 }
0x175b   :  { %1679 = vrot.lane.b32.xlu0 %v2461_v37, %s2590_s19 }
0x175c   :  { %v2463_v12 = vpop.eup %2462 }
0x175d   :  { %v1644_v60 = vadd.f32 1.0, %v2463_v12 }
0x175f   :  { %2464 = vrcp.f32 %v1644_v60  ;;  %v1657_v16 = vand.u32 2147483648, %v1644_v60  ;;  %vm1651_vm14 = vweird.f32 %v1644_v60  ;;  %v1655_v47 = vand.u32 2147483647, %v1644_v60 }
0x1761   :  { %v1658_v17 = vor.u32 1.1754944e-38, %v1657_v16  ;;  %vm1656_vm0 = vcmp.eq.f32.partialorder %v1655_v47, 8.507059e+37 }
0x1763   :  { %470 = vrot.lane.b32.xlu0 %v2814_v33, %s2590_s19 }
0x1765   :  { %v2465_v15 = vpop.eup %2464 }
0x1766   :  { %v1647_v44 = vmul.f32 %v2465_v15, %v1644_v60  ;;  %vm1652_vm13 = vweird.f32 %v2465_v15 }
0x1767   :  { %vm1653_vm15 = vmor %vm1651_vm14, %vm1652_vm13 }
0x1768   :  { %v1648_v58 = vsub.f32 1.0, %v1647_v44 }
0x176a   :  { %v1649_v1 = vmul.f32 %v2465_v15, %v1648_v58 }
0x176c   :  { %v1650_v20 = vadd.f32 %v2465_v15, %v1649_v1 }
0x176e   :  { %v1654_v33 = vsel %vm1653_vm15, %v2465_v15, %v1650_v20 }
0x176f   :  { %v1659_v24 = vsel %vm1656_vm0, %v1658_v17, %v1654_v33 }
0x1770   :  { %v1677_v14 = vmul.f32 %v1659_v24, %v3255_v38 }
0x17cd   :  { %v1680_v19 = vpop.permute.xlu0 %1679 }
0x17ce   :  { %v1682_v28 = vmul.f32 %v1680_v19, %v1659_v24 }
0x17d0   :  { %1684 = vrot.lane.b32.xlu1 %v1682_v28, %s2590_s19 }
0x17d5   :  { %v471_v29 = vpop.permute.xlu0 %470 }
0x17d6   :  { %473 = vst.msk [vmem:[#allocation2 + $0x30] sm:$0xff] %vm378_vm3, %v471_v29 }
0x17d7   :  { %938 = vst.msk [vmem:[#allocation2 + $0x30] sm:$0xff] %vm285_vm10, %v2929_v46 }
0x17de   :  { %v1044_v31 = vld [vmem:[#allocation2 + $0x30] sm:$0xff] }
0x17df   :  { %v1049_v13 = vpack.c.bf16 %v1045_v32, %v1044_v31 }
0x17e1   :  { %1175 = vmatmul.bf16.gmra.mxu0 %v1049_v13  ;;  %1204 = vmatmul.bf16.gmra.mxu1 %v1049_v13 }
0x1842   :  { %v1685_v3 = vpop.permute.xlu1 %1684 }
0x1843   :  { %v3276_v21 = vadd.f32 %v1685_v3, %v1677_v14 }
0x1845   :  { %2466 = vtanh.f32 %v3276_v21 }
0x1846   :  { %2468 = vpow2.f32 %v2250_v34 }
0x184b   :  { %v2467_v18 = vpop.eup %2466 }
0x184c   :  { %1690 = vrot.lane.b32.xlu1 %v2467_v18, %s2590_s19  ;;  %v2469_v9 = vpop.eup %2468 }
0x184d   :  { %v1645_v30 = vadd.f32 1.0, %v2469_v9 }
0x184f   :  { %2470 = vrcp.f32 %v1645_v30  ;;  %v1672_v38 = vand.u32 2147483648, %v1645_v30  ;;  %vm1666_vm1 = vweird.f32 %v1645_v30  ;;  %v1670_v39 = vand.u32 2147483647, %v1645_v30 }
0x1851   :  { %v1673_v6 = vor.u32 1.1754944e-38, %v1672_v38  ;;  %vm1671_vm4 = vcmp.eq.f32.partialorder %v1670_v39, 8.507059e+37 }
0x1855   :  { %v2471_v46 = vpop.eup %2470 }
0x1856   :  { %v1662_v25 = vmul.f32 %v2471_v46, %v1645_v30  ;;  %vm1667_vm3 = vweird.f32 %v2471_v46 }
0x1857   :  { %vm1668_vm2 = vmor %vm1666_vm1, %vm1667_vm3 }
0x1858   :  { %v1663_v41 = vsub.f32 1.0, %v1662_v25 }
0x185a   :  { %v1664_v27 = vmul.f32 %v2471_v46, %v1663_v41 }
0x185c   :  { %v1665_v36 = vadd.f32 %v2471_v46, %v1664_v27 }
0x185e   :  { %v1669_v42 = vsel %vm1668_vm2, %v2471_v46, %v1665_v36  ;;  %v3282_v56 = vpop.f32.mrf.mxu0  ;;  %v3284_v50 = vpop.f32.mrf.mxu1 }
0x185f   :  { %v1674_v43 = vsel %vm1671_vm4, %v1673_v6, %v1669_v42  ;;  %v1177_v41 = vadd.f32 %v3282_v56, %v3174_v22  ;;  %v1206_v27 = vadd.f32 %v3284_v50, %v3170_v5 }
0x1866   :  { %v3286_v57 = vpop.f32.mrf.mxu0  ;;  %v3288_v59 = vpop.f32.mrf.mxu1 }
0x18be   :  { %v1691_v49 = vpop.permute.xlu1 %1690 }
0x18bf   :  { %v1693_v54 = vmul.f32 %v1691_v49, %v1674_v43 }
0x18c1   :  { %v1694_v51 = vpack.c.bf16 %v1693_v54, %v1693_v54 }
0x18c3   :  { %2251 = vmatmul.msk.bf16.vlgmr.msra.gmra.mxu0 %vm285_vm10, %v1694_v51  ;;  %2252 = vmatmul.msk.bf16.vlgmr.msra.gmra.mxu1 %vm285_vm10, %v1694_v51 }
0x1940   :  { %v1707_v40 = vpop.f32.mrf.mxu0  ;;  %v1720_v48 = vpop.f32.mrf.mxu1 }
0x1941   :  { %v1725_v0 = vadd.f32 %v1720_v48, %v1203_v45  ;;  %v1724_v26 = vadd.f32 %v1707_v40, %v1174_v4 }
0x1943   :  { %2472 = vtanh.f32 %v1725_v0  ;;  %v2253_v7 = vmul.f32 -1.442695, %v1724_v26  ;;  %v2254_v19 = vmul.f32 -1.442695, %v1725_v0 }
0x1945   :  { %2474 = vpow2.f32 %v2253_v7 }
0x1948   :  { %v1709_v52 = vpop.f32.mrf.mxu0  ;;  %v1722_v23 = vpop.f32.mrf.mxu1 }
0x1949   :  { %v2473_v2 = vpop.eup %2472 }
0x194a   :  { %1767 = vrot.lane.b32.xlu2 %v2473_v2, %s2590_s19 }
0x194b   :  { %v2475_v8 = vpop.eup %2474 }
0x194c   :  { %v1732_v10 = vadd.f32 1.0, %v2475_v8 }
0x194e   :  { %2476 = vrcp.f32 %v1732_v10  ;;  %v1745_v12 = vand.u32 2147483648, %v1732_v10  ;;  %vm1739_vm6 = vweird.f32 %v1732_v10  ;;  %v1743_v60 = vand.u32 2147483647, %v1732_v10 }
0x1950   :  { %v1746_v44 = vor.u32 1.1754944e-38, %v1745_v12  ;;  %vm1744_vm8 = vcmp.eq.f32.partialorder %v1743_v60, 8.507059e+37 }
0x1954   :  { %v2477_v37 = vpop.eup %2476 }
0x1955   :  { %v1735_v62 = vmul.f32 %v2477_v37, %v1732_v10  ;;  %vm1740_vm5 = vweird.f32 %v2477_v37 }
0x1956   :  { %vm1741_vm7 = vmor %vm1739_vm6, %vm1740_vm5 }
0x1957   :  { %v1736_v61 = vsub.f32 1.0, %v1735_v62 }
0x1959   :  { %v1737_v11 = vmul.f32 %v2477_v37, %v1736_v61 }
0x195b   :  { %v1738_v35 = vadd.f32 %v2477_v37, %v1737_v11 }
0x195d   :  { %v1742_v15 = vsel %vm1741_vm7, %v2477_v37, %v1738_v35 }
0x195e   :  { %v1747_v1 = vsel %vm1744_vm8, %v1746_v44, %v1742_v15 }
0x195f   :  { %v1765_v16 = vmul.f32 %v1747_v1, %v3276_v21 }
0x19a4   :  { %v1768_v58 = vpop.permute.xlu2 %1767 }
0x19a5   :  { %v1770_v20 = vmul.f32 %v1768_v58, %v1747_v1 }
0x19a7   :  { %1772 = vrot.lane.b32.xlu0 %v1770_v20, %s2590_s19 }
0x1a19   :  { %v1773_v47 = vpop.permute.xlu0 %1772 }
0x1a1a   :  { %v1775_v33 = vadd.f32 %v1773_v47, %v1765_v16 }
0x1a1c   :  { %2478 = vtanh.f32 %v1775_v33 }
0x1a1d   :  { %2480 = vpow2.f32 %v2254_v19 }
0x1a22   :  { %v2479_v17 = vpop.eup %2478 }
0x1a23   :  { %1778 = vrot.lane.b32.xlu1 %v2479_v17, %s2590_s19  ;;  %v2481_v24 = vpop.eup %2480 }
0x1a24   :  { %v1733_v28 = vadd.f32 1.0, %v2481_v24  ;;  %v1208_v24 = vadd.f32 %v3288_v59, %v3170_v5  ;;  %v1965_v59 = vld [vmem:[#allocation7 + $0x18] sm:$0xff] }
0x1a25   :  { %1984 = vmatpush.msra.mxu2 %v1965_v59 }
0x1a26   :  { %2482 = vrcp.f32 %v1733_v28  ;;  %v1760_v3 = vand.u32 2147483648, %v1733_v28  ;;  %vm1754_vm11 = vweird.f32 %v1733_v28  ;;  %v1758_v21 = vand.u32 2147483647, %v1733_v28 }
0x1a28   :  { %v1761_v34 = vor.u32 1.1754944e-38, %v1760_v3  ;;  %vm1759_vm13 = vcmp.eq.f32.partialorder %v1758_v21, 8.507059e+37  ;;  %v1179_v3 = vadd.f32 %v3286_v57, %v3174_v22 }
0x1a2c   :  { %v2483_v29 = vpop.eup %2482 }
0x1a2d   :  { %v1750_v31 = vmul.f32 %v2483_v29, %v1733_v28  ;;  %vm1755_vm9 = vweird.f32 %v2483_v29 }
0x1a2e   :  { %vm1756_vm12 = vmor %vm1754_vm11, %vm1755_vm9  ;;  %vm1969_vm9 = vcmask 261120  }
0x1a2f   :  { %v1751_v32 = vsub.f32 1.0, %v1750_v31 }
0x1a31   :  { %v1752_v13 = vmul.f32 %v2483_v29, %v1751_v32 }
0x1a33   :  { %v1753_v14 = vadd.f32 %v2483_v29, %v1752_v13 }
0x1a35   :  { %v1757_v18 = vsel %vm1756_vm12, %v2483_v29, %v1753_v14 }
0x1a36   :  { %v1762_v9 = vsel %vm1759_vm13, %v1761_v34, %v1757_v18 }
0x1a95   :  { %v1779_v30 = vpop.permute.xlu1 %1778 }
0x1a96   :  { %v1781_v46 = vmul.f32 %v1779_v30, %v1762_v9  ;;  %v1964_v9 = vld [vmem:[#allocation7 + $0x10] sm:$0xff]  ;;  %v1963_v30 = vld [vmem:[#allocation7 + $0x8] sm:$0xff] }
0x1a97   :  { %1985 = vmatpush.msra.mxu2 %v1964_v9 }
0x1a98   :  { %v1782_v25 = vpack.c.bf16 %v1781_v46, %v1781_v46  ;;  %v1962_v46 = vld [vmem:[#allocation7] sm:$0xff] }
0x1a99   :  { %1986 = vmatpush.msra.mxu2 %v1963_v30 }
0x1a9a   :  { %2255 = vmatmul.msk.bf16.vlgmr.msrb.gmra.mxu2 %vm285_vm10, %v1782_v25  ;;  %2256 = vmatmul.msk.bf16.vlgmr.msrb.gmra.mxu3 %vm285_vm10, %v1782_v25 }
0x1a9b   :  { %1987 = vmatpush.msra.mxu2 %v1962_v46 }
0x1b1d   :  { %v1795_v36 = vpop.f32.mrf.mxu2  ;;  %v1808_v38 = vpop.f32.mrf.mxu3 }
0x1b1e   :  { %v1812_v39 = vadd.f32 %v1795_v36, %v1177_v41  ;;  %v1813_v42 = vadd.f32 %v1808_v38, %v1206_v27 }
0x1b20   :  { %2484 = vtanh.f32 %v1813_v42  ;;  %v2257_v54 = vmul.f32 -1.442695, %v1812_v39  ;;  %v2258_v62 = vmul.f32 -1.442695, %v1813_v42 }
0x1b22   :  { %2486 = vpow2.f32 %v2257_v54  ;;  %v1961_v54 = vld [vmem:[#allocation5 + $0x18] sm:$0xff] }
0x1b23   :  { %2007 = vmatpush.msra.mxu3 %v1961_v54 }
0x1b25   :  { %v1797_v6 = vpop.f32.mrf.mxu2  ;;  %v1810_v43 = vpop.f32.mrf.mxu3 }
0x1b26   :  { %v2485_v49 = vpop.eup %2484 }
0x1b27   :  { %1855 = vrot.lane.b32.xlu2 %v2485_v49, %s2590_s19 }
0x1b28   :  { %v2487_v51 = vpop.eup %2486 }
0x1b29   :  { %v1820_v53 = vadd.f32 1.0, %v2487_v51  ;;  %v1960_v51 = vld [vmem:[#allocation5 + $0x10] sm:$0xff] }
0x1b2a   :  { %2008 = vmatpush.msra.mxu3 %v1960_v51 }
0x1b2b   :  { %2488 = vrcp.f32 %v1820_v53  ;;  %v1833_v48 = vand.u32 2147483648, %v1820_v53  ;;  %vm1827_vm15 = vweird.f32 %v1820_v53  ;;  %v1831_v0 = vand.u32 2147483647, %v1820_v53 }
0x1b2d   :  { %v1834_v23 = vor.u32 1.1754944e-38, %v1833_v48  ;;  %vm1832_vm3 = vcmp.eq.f32.partialorder %v1831_v0, 8.507059e+37 }
0x1b31   :  { %v2489_v55 = vpop.eup %2488 }
0x1b32   :  { %v1823_v56 = vmul.f32 %v2489_v55, %v1820_v53  ;;  %vm1828_vm14 = vweird.f32 %v2489_v55  ;;  %v1959_v53 = vld [vmem:[#allocation5 + $0x8] sm:$0xff] }
0x1b33   :  { %vm1829_vm0 = vmor %vm1827_vm15, %vm1828_vm14  ;;  %2009 = vmatpush.msra.mxu3 %v1959_v53 }
0x1b34   :  { %v1824_v45 = vsub.f32 1.0, %v1823_v56 }
0x1b36   :  { %v1825_v40 = vmul.f32 %v2489_v55, %v1824_v45 }
0x1b38   :  { %v1826_v50 = vadd.f32 %v2489_v55, %v1825_v40 }
0x1b3a   :  { %v1830_v52 = vsel %vm1829_vm0, %v2489_v55, %v1826_v50  ;;  %v1958_v55 = vld [vmem:[#allocation5] sm:$0xff] }
0x1b3b   :  { %v1835_v4 = vsel %vm1832_vm3, %v1834_v23, %v1830_v52  ;;  %2010 = vmatpush.msra.mxu3 %v1958_v55 }
0x1b3c   :  { %v1853_v7 = vmul.f32 %v1835_v4, %v1775_v33 }
0x1b81   :  { %v1856_v2 = vpop.permute.xlu2 %1855 }
0x1b82   :  { %v1858_v26 = vmul.f32 %v1856_v2, %v1835_v4 }
0x1b84   :  { %1860 = vrot.lane.b32.xlu0 %v1858_v26, %s2590_s19 }
0x1bf6   :  { %v1861_v8 = vpop.permute.xlu0 %1860 }
0x1bf7   :  { %v3304_v10 = vadd.f32 %v1861_v8, %v1853_v7 }
0x1bf9   :  { %2490 = vtanh.f32 %v3304_v10 }
0x1bfa   :  { %2492 = vpow2.f32 %v2258_v62 }
0x1bff   :  { %v2491_v37 = vpop.eup %2490 }
0x1c00   :  { %1866 = vrot.lane.b32.xlu1 %v2491_v37, %s2590_s19  ;;  %v2493_v61 = vpop.eup %2492 }
0x1c01   :  { %v1821_v11 = vadd.f32 1.0, %v2493_v61 }
0x1c03   :  { %2494 = vrcp.f32 %v1821_v11  ;;  %v1848_v58 = vand.u32 2147483648, %v1821_v11  ;;  %vm1842_vm2 = vweird.f32 %v1821_v11  ;;  %v1846_v1 = vand.u32 2147483647, %v1821_v11 }
0x1c05   :  { %v1849_v16 = vor.u32 1.1754944e-38, %v1848_v58  ;;  %vm1847_vm5 = vcmp.eq.f32.partialorder %v1846_v1, 8.507059e+37 }
0x1c09   :  { %v2495_v35 = vpop.eup %2494 }
0x1c0a   :  { %v1838_v12 = vmul.f32 %v2495_v35, %v1821_v11  ;;  %vm1843_vm1 = vweird.f32 %v2495_v35 }
0x1c0b   :  { %vm1844_vm4 = vmor %vm1842_vm2, %vm1843_vm1 }
0x1c0c   :  { %v1839_v60 = vsub.f32 1.0, %v1838_v12  ;;  %v2315_v12 = vld [vmem:[%s3336_s9] ss:$0 sm:$0xff] }
0x1c0e   :  { %v1840_v15 = vmul.f32 %v2495_v35, %v1839_v60 }
0x1c10   :  { %v1841_v44 = vadd.f32 %v2495_v35, %v1840_v15 }
0x1c12   :  { %v1845_v20 = vsel %vm1844_vm4, %v2495_v35, %v1841_v44 }
0x1c13   :  { %v1850_v47 = vsel %vm1847_vm5, %v1849_v16, %v1845_v20 }
0x1c72   :  { %v1867_v33 = vpop.permute.xlu1 %1866 }
0x1c73   :  { %v1869_v17 = vmul.f32 %v1867_v33, %v1850_v47 }
0x1c75   :  { %v1870_v19 = vpack.c.bf16 %v1869_v17, %v1869_v17 }
0x1c77   :  { %2259 = vmatmul.msk.bf16.vlgmr.msrb.gmra.mxu0 %vm285_vm10, %v1870_v19  ;;  %2260 = vmatmul.msk.bf16.vlgmr.msrb.gmra.mxu1 %vm285_vm10, %v1870_v19 }
0x1cf4   :  { %v1883_v28 = vpop.f32.mrf.mxu0  ;;  %v1896_v29 = vpop.f32.mrf.mxu1 }
0x1cf5   :  { %v1901_v31 = vadd.f32 %v1896_v29, %v1208_v24  ;;  %v1900_v21 = vadd.f32 %v1883_v28, %v1179_v3 }
0x1cf7   :  { %2496 = vtanh.f32 %v1901_v31  ;;  %v2261_v18 = vmul.f32 -1.442695, %v1900_v21  ;;  %v2262_v48 = vmul.f32 -1.442695, %v1901_v31 }
0x1cf9   :  { %2498 = vpow2.f32 %v2261_v18 }
0x1cfc   :  { %v1885_v32 = vpop.f32.mrf.mxu0  ;;  %v1898_v13 = vpop.f32.mrf.mxu1 }
0x1cfd   :  { %v2497_v14 = vpop.eup %2496 }
0x1cfe   :  { %1943 = vrot.lane.b32.xlu2 %v2497_v14, %s2590_s19 }
0x1cff   :  { %v2499_v34 = vpop.eup %2498 }
0x1d00   :  { %v1908_v5 = vadd.f32 1.0, %v2499_v34 }
0x1d02   :  { %2500 = vrcp.f32 %v1908_v5  ;;  %v1921_v22 = vand.u32 2147483648, %v1908_v5  ;;  %vm1915_vm6 = vweird.f32 %v1908_v5  ;;  %v1919_v57 = vand.u32 2147483647, %v1908_v5 }
0x1d04   :  { %v1922_v39 = vor.u32 1.1754944e-38, %v1921_v22  ;;  %vm1920_vm8 = vcmp.eq.f32.partialorder %v1919_v57, 8.507059e+37 }
0x1d06   :  { %1967 = vrot.lane.b32.xlu2 %v3184_v63, %s2591_s6 }
0x1d08   :  { %v2501_v25 = vpop.eup %2500 }
0x1d09   :  { %v1911_v41 = vmul.f32 %v2501_v25, %v1908_v5  ;;  %vm1916_vm10 = vweird.f32 %v2501_v25 }
0x1d0a   :  { %vm1917_vm7 = vmor %vm1915_vm6, %vm1916_vm10 }
0x1d0b   :  { %v1912_v63 = vsub.f32 1.0, %v1911_v41 }
0x1d0d   :  { %v1913_v27 = vmul.f32 %v2501_v25, %v1912_v63 }
0x1d0f   :  { %v1914_v36 = vadd.f32 %v2501_v25, %v1913_v27 }
0x1d11   :  { %v1918_v38 = vsel %vm1917_vm7, %v2501_v25, %v1914_v36 }
0x1d12   :  { %v1923_v6 = vsel %vm1920_vm8, %v1922_v39, %v1918_v38 }
0x1d13   :  { %v1941_v56 = vmul.f32 %v1923_v6, %v3304_v10 }
0x1d58   :  { %v1944_v42 = vpop.permute.xlu2 %1943 }
0x1d59   :  { %v1946_v43 = vmul.f32 %v1944_v42, %v1923_v6 }
0x1d5b   :  { %1948 = vrot.lane.b32.xlu0 %v1946_v43, %s2590_s19 }
0x1d60   :  { %v1968_v49 = vpop.permute.xlu2 %1967 }
0x1d61   :  { %2263 = vmatmul.msk.f32.vlgmr.msra.gmra.mxu2 %vm1969_vm9, %v1968_v49 }
0x1dcd   :  { %v1949_v45 = vpop.permute.xlu0 %1948 }
0x1dce   :  { %v1951_v40 = vadd.f32 %v1949_v45, %v1941_v56 }
0x1dd0   :  { %2502 = vtanh.f32 %v1951_v40 }
0x1dd1   :  { %2504 = vpow2.f32 %v2262_v48 }
0x1dd6   :  { %v2503_v50 = vpop.eup %2502 }
0x1dd7   :  { %1954 = vrot.lane.b32.xlu1 %v2503_v50, %s2590_s19  ;;  %v2505_v0 = vpop.eup %2504 }
0x1dd8   :  { %v1909_v52 = vadd.f32 1.0, %v2505_v0 }
0x1dda   :  { %2506 = vrcp.f32 %v1909_v52  ;;  %v1936_v8 = vand.u32 2147483648, %v1909_v52  ;;  %vm1930_vm12 = vweird.f32 %v1909_v52  ;;  %v1934_v10 = vand.u32 2147483647, %v1909_v52 }
0x1ddc   :  { %v1937_v62 = vor.u32 1.1754944e-38, %v1936_v8  ;;  %vm1935_vm14 = vcmp.eq.f32.partialorder %v1934_v10, 8.507059e+37 }
0x1de0   :  { %v2507_v23 = vpop.eup %2506 }
0x1de1   :  { %v1926_v2 = vmul.f32 %v2507_v23, %v1909_v52  ;;  %vm1931_vm11 = vweird.f32 %v2507_v23 }
0x1de2   :  { %vm1932_vm13 = vmor %vm1930_vm12, %vm1931_vm11 }
0x1de3   :  { %v1927_v4 = vsub.f32 1.0, %v1926_v2 }
0x1de4   :  { %v1989_v60 = vpop.f32.mrf.mxu2 }
0x1de5   :  { %v1928_v26 = vmul.f32 %v2507_v23, %v1927_v4 }
0x1de7   :  { %v1929_v7 = vadd.f32 %v2507_v23, %v1928_v26 }
0x1de9   :  { %v1933_v37 = vsel %vm1932_vm13, %v2507_v23, %v1929_v7 }
0x1dea   :  { %v1938_v61 = vsel %vm1935_vm14, %v1937_v62, %v1933_v37 }
0x1e49   :  { %v1955_v11 = vpop.permute.xlu1 %1954 }
0x1e4a   :  { %v1957_v35 = vmul.f32 %v1955_v11, %v1938_v61 }
0x1e4c   :  { %2264 = vmatmul.msk.f32.vlgmr.msra.gmra.mxu3 %vm1969_vm9, %v1957_v35 }
0x1ecf   :  { %v2012_v15 = vpop.f32.mrf.mxu3 }
0x1ed0   :  { %v2013_v44 = vadd.f32 %v2012_v15, %v1989_v60 }
0x1ed2   :  { %v2019_v58 = vadd.f32 %v2315_v12, %v2013_v44 }
0x1ed4   :  { %2020 = vst [vmem:[%s3337_s10] sm:$0xff] %v2019_v58 }
0x1ed5   :  { %2025 = vsyncpa [#allocation4], 1 }
0x1ed6   :  { %2026 = vsyncpa [#allocation6], 1 }

</bundles_post_ra>
